<compile_context>
chip_gen: v7x
topology: tpu7x:2x2x1
jax: 0.10.0
libtpu: 0.0.40
codegen_flags: <defaults>
</compile_context>

<pallas_src>
import jax
import jax.numpy as jnp
from jax import lax
from jax.experimental import pallas as pl
from jax.experimental.pallas import tpu as pltpu


# ----------------------------------------------------------------------------
# small helpers for picking TPU-friendly block sizes
# ----------------------------------------------------------------------------
def _row_chunk(n, target):
    """Largest multiple-of-8 divisor of n that is <= target, else n (full)."""
    if n <= target:
        return n
    best = None
    for d in range(8, min(n, target) + 1, 8):
        if n % d == 0:
            best = d
    return best if best is not None else n


def _time_chunk(s, target):
    """Largest divisor of s that is <= target."""
    t = min(s, target)
    while s % t:
        t -= 1
    return t


# ----------------------------------------------------------------------------
# Kernel 1: sum of the last 4 BERT hidden states (tiled, parallel over rows)
# ----------------------------------------------------------------------------
def _sum_last4_kernel(hs_ref, out_ref):
    # hs_ref: (4, R, H) block, out_ref: (R, H) block
    out_ref[...] = hs_ref[0] + hs_ref[1] + hs_ref[2] + hs_ref[3]


def sum_last4(hidden_states):
    """hidden_states: (L>=4, B, S, H) -> (B, S, H), sum of the last 4 layers."""
    last4 = hidden_states[-4:]
    _, B, S, H = last4.shape
    rows = B * S
    flat = last4.reshape(4, rows, H)          # layout-preserving (free) reshape
    R = _row_chunk(rows, 512)
    out = pl.pallas_call(
        _sum_last4_kernel,
        out_shape=jax.ShapeDtypeStruct((rows, H), last4.dtype),
        grid=(rows // R,),
        in_specs=[pl.BlockSpec((4, R, H), lambda i: (0, i, 0))],
        out_specs=pl.BlockSpec((R, H), lambda i: (i, 0)),
        compiler_params=pltpu.CompilerParams(
            dimension_semantics=("parallel",)),
    )(flat)
    return out.reshape(B, S, H)


# ----------------------------------------------------------------------------
# Kernel 2: fused input projection  xw[d] = sum_k x_k @ W_k[d] + b[d]
# (all time steps, both directions, concat folded in — fully parallel)
# ----------------------------------------------------------------------------
def _make_proj_kernel(widths, num_dir):
    n_feat = len(widths)

    def kernel(*refs):
        x_refs = refs[:n_feat]                    # each (R, F_k)
        w_refs = refs[n_feat:2 * n_feat]          # each (D, F_k, 4H)
        b_ref = refs[2 * n_feat]                  # (D, 1, 4H)
        out_ref = refs[2 * n_feat + 1]            # (D, R, 4H)
        for d in range(num_dir):
            acc = None
            for k in range(n_feat):
                xk = x_refs[k][...]
                wk = w_refs[k][d]
                if widths[k] == 1:
                    # rank-1 feature (e.g. predicates): broadcast-mul on VPU
                    term = xk * wk
                else:
                    term = jnp.dot(xk, wk, preferred_element_type=jnp.float32)
                acc = term if acc is None else acc + term
            out_ref[d] = (acc + b_ref[d]).astype(out_ref.dtype)

    return kernel


# ----------------------------------------------------------------------------
# Kernel 3: sequential LSTM recurrence (PyTorch gate order i, f, g, o)
# grid = (direction, time-chunk); time chunk processed by an unrolled loop
# ----------------------------------------------------------------------------
def _make_rec_kernel(T, B, H):
    def kernel(xw_ref, whh_ref, out_ref, h_scr, c_scr):
        d = pl.program_id(0)

        @pl.when(pl.program_id(1) == 0)
        def _():
            h_scr[...] = jnp.zeros_like(h_scr)
            c_scr[...] = jnp.zeros_like(c_scr)

        whh = whh_ref[...]                                # (H, 4H)

        def step(s, carry):
            # within-chunk time index: ascending for fwd, descending for bwd
            idx = (1 - d) * s + d * (T - 1 - s)
            gates = xw_ref[idx] + jnp.dot(h_scr[...], whh,
                                          preferred_element_type=jnp.float32)
            i_g = jax.nn.sigmoid(gates[:, 0 * H:1 * H])
            f_g = jax.nn.sigmoid(gates[:, 1 * H:2 * H])
            g_g = jnp.tanh(gates[:, 2 * H:3 * H])
            o_g = jax.nn.sigmoid(gates[:, 3 * H:4 * H])
            c_new = f_g * c_scr[...] + i_g * g_g
            h_new = o_g * jnp.tanh(c_new)
            c_scr[...] = c_new
            h_scr[...] = h_new
            out_ref[idx] = h_new.astype(out_ref.dtype)
            return carry

        lax.fori_loop(0, T, step, 0, unroll=True)

    return kernel


def _slab_index_map(j):
    def idx(t):
        return (j, t, 0)
    return idx


def _const_index_map(ndim):
    zeros = (0,) * ndim

    def idx(t):
        return zeros
    return idx


# ----------------------------------------------------------------------------
# One (bi)directional LSTM layer, fully in Pallas
# ----------------------------------------------------------------------------
def bilstm_layer(features, wih_t, whh_t, bias, *,
                 proj_rows_target=512, rec_time_target=32):
    """features: list of (array, dir) where
         dir is None -> array is time-major (S, B, F)
         dir is j    -> array is direction-major (Dprev, S, B, F); slab j used
       Feature order defines the (virtual) input concatenation.
       wih_t (D, sum F_k, 4H), whh_t (D, H, 4H), bias (D, 1, 4H).
       Returns direction-major hidden states (D, S, B, H)."""
    D, I_total, H4 = wih_t.shape
    H = H4 // 4

    a0, d0 = features[0]
    S, B = (a0.shape[0], a0.shape[1]) if d0 is None else (a0.shape[1], a0.shape[2])
    rows = S * B

    widths = [a.shape[-1] for a, _ in features]
    assert sum(widths) == I_total, (widths, I_total)
    w_chunks, off = [], 0
    for w in widths:
        w_chunks.append(wih_t[:, off:off + w, :])
        off += w

    # ---------- stage 1: parallel batched input projection -------------------
    R = _row_chunk(rows, proj_rows_target)
    proj_inputs, proj_specs = [], []
    for (a, j) in features:
        F = a.shape[-1]
        if j is None:
            proj_inputs.append(a.reshape(rows, F))              # free reshape
            proj_specs.append(pl.BlockSpec((R, F), lambda t: (t, 0)))
        else:
            proj_inputs.append(a.reshape(a.shape[0], rows, F))  # free reshape
            proj_specs.append(pl.BlockSpec((None, R, F), _slab_index_map(j)))
    for w in w_chunks:
        proj_inputs.append(w)
        proj_specs.append(pl.BlockSpec(w.shape, _const_index_map(3)))
    proj_inputs.append(bias)
    proj_specs.append(pl.BlockSpec(bias.shape, _const_index_map(3)))

    xw = pl.pallas_call(
        _make_proj_kernel(widths, D),
        out_shape=jax.ShapeDtypeStruct((D, rows, H4), jnp.float32),
        grid=(rows // R,),
        in_specs=proj_specs,
        out_specs=pl.BlockSpec((D, R, H4), lambda t: (0, t, 0)),
        compiler_params=pltpu.CompilerParams(
            dimension_semantics=("parallel",)),
    )(*proj_inputs)
    xw = xw.reshape(D, S, B, H4)                                # free reshape

    # ---------- stage 2: sequential recurrence (latency-bound part) ----------
    T = _time_chunk(S, rec_time_target)
    nc = S // T

    def seq_idx(d, t):
        # forward walks chunks 0..nc-1; backward walks nc-1..0 (no HBM reversal)
        return (d, (1 - d) * t + d * (nc - 1 - t), 0, 0)

    out = pl.pallas_call(
        _make_rec_kernel(T, B, H),
        out_shape=jax.ShapeDtypeStruct((D, S, B, H), jnp.float32),
        grid=(D, nc),
        in_specs=[
            pl.BlockSpec((None, T, B, H4), seq_idx),
            # W_hh block is grid-invariant within a direction; default
            # double-buffering is fine at these sizes.
            pl.BlockSpec((None, H, H4), lambda d, t: (d, 0, 0)),
        ],
        out_specs=pl.BlockSpec((None, T, B, H), seq_idx),
        scratch_shapes=[pltpu.VMEM((B, H), jnp.float32),    # h state
                        pltpu.VMEM((B, H), jnp.float32)],   # c state
        compiler_params=pltpu.CompilerParams(
            dimension_semantics=("parallel", "arbitrary")),
    )(xw, whh_t)
    return out


def run_lstm(prepped_layers, features):
    """Multi-layer (bi)LSTM stack; returns direction-major (D, S, B, H)."""
    out = None
    for li, (wih_t, whh_t, bias) in enumerate(prepped_layers):
        feats = features if li == 0 else [(out, j) for j in range(out.shape[0])]
        out = bilstm_layer(feats, wih_t, whh_t, bias)
        # inter-layer dropout: identity in eval mode
    return out


# ----------------------------------------------------------------------------
# Parameter init (PyTorch layout) + conversion to kernel layout
# ----------------------------------------------------------------------------
def init_lstm_params(key, input_size, hidden_size, num_layers, bidirectional):
    layers = []
    num_dir = 2 if bidirectional else 1
    bound = 1.0 / float(hidden_size) ** 0.5
    for l in range(num_layers):
        in_sz = input_size if l == 0 else hidden_size * num_dir
        layer = {}
        for name in (["fwd", "bwd"][:num_dir]):
            key, k1, k2, k3, k4 = jax.random.split(key, 5)
            layer[name] = (
                jax.random.uniform(k1, (4 * hidden_size, in_sz),
                                   jnp.float32, -bound, bound),
                jax.random.uniform(k2, (4 * hidden_size, hidden_size),
                                   jnp.float32, -bound, bound),
                jax.random.uniform(k3, (4 * hidden_size,),
                                   jnp.float32, -bound, bound),
                jax.random.uniform(k4, (4 * hidden_size,),
                                   jnp.float32, -bound, bound),
            )
        layers.append(layer)
    return key, layers


def prep_lstm_params(layers):
    """PyTorch layout -> kernel layout: (D, I, 4H), (D, H, 4H), (D, 1, 4H)."""
    prepped = []
    for layer in layers:
        dirs = ["fwd"] + (["bwd"] if "bwd" in layer else [])
        wih_t = jnp.stack([layer[d][0].T for d in dirs])
        whh_t = jnp.stack([layer[d][1].T for d in dirs])
        bias = jnp.stack([(layer[d][2] + layer[d][3])[None, :] for d in dirs])
        prepped.append((wih_t, whh_t, bias))
    return prepped


# ----------------------------------------------------------------------------
# Full forward (matches PoS_Biaffine_Model.forward up to its last statement)
# ----------------------------------------------------------------------------
def pos_biaffine_forward(params, hidden_states, attention_mask, predicates,
                         pos_tags):
    del attention_mask  # consumed only by the (untranslatable) BERT encoder
    bert_sum = sum_last4(hidden_states)                 # (B,S,Hb); dropout=id
    # boundary transposes to time-major; everything between layers stays
    # time-major / direction-major (no per-layer transposes/concats/reversals)
    bert_tm = jnp.transpose(bert_sum, (1, 0, 2))        # (S,B,Hb)
    pred_tm = jnp.transpose(predicates, (1, 0, 2))      # (S,B,1)
    ohe_tm = jax.nn.one_hot(pos_tags.T, 18, dtype=jnp.float32)  # (S,B,18)

    pos_rnn = prep_lstm_params(params["pos_rnn"])
    rnn1 = prep_lstm_params(params["rnn1"])
    rnn2 = prep_lstm_params(params["rnn2"])

    pos_out = run_lstm(pos_rnn, [(ohe_tm, None)])       # (D,S,B,Hp)
    # rnn_in = cat(predicates, bert_sum, pos_fwd, pos_bwd): the concat is
    # folded into the input-projection kernel via split W_ih chunks.
    feats1 = ([(pred_tm, None), (bert_tm, None)]
              + [(pos_out, j) for j in range(pos_out.shape[0])])
    out1 = run_lstm(rnn1, feats1)                       # (D,S,B,Hr)
    out2 = run_lstm(rnn2, [(out1, j) for j in range(out1.shape[0])])
    # back to PyTorch batch-first bidirectional layout: (B, S, [fwd H | bwd H])
    D, S, B, H = out2.shape
    return jnp.transpose(out2, (2, 1, 0, 3)).reshape(B, S, D * H)


# ----------------------------------------------------------------------------
# Pure-JAX reference (lax.scan LSTM) for correctness checking
# ----------------------------------------------------------------------------
def _ref_lstm_dir(x_tm, w_ih, w_hh, b_ih, b_hh):
    S, B, _ = x_tm.shape
    H = w_hh.shape[1]

    def step(carry, x_t):
        h, c = carry
        gates = x_t @ w_ih.T + h @ w_hh.T + b_ih + b_hh
        i, f, g, o = jnp.split(gates, 4, axis=-1)
        c = jax.nn.sigmoid(f) * c + jax.nn.sigmoid(i) * jnp.tanh(g)
        h = jax.nn.sigmoid(o) * jnp.tanh(c)
        return (h, c), h

    init = (jnp.zeros((B, H), jnp.float32), jnp.zeros((B, H), jnp.float32))
    _, out = lax.scan(step, init, x_tm)
    return out


def _ref_lstm(x_bf, layers):
    x_tm = jnp.transpose(x_bf, (1, 0, 2))
    for layer in layers:
        out_f = _ref_lstm_dir(x_tm, *layer["fwd"])
        out_b = _ref_lstm_dir(x_tm[::-1], *layer["bwd"])[::-1]
        x_tm = jnp.concatenate([out_f, out_b], axis=-1)
    return jnp.transpose(x_tm, (1, 0, 2))


def ref_forward(params, hidden_states, predicates, pos_tags):
    bert_sum = jnp.sum(hidden_states[-4:], axis=0)
    ohe_pos = jax.nn.one_hot(pos_tags, 18, dtype=jnp.float32)
    out_pos = _ref_lstm(ohe_pos, params["pos_rnn"])
    concat = jnp.concatenate([bert_sum, out_pos], axis=2)
    rnn_in = jnp.concatenate([predicates, concat], axis=2)
    rnn_out1 = _ref_lstm(rnn_in, params["rnn1"])
    return _ref_lstm(rnn_out1, params["rnn2"])


# ----------------------------------------------------------------------------
if __name__ == "__main__":
    key = jax.random.PRNGKey(0)

    B, S = 2, 8
    bert_hidden = 32
    pos_rnn_size, pos_num_rnn = 8, 1
    rnn_size, num_rnn = 16, 1
    num_labels = 5  # biaffine head unused by the reference forward()

    key, kh, kp, kt = jax.random.split(key, 4)
    hidden_states = jax.random.normal(kh, (4, B, S, bert_hidden), jnp.float32)
    attention_mask = jnp.ones((B, S), jnp.int32)
    predicates = jax.random.normal(kp, (B, S, 1), jnp.float32)
    pos_tags = jax.random.randint(kt, (B, S), 0, 18)

    params = {}
    key, params["pos_rnn"] = init_lstm_params(key, 18, pos_rnn_size,
                                              pos_num_rnn, True)
    pos_out_size = 2 * pos_rnn_size
    key, params["rnn1"] = init_lstm_params(key, bert_hidden + pos_out_size + 1,
                                           rnn_size, num_rnn, True)
    key, params["rnn2"] = init_lstm_params(key, 2 * rnn_size, rnn_size, 2, True)

    fwd = jax.jit(pos_biaffine_forward)
    out = jax.block_until_ready(
        fwd(params, hidden_states, attention_mask, predicates, pos_tags))
    assert out.shape == (B, S, 2 * rnn_size), out.shape

    ref = jax.block_until_ready(
        ref_forward(params, hidden_states, predicates, pos_tags))
    assert jnp.allclose(out, ref, atol=2e-3, rtol=2e-3), (
        float(jnp.max(jnp.abs(out - ref))))

    print("KERNEL_OK")
</pallas_src>

<mosaic_0001>
module attributes {stable_mosaic.version = 11 : i64} {
  func.func @kernel(%arg0: i32, %arg1: memref<16x18xf32, #tpu.memory_space<vmem>>, %arg2: memref<2x18x32xf32, #tpu.memory_space<vmem>>, %arg3: memref<2x1x32xf32, #tpu.memory_space<vmem>>, %arg4: memref<2x16x32xf32, #tpu.memory_space<vmem>>) attributes {dimension_semantics = [#tpu.dimension_semantics<parallel>], iteration_bounds = array<i64: 1>, scalar_prefetch = 0 : i64, scratch_operands = 0 : i64, tpu.core_type = #tpu.core_type<tc>, window_params = [{transform_indices = @transform_0, window_bounds = array<i64: 16, 18>}, {pipeline_mode = #tpu.pipeline_mode<synchronous>, transform_indices = @transform_1, window_bounds = array<i64: 2, 18, 32>}, {pipeline_mode = #tpu.pipeline_mode<synchronous>, transform_indices = @transform_2, window_bounds = array<i64: 2, 1, 32>}, {transform_indices = @transform_3, window_bounds = array<i64: 2, 16, 32>}]} {
    %c0 = arith.constant 0 : index
    %c0_0 = arith.constant 0 : index
    %0 = vector.load %arg1[%c0, %c0_0] : memref<16x18xf32, #tpu.memory_space<vmem>>, vector<16x18xf32>
    %c0_1 = arith.constant 0 : index
    %c0_2 = arith.constant 0 : index
    %c0_3 = arith.constant 0 : index
    %1 = vector.load %arg2[%c0_1, %c0_2, %c0_3] : memref<2x18x32xf32, #tpu.memory_space<vmem>>, vector<1x18x32xf32>
    %2 = vector.shape_cast %1 : vector<1x18x32xf32> to vector<18x32xf32>
    %cst = arith.constant dense<0.000000e+00> : vector<16x32xf32>
    %3 = tpu.matmul %0, %2, %cst {dimension_numbers = #tpu.dot_dimension_numbers<[1], [0], [0], [1], [0, 0, 1, 1], [], []>} : vector<16x18xf32>, vector<18x32xf32>, vector<16x32xf32> -> vector<16x32xf32>
    %c0_4 = arith.constant 0 : index
    %c0_5 = arith.constant 0 : index
    %c0_6 = arith.constant 0 : index
    %4 = vector.load %arg3[%c0_4, %c0_5, %c0_6] : memref<2x1x32xf32, #tpu.memory_space<vmem>>, vector<1x1x32xf32>
    %5 = vector.shape_cast %4 : vector<1x1x32xf32> to vector<1x32xf32>
    %6 = vector.broadcast %5 : vector<1x32xf32> to vector<16x32xf32>
    %7 = arith.addf %3, %6 : vector<16x32xf32>
    %c0_7 = arith.constant 0 : index
    %c0_8 = arith.constant 0 : index
    %c0_9 = arith.constant 0 : index
    %8 = vector.load %arg4[%c0_7, %c0_8, %c0_9] : memref<2x16x32xf32, #tpu.memory_space<vmem>>, vector<1x16x32xf32>
    %9 = vector.shape_cast %8 : vector<1x16x32xf32> to vector<16x32xf32>
    %10 = vector.shape_cast %7 : vector<16x32xf32> to vector<1x16x32xf32>
    tpu.vector_store %arg4[%c0_7, %c0_8, %c0_9], %10 {strides = array<i32>} : memref<2x16x32xf32, #tpu.memory_space<vmem>>, vector<1x16x32xf32>,
    %c0_10 = arith.constant 0 : index
    %c0_11 = arith.constant 0 : index
    %11 = vector.load %arg1[%c0_10, %c0_11] : memref<16x18xf32, #tpu.memory_space<vmem>>, vector<16x18xf32>
    %c1 = arith.constant 1 : index
    %c0_12 = arith.constant 0 : index
    %c0_13 = arith.constant 0 : index
    %12 = vector.load %arg2[%c1, %c0_12, %c0_13] : memref<2x18x32xf32, #tpu.memory_space<vmem>>, vector<1x18x32xf32>
    %13 = vector.shape_cast %12 : vector<1x18x32xf32> to vector<18x32xf32>
    %cst_14 = arith.constant dense<0.000000e+00> : vector<16x32xf32>
    %14 = tpu.matmul %11, %13, %cst_14 {dimension_numbers = #tpu.dot_dimension_numbers<[1], [0], [0], [1], [0, 0, 1, 1], [], []>} : vector<16x18xf32>, vector<18x32xf32>, vector<16x32xf32> -> vector<16x32xf32>
    %c1_15 = arith.constant 1 : index
    %c0_16 = arith.constant 0 : index
    %c0_17 = arith.constant 0 : index
    %15 = vector.load %arg3[%c1_15, %c0_16, %c0_17] : memref<2x1x32xf32, #tpu.memory_space<vmem>>, vector<1x1x32xf32>
    %16 = vector.shape_cast %15 : vector<1x1x32xf32> to vector<1x32xf32>
    %17 = vector.broadcast %16 : vector<1x32xf32> to vector<16x32xf32>
    %18 = arith.addf %14, %17 : vector<16x32xf32>
    %c1_18 = arith.constant 1 : index
    %c0_19 = arith.constant 0 : index
    %c0_20 = arith.constant 0 : index
    %19 = vector.load %arg4[%c1_18, %c0_19, %c0_20] : memref<2x16x32xf32, #tpu.memory_space<vmem>>, vector<1x16x32xf32>
    %20 = vector.shape_cast %19 : vector<1x16x32xf32> to vector<16x32xf32>
    %21 = vector.shape_cast %18 : vector<16x32xf32> to vector<1x16x32xf32>
    tpu.vector_store %arg4[%c1_18, %c0_19, %c0_20], %21 {strides = array<i32>} : memref<2x16x32xf32, #tpu.memory_space<vmem>>, vector<1x16x32xf32>,
    return
  }
  func.func @transform_0(%arg0: i32) -> (i32, i32) {
    %c0_i32 = arith.constant 0 : i32
    %c0_i32_0 = arith.constant 0 : i32
    return %arg0, %c0_i32 : i32, i32
  }
  func.func @transform_1(%arg0: i32) -> (i32, i32, i32) {
    %c0_i32 = arith.constant 0 : i32
    %c0_i32_0 = arith.constant 0 : i32
    %c0_i32_1 = arith.constant 0 : i32
    %c0_i32_2 = arith.constant 0 : i32
    return %c0_i32, %c0_i32_0, %c0_i32_1 : i32, i32, i32
  }
  func.func @transform_2(%arg0: i32) -> (i32, i32, i32) {
    %c0_i32 = arith.constant 0 : i32
    %c0_i32_0 = arith.constant 0 : i32
    %c0_i32_1 = arith.constant 0 : i32
    %c0_i32_2 = arith.constant 0 : i32
    return %c0_i32, %c0_i32_0, %c0_i32_1 : i32, i32, i32
  }
  func.func @transform_3(%arg0: i32) -> (i32, i32, i32) {
    %c0_i32 = arith.constant 0 : i32
    %c0_i32_0 = arith.constant 0 : i32
    %c0_i32_1 = arith.constant 0 : i32
    return %c0_i32, %arg0, %c0_i32_0 : i32, i32, i32
  }
}

module attributes {stable_mosaic.version = 11 : i64} {
  func.func @kernel(%arg0: i32, %arg1: i32, %arg2: memref<1x8x2x32xf32, #tpu.memory_space<vmem>>, %arg3: memref<1x8x32xf32, #tpu.memory_space<vmem>>, %arg4: memref<1x8x2x8xf32, #tpu.memory_space<vmem>>, %arg5: memref<2x8xf32, #tpu.memory_space<vmem>>, %arg6: memref<2x8xf32, #tpu.memory_space<vmem>>) attributes {dimension_semantics = [#tpu.dimension_semantics<parallel>, #tpu.dimension_semantics<arbitrary>], iteration_bounds = array<i64: 2, 1>, scalar_prefetch = 0 : i64, scratch_operands = 2 : i64, tpu.core_type = #tpu.core_type<tc>, window_params = [{transform_indices = @transform_0, window_bounds = array<i64: 1, 8, 2, 32>}, {transform_indices = @transform_1, window_bounds = array<i64: 1, 8, 32>}, {transform_indices = @transform_2, window_bounds = array<i64: 1, 8, 2, 8>}]} {
    %c0_i32 = arith.constant 0 : i32
    %0 = arith.cmpi eq, %arg1, %c0_i32 : i32
    %1 = arith.extui %0 : i1 to i32
    %c0_i32_0 = arith.constant 0 : i32
    %2 = arith.cmpi ne, %1, %c0_i32_0 : i32
    scf.if %2 {
      %cst_163 = arith.constant 0.000000e+00 : f32
      %349 = vector.broadcast %cst_163 : f32 to vector<2x8xf32>
      %c0_164 = arith.constant 0 : index
      %c0_165 = arith.constant 0 : index
      %350 = vector.load %arg5[%c0_164, %c0_165] : memref<2x8xf32, #tpu.memory_space<vmem>>, vector<2x8xf32>
      tpu.vector_store %arg5[%c0_164, %c0_165], %349 {strides = array<i32>} : memref<2x8xf32, #tpu.memory_space<vmem>>, vector<2x8xf32>,
      %cst_166 = arith.constant 0.000000e+00 : f32
      %351 = vector.broadcast %cst_166 : f32 to vector<2x8xf32>
      %c0_167 = arith.constant 0 : index
      %c0_168 = arith.constant 0 : index
      %352 = vector.load %arg6[%c0_167, %c0_168] : memref<2x8xf32, #tpu.memory_space<vmem>>, vector<2x8xf32>
      tpu.vector_store %arg6[%c0_167, %c0_168], %351 {strides = array<i32>} : memref<2x8xf32, #tpu.memory_space<vmem>>, vector<2x8xf32>,
    } else {
    }
    %c0 = arith.constant 0 : index
    %c0_1 = arith.constant 0 : index
    %c0_2 = arith.constant 0 : index
    %3 = vector.load %arg3[%c0, %c0_1, %c0_2] : memref<1x8x32xf32, #tpu.memory_space<vmem>>, vector<1x8x32xf32>
    %4 = vector.shape_cast %3 : vector<1x8x32xf32> to vector<8x32xf32>
    %c0_i32_3 = arith.constant 0 : i32
    %c1_i32 = arith.constant 1 : i32
    %5 = arith.subi %c1_i32, %arg0 : i32
    %6 = arith.muli %5, %c0_i32_3 : i32
    %c7_i32 = arith.constant 7 : i32
    %7 = arith.subi %c7_i32, %c0_i32_3 : i32
    %8 = arith.muli %arg0, %7 : i32
    %9 = arith.addi %6, %8 : i32
    %c0_4 = arith.constant 0 : index
    %10 = arith.index_cast %9 : i32 to index
    %c0_5 = arith.constant 0 : index
    %c0_6 = arith.constant 0 : index
    %11 = vector.load %arg2[%c0_4, %10, %c0_5, %c0_6] : memref<1x8x2x32xf32, #tpu.memory_space<vmem>>, vector<1x1x2x32xf32>
    %12 = vector.shape_cast %11 : vector<1x1x2x32xf32> to vector<2x32xf32>
    %c0_7 = arith.constant 0 : index
    %c0_8 = arith.constant 0 : index
    %13 = vector.load %arg5[%c0_7, %c0_8] : memref<2x8xf32, #tpu.memory_space<vmem>>, vector<2x8xf32>
    %cst = arith.constant dense<0.000000e+00> : vector<2x32xf32>
    %14 = tpu.matmul %13, %4, %cst {dimension_numbers = #tpu.dot_dimension_numbers<[1], [0], [0], [1], [0, 0, 1, 1], [], []>} : vector<2x8xf32>, vector<8x32xf32>, vector<2x32xf32> -> vector<2x32xf32>
    %15 = arith.addf %12, %14 : vector<2x32xf32>
    %16 = vector.extract_strided_slice %15 {offsets = [0, 0], sizes = [2, 8], strides = [1, 1]} : vector<2x32xf32> to vector<2x8xf32>
    %17 = arith.negf %16 : vector<2x8xf32>
    %18 = math.exp %17 : vector<2x8xf32>
    %cst_9 = arith.constant 1.000000e+00 : f32
    %19 = vector.broadcast %cst_9 : f32 to vector<2x8xf32>
    %20 = arith.addf %19, %18 : vector<2x8xf32>
    %21 = arith.divf %19, %20 : vector<2x8xf32>
    %22 = vector.extract_strided_slice %15 {offsets = [0, 8], sizes = [2, 8], strides = [1, 1]} : vector<2x32xf32> to vector<2x8xf32>
    %23 = arith.negf %22 : vector<2x8xf32>
    %24 = math.exp %23 : vector<2x8xf32>
    %cst_10 = arith.constant 1.000000e+00 : f32
    %25 = vector.broadcast %cst_10 : f32 to vector<2x8xf32>
    %26 = arith.addf %25, %24 : vector<2x8xf32>
    %27 = arith.divf %25, %26 : vector<2x8xf32>
    %28 = vector.extract_strided_slice %15 {offsets = [0, 16], sizes = [2, 8], strides = [1, 1]} : vector<2x32xf32> to vector<2x8xf32>
    %29 = math.tanh %28 : vector<2x8xf32>
    %30 = vector.extract_strided_slice %15 {offsets = [0, 24], sizes = [2, 8], strides = [1, 1]} : vector<2x32xf32> to vector<2x8xf32>
    %31 = arith.negf %30 : vector<2x8xf32>
    %32 = math.exp %31 : vector<2x8xf32>
    %cst_11 = arith.constant 1.000000e+00 : f32
    %33 = vector.broadcast %cst_11 : f32 to vector<2x8xf32>
    %34 = arith.addf %33, %32 : vector<2x8xf32>
    %35 = arith.divf %33, %34 : vector<2x8xf32>
    %c0_12 = arith.constant 0 : index
    %c0_13 = arith.constant 0 : index
    %36 = vector.load %arg6[%c0_12, %c0_13] : memref<2x8xf32, #tpu.memory_space<vmem>>, vector<2x8xf32>
    %37 = arith.mulf %27, %36 : vector<2x8xf32>
    %38 = arith.mulf %21, %29 : vector<2x8xf32>
    %39 = arith.addf %37, %38 : vector<2x8xf32>
    %40 = math.tanh %39 : vector<2x8xf32>
    %41 = arith.mulf %35, %40 : vector<2x8xf32>
    %c0_14 = arith.constant 0 : index
    %c0_15 = arith.constant 0 : index
    %42 = vector.load %arg6[%c0_14, %c0_15] : memref<2x8xf32, #tpu.memory_space<vmem>>, vector<2x8xf32>
    tpu.vector_store %arg6[%c0_14, %c0_15], %39 {strides = array<i32>} : memref<2x8xf32, #tpu.memory_space<vmem>>, vector<2x8xf32>,
    %c0_16 = arith.constant 0 : index
    %c0_17 = arith.constant 0 : index
    %43 = vector.load %arg5[%c0_16, %c0_17] : memref<2x8xf32, #tpu.memory_space<vmem>>, vector<2x8xf32>
    tpu.vector_store %arg5[%c0_16, %c0_17], %41 {strides = array<i32>} : memref<2x8xf32, #tpu.memory_space<vmem>>, vector<2x8xf32>,
    %c0_18 = arith.constant 0 : index
    %44 = arith.index_cast %9 : i32 to index
    %c0_19 = arith.constant 0 : index
    %c0_20 = arith.constant 0 : index
    %45 = vector.load %arg4[%c0_18, %44, %c0_19, %c0_20] : memref<1x8x2x8xf32, #tpu.memory_space<vmem>>, vector<1x1x2x8xf32>
    %46 = vector.shape_cast %45 : vector<1x1x2x8xf32> to vector<2x8xf32>
    %47 = vector.shape_cast %41 : vector<2x8xf32> to vector<1x1x2x8xf32>
    tpu.vector_store %arg4[%c0_18, %44, %c0_19, %c0_20], %47 {strides = array<i32>} : memref<1x8x2x8xf32, #tpu.memory_space<vmem>>, vector<1x1x2x8xf32>,
    %c1_i32_21 = arith.constant 1 : i32
    %c1_i32_22 = arith.constant 1 : i32
    %48 = arith.subi %c1_i32_22, %arg0 : i32
    %49 = arith.muli %48, %c1_i32_21 : i32
    %c7_i32_23 = arith.constant 7 : i32
    %50 = arith.subi %c7_i32_23, %c1_i32_21 : i32
    %51 = arith.muli %arg0, %50 : i32
    %52 = arith.addi %49, %51 : i32
    %c0_24 = arith.constant 0 : index
    %53 = arith.index_cast %52 : i32 to index
    %c0_25 = arith.constant 0 : index
    %c0_26 = arith.constant 0 : index
    %54 = vector.load %arg2[%c0_24, %53, %c0_25, %c0_26] : memref<1x8x2x32xf32, #tpu.memory_space<vmem>>, vector<1x1x2x32xf32>
    %55 = vector.shape_cast %54 : vector<1x1x2x32xf32> to vector<2x32xf32>
    %c0_27 = arith.constant 0 : index
    %c0_28 = arith.constant 0 : index
    %56 = vector.load %arg5[%c0_27, %c0_28] : memref<2x8xf32, #tpu.memory_space<vmem>>, vector<2x8xf32>
    %cst_29 = arith.constant dense<0.000000e+00> : vector<2x32xf32>
    %57 = tpu.matmul %56, %4, %cst_29 {dimension_numbers = #tpu.dot_dimension_numbers<[1], [0], [0], [1], [0, 0, 1, 1], [], []>} : vector<2x8xf32>, vector<8x32xf32>, vector<2x32xf32> -> vector<2x32xf32>
    %58 = arith.addf %55, %57 : vector<2x32xf32>
    %59 = vector.extract_strided_slice %58 {offsets = [0, 0], sizes = [2, 8], strides = [1, 1]} : vector<2x32xf32> to vector<2x8xf32>
    %60 = arith.negf %59 : vector<2x8xf32>
    %61 = math.exp %60 : vector<2x8xf32>
    %cst_30 = arith.constant 1.000000e+00 : f32
    %62 = vector.broadcast %cst_30 : f32 to vector<2x8xf32>
    %63 = arith.addf %62, %61 : vector<2x8xf32>
    %64 = arith.divf %62, %63 : vector<2x8xf32>
    %65 = vector.extract_strided_slice %58 {offsets = [0, 8], sizes = [2, 8], strides = [1, 1]} : vector<2x32xf32> to vector<2x8xf32>
    %66 = arith.negf %65 : vector<2x8xf32>
    %67 = math.exp %66 : vector<2x8xf32>
    %cst_31 = arith.constant 1.000000e+00 : f32
    %68 = vector.broadcast %cst_31 : f32 to vector<2x8xf32>
    %69 = arith.addf %68, %67 : vector<2x8xf32>
    %70 = arith.divf %68, %69 : vector<2x8xf32>
    %71 = vector.extract_strided_slice %58 {offsets = [0, 16], sizes = [2, 8], strides = [1, 1]} : vector<2x32xf32> to vector<2x8xf32>
    %72 = math.tanh %71 : vector<2x8xf32>
    %73 = vector.extract_strided_slice %58 {offsets = [0, 24], sizes = [2, 8], strides = [1, 1]} : vector<2x32xf32> to vector<2x8xf32>
    %74 = arith.negf %73 : vector<2x8xf32>
    %75 = math.exp %74 : vector<2x8xf32>
    %cst_32 = arith.constant 1.000000e+00 : f32
    %76 = vector.broadcast %cst_32 : f32 to vector<2x8xf32>
    %77 = arith.addf %76, %75 : vector<2x8xf32>
    %78 = arith.divf %76, %77 : vector<2x8xf32>
    %c0_33 = arith.constant 0 : index
    %c0_34 = arith.constant 0 : index
    %79 = vector.load %arg6[%c0_33, %c0_34] : memref<2x8xf32, #tpu.memory_space<vmem>>, vector<2x8xf32>
    %80 = arith.mulf %70, %79 : vector<2x8xf32>
    %81 = arith.mulf %64, %72 : vector<2x8xf32>
    %82 = arith.addf %80, %81 : vector<2x8xf32>
    %83 = math.tanh %82 : vector<2x8xf32>
    %84 = arith.mulf %78, %83 : vector<2x8xf32>
    %c0_35 = arith.constant 0 : index
    %c0_36 = arith.constant 0 : index
    %85 = vector.load %arg6[%c0_35, %c0_36] : memref<2x8xf32, #tpu.memory_space<vmem>>, vector<2x8xf32>
    tpu.vector_store %arg6[%c0_35, %c0_36], %82 {strides = array<i32>} : memref<2x8xf32, #tpu.memory_space<vmem>>, vector<2x8xf32>,
    %c0_37 = arith.constant 0 : index
    %c0_38 = arith.constant 0 : index
    %86 = vector.load %arg5[%c0_37, %c0_38] : memref<2x8xf32, #tpu.memory_space<vmem>>, vector<2x8xf32>
    tpu.vector_store %arg5[%c0_37, %c0_38], %84 {strides = array<i32>} : memref<2x8xf32, #tpu.memory_space<vmem>>, vector<2x8xf32>,
    %c0_39 = arith.constant 0 : index
    %87 = arith.index_cast %52 : i32 to index
    %c0_40 = arith.constant 0 : index
    %c0_41 = arith.constant 0 : index
    %88 = vector.load %arg4[%c0_39, %87, %c0_40, %c0_41] : memref<1x8x2x8xf32, #tpu.memory_space<vmem>>, vector<1x1x2x8xf32>
    %89 = vector.shape_cast %88 : vector<1x1x2x8xf32> to vector<2x8xf32>
    %90 = vector.shape_cast %84 : vector<2x8xf32> to vector<1x1x2x8xf32>
    tpu.vector_store %arg4[%c0_39, %87, %c0_40, %c0_41], %90 {strides = array<i32>} : memref<1x8x2x8xf32, #tpu.memory_space<vmem>>, vector<1x1x2x8xf32>,
    %c2_i32 = arith.constant 2 : i32
    %c1_i32_42 = arith.constant 1 : i32
    %91 = arith.subi %c1_i32_42, %arg0 : i32
    %92 = arith.muli %91, %c2_i32 : i32
    %c7_i32_43 = arith.constant 7 : i32
    %93 = arith.subi %c7_i32_43, %c2_i32 : i32
    %94 = arith.muli %arg0, %93 : i32
    %95 = arith.addi %92, %94 : i32
    %c0_44 = arith.constant 0 : index
    %96 = arith.index_cast %95 : i32 to index
    %c0_45 = arith.constant 0 : index
    %c0_46 = arith.constant 0 : index
    %97 = vector.load %arg2[%c0_44, %96, %c0_45, %c0_46] : memref<1x8x2x32xf32, #tpu.memory_space<vmem>>, vector<1x1x2x32xf32>
    %98 = vector.shape_cast %97 : vector<1x1x2x32xf32> to vector<2x32xf32>
    %c0_47 = arith.constant 0 : index
    %c0_48 = arith.constant 0 : index
    %99 = vector.load %arg5[%c0_47, %c0_48] : memref<2x8xf32, #tpu.memory_space<vmem>>, vector<2x8xf32>
    %cst_49 = arith.constant dense<0.000000e+00> : vector<2x32xf32>
    %100 = tpu.matmul %99, %4, %cst_49 {dimension_numbers = #tpu.dot_dimension_numbers<[1], [0], [0], [1], [0, 0, 1, 1], [], []>} : vector<2x8xf32>, vector<8x32xf32>, vector<2x32xf32> -> vector<2x32xf32>
    %101 = arith.addf %98, %100 : vector<2x32xf32>
    %102 = vector.extract_strided_slice %101 {offsets = [0, 0], sizes = [2, 8], strides = [1, 1]} : vector<2x32xf32> to vector<2x8xf32>
    %103 = arith.negf %102 : vector<2x8xf32>
    %104 = math.exp %103 : vector<2x8xf32>
    %cst_50 = arith.constant 1.000000e+00 : f32
    %105 = vector.broadcast %cst_50 : f32 to vector<2x8xf32>
    %106 = arith.addf %105, %104 : vector<2x8xf32>
    %107 = arith.divf %105, %106 : vector<2x8xf32>
    %108 = vector.extract_strided_slice %101 {offsets = [0, 8], sizes = [2, 8], strides = [1, 1]} : vector<2x32xf32> to vector<2x8xf32>
    %109 = arith.negf %108 : vector<2x8xf32>
    %110 = math.exp %109 : vector<2x8xf32>
    %cst_51 = arith.constant 1.000000e+00 : f32
    %111 = vector.broadcast %cst_51 : f32 to vector<2x8xf32>
    %112 = arith.addf %111, %110 : vector<2x8xf32>
    %113 = arith.divf %111, %112 : vector<2x8xf32>
    %114 = vector.extract_strided_slice %101 {offsets = [0, 16], sizes = [2, 8], strides = [1, 1]} : vector<2x32xf32> to vector<2x8xf32>
    %115 = math.tanh %114 : vector<2x8xf32>
    %116 = vector.extract_strided_slice %101 {offsets = [0, 24], sizes = [2, 8], strides = [1, 1]} : vector<2x32xf32> to vector<2x8xf32>
    %117 = arith.negf %116 : vector<2x8xf32>
    %118 = math.exp %117 : vector<2x8xf32>
    %cst_52 = arith.constant 1.000000e+00 : f32
    %119 = vector.broadcast %cst_52 : f32 to vector<2x8xf32>
    %120 = arith.addf %119, %118 : vector<2x8xf32>
    %121 = arith.divf %119, %120 : vector<2x8xf32>
    %c0_53 = arith.constant 0 : index
    %c0_54 = arith.constant 0 : index
    %122 = vector.load %arg6[%c0_53, %c0_54] : memref<2x8xf32, #tpu.memory_space<vmem>>, vector<2x8xf32>
    %123 = arith.mulf %113, %122 : vector<2x8xf32>
    %124 = arith.mulf %107, %115 : vector<2x8xf32>
    %125 = arith.addf %123, %124 : vector<2x8xf32>
    %126 = math.tanh %125 : vector<2x8xf32>
    %127 = arith.mulf %121, %126 : vector<2x8xf32>
    %c0_55 = arith.constant 0 : index
    %c0_56 = arith.constant 0 : index
    %128 = vector.load %arg6[%c0_55, %c0_56] : memref<2x8xf32, #tpu.memory_space<vmem>>, vector<2x8xf32>
    tpu.vector_store %arg6[%c0_55, %c0_56], %125 {strides = array<i32>} : memref<2x8xf32, #tpu.memory_space<vmem>>, vector<2x8xf32>,
    %c0_57 = arith.constant 0 : index
    %c0_58 = arith.constant 0 : index
    %129 = vector.load %arg5[%c0_57, %c0_58] : memref<2x8xf32, #tpu.memory_space<vmem>>, vector<2x8xf32>
    tpu.vector_store %arg5[%c0_57, %c0_58], %127 {strides = array<i32>} : memref<2x8xf32, #tpu.memory_space<vmem>>, vector<2x8xf32>,
    %c0_59 = arith.constant 0 : index
    %130 = arith.index_cast %95 : i32 to index
    %c0_60 = arith.constant 0 : index
    %c0_61 = arith.constant 0 : index
    %131 = vector.load %arg4[%c0_59, %130, %c0_60, %c0_61] : memref<1x8x2x8xf32, #tpu.memory_space<vmem>>, vector<1x1x2x8xf32>
    %132 = vector.shape_cast %131 : vector<1x1x2x8xf32> to vector<2x8xf32>
    %133 = vector.shape_cast %127 : vector<2x8xf32> to vector<1x1x2x8xf32>
    tpu.vector_store %arg4[%c0_59, %130, %c0_60, %c0_61], %133 {strides = array<i32>} : memref<1x8x2x8xf32, #tpu.memory_space<vmem>>, vector<1x1x2x8xf32>,
    %c3_i32 = arith.constant 3 : i32
    %c1_i32_62 = arith.constant 1 : i32
    %134 = arith.subi %c1_i32_62, %arg0 : i32
    %135 = arith.muli %134, %c3_i32 : i32
    %c7_i32_63 = arith.constant 7 : i32
    %136 = arith.subi %c7_i32_63, %c3_i32 : i32
    %137 = arith.muli %arg0, %136 : i32
    %138 = arith.addi %135, %137 : i32
    %c0_64 = arith.constant 0 : index
    %139 = arith.index_cast %138 : i32 to index
    %c0_65 = arith.constant 0 : index
    %c0_66 = arith.constant 0 : index
    %140 = vector.load %arg2[%c0_64, %139, %c0_65, %c0_66] : memref<1x8x2x32xf32, #tpu.memory_space<vmem>>, vector<1x1x2x32xf32>
    %141 = vector.shape_cast %140 : vector<1x1x2x32xf32> to vector<2x32xf32>
    %c0_67 = arith.constant 0 : index
    %c0_68 = arith.constant 0 : index
    %142 = vector.load %arg5[%c0_67, %c0_68] : memref<2x8xf32, #tpu.memory_space<vmem>>, vector<2x8xf32>
    %cst_69 = arith.constant dense<0.000000e+00> : vector<2x32xf32>
    %143 = tpu.matmul %142, %4, %cst_69 {dimension_numbers = #tpu.dot_dimension_numbers<[1], [0], [0], [1], [0, 0, 1, 1], [], []>} : vector<2x8xf32>, vector<8x32xf32>, vector<2x32xf32> -> vector<2x32xf32>
    %144 = arith.addf %141, %143 : vector<2x32xf32>
    %145 = vector.extract_strided_slice %144 {offsets = [0, 0], sizes = [2, 8], strides = [1, 1]} : vector<2x32xf32> to vector<2x8xf32>
    %146 = arith.negf %145 : vector<2x8xf32>
    %147 = math.exp %146 : vector<2x8xf32>
    %cst_70 = arith.constant 1.000000e+00 : f32
    %148 = vector.broadcast %cst_70 : f32 to vector<2x8xf32>
    %149 = arith.addf %148, %147 : vector<2x8xf32>
    %150 = arith.divf %148, %149 : vector<2x8xf32>
    %151 = vector.extract_strided_slice %144 {offsets = [0, 8], sizes = [2, 8], strides = [1, 1]} : vector<2x32xf32> to vector<2x8xf32>
    %152 = arith.negf %151 : vector<2x8xf32>
    %153 = math.exp %152 : vector<2x8xf32>
    %cst_71 = arith.constant 1.000000e+00 : f32
    %154 = vector.broadcast %cst_71 : f32 to vector<2x8xf32>
    %155 = arith.addf %154, %153 : vector<2x8xf32>
    %156 = arith.divf %154, %155 : vector<2x8xf32>
    %157 = vector.extract_strided_slice %144 {offsets = [0, 16], sizes = [2, 8], strides = [1, 1]} : vector<2x32xf32> to vector<2x8xf32>
    %158 = math.tanh %157 : vector<2x8xf32>
    %159 = vector.extract_strided_slice %144 {offsets = [0, 24], sizes = [2, 8], strides = [1, 1]} : vector<2x32xf32> to vector<2x8xf32>
    %160 = arith.negf %159 : vector<2x8xf32>
    %161 = math.exp %160 : vector<2x8xf32>
    %cst_72 = arith.constant 1.000000e+00 : f32
    %162 = vector.broadcast %cst_72 : f32 to vector<2x8xf32>
    %163 = arith.addf %162, %161 : vector<2x8xf32>
    %164 = arith.divf %162, %163 : vector<2x8xf32>
    %c0_73 = arith.constant 0 : index
    %c0_74 = arith.constant 0 : index
    %165 = vector.load %arg6[%c0_73, %c0_74] : memref<2x8xf32, #tpu.memory_space<vmem>>, vector<2x8xf32>
    %166 = arith.mulf %156, %165 : vector<2x8xf32>
    %167 = arith.mulf %150, %158 : vector<2x8xf32>
    %168 = arith.addf %166, %167 : vector<2x8xf32>
    %169 = math.tanh %168 : vector<2x8xf32>
    %170 = arith.mulf %164, %169 : vector<2x8xf32>
    %c0_75 = arith.constant 0 : index
    %c0_76 = arith.constant 0 : index
    %171 = vector.load %arg6[%c0_75, %c0_76] : memref<2x8xf32, #tpu.memory_space<vmem>>, vector<2x8xf32>
    tpu.vector_store %arg6[%c0_75, %c0_76], %168 {strides = array<i32>} : memref<2x8xf32, #tpu.memory_space<vmem>>, vector<2x8xf32>,
    %c0_77 = arith.constant 0 : index
    %c0_78 = arith.constant 0 : index
    %172 = vector.load %arg5[%c0_77, %c0_78] : memref<2x8xf32, #tpu.memory_space<vmem>>, vector<2x8xf32>
    tpu.vector_store %arg5[%c0_77, %c0_78], %170 {strides = array<i32>} : memref<2x8xf32, #tpu.memory_space<vmem>>, vector<2x8xf32>,
    %c0_79 = arith.constant 0 : index
    %173 = arith.index_cast %138 : i32 to index
    %c0_80 = arith.constant 0 : index
    %c0_81 = arith.constant 0 : index
    %174 = vector.load %arg4[%c0_79, %173, %c0_80, %c0_81] : memref<1x8x2x8xf32, #tpu.memory_space<vmem>>, vector<1x1x2x8xf32>
    %175 = vector.shape_cast %174 : vector<1x1x2x8xf32> to vector<2x8xf32>
    %176 = vector.shape_cast %170 : vector<2x8xf32> to vector<1x1x2x8xf32>
    tpu.vector_store %arg4[%c0_79, %173, %c0_80, %c0_81], %176 {strides = array<i32>} : memref<1x8x2x8xf32, #tpu.memory_space<vmem>>, vector<1x1x2x8xf32>,
    %c4_i32 = arith.constant 4 : i32
    %c1_i32_82 = arith.constant 1 : i32
    %177 = arith.subi %c1_i32_82, %arg0 : i32
    %178 = arith.muli %177, %c4_i32 : i32
    %c7_i32_83 = arith.constant 7 : i32
    %179 = arith.subi %c7_i32_83, %c4_i32 : i32
    %180 = arith.muli %arg0, %179 : i32
    %181 = arith.addi %178, %180 : i32
    %c0_84 = arith.constant 0 : index
    %182 = arith.index_cast %181 : i32 to index
    %c0_85 = arith.constant 0 : index
    %c0_86 = arith.constant 0 : index
    %183 = vector.load %arg2[%c0_84, %182, %c0_85, %c0_86] : memref<1x8x2x32xf32, #tpu.memory_space<vmem>>, vector<1x1x2x32xf32>
    %184 = vector.shape_cast %183 : vector<1x1x2x32xf32> to vector<2x32xf32>
    %c0_87 = arith.constant 0 : index
    %c0_88 = arith.constant 0 : index
    %185 = vector.load %arg5[%c0_87, %c0_88] : memref<2x8xf32, #tpu.memory_space<vmem>>, vector<2x8xf32>
    %cst_89 = arith.constant dense<0.000000e+00> : vector<2x32xf32>
    %186 = tpu.matmul %185, %4, %cst_89 {dimension_numbers = #tpu.dot_dimension_numbers<[1], [0], [0], [1], [0, 0, 1, 1], [], []>} : vector<2x8xf32>, vector<8x32xf32>, vector<2x32xf32> -> vector<2x32xf32>
    %187 = arith.addf %184, %186 : vector<2x32xf32>
    %188 = vector.extract_strided_slice %187 {offsets = [0, 0], sizes = [2, 8], strides = [1, 1]} : vector<2x32xf32> to vector<2x8xf32>
    %189 = arith.negf %188 : vector<2x8xf32>
    %190 = math.exp %189 : vector<2x8xf32>
    %cst_90 = arith.constant 1.000000e+00 : f32
    %191 = vector.broadcast %cst_90 : f32 to vector<2x8xf32>
    %192 = arith.addf %191, %190 : vector<2x8xf32>
    %193 = arith.divf %191, %192 : vector<2x8xf32>
    %194 = vector.extract_strided_slice %187 {offsets = [0, 8], sizes = [2, 8], strides = [1, 1]} : vector<2x32xf32> to vector<2x8xf32>
    %195 = arith.negf %194 : vector<2x8xf32>
    %196 = math.exp %195 : vector<2x8xf32>
    %cst_91 = arith.constant 1.000000e+00 : f32
    %197 = vector.broadcast %cst_91 : f32 to vector<2x8xf32>
    %198 = arith.addf %197, %196 : vector<2x8xf32>
    %199 = arith.divf %197, %198 : vector<2x8xf32>
    %200 = vector.extract_strided_slice %187 {offsets = [0, 16], sizes = [2, 8], strides = [1, 1]} : vector<2x32xf32> to vector<2x8xf32>
    %201 = math.tanh %200 : vector<2x8xf32>
    %202 = vector.extract_strided_slice %187 {offsets = [0, 24], sizes = [2, 8], strides = [1, 1]} : vector<2x32xf32> to vector<2x8xf32>
    %203 = arith.negf %202 : vector<2x8xf32>
    %204 = math.exp %203 : vector<2x8xf32>
    %cst_92 = arith.constant 1.000000e+00 : f32
    %205 = vector.broadcast %cst_92 : f32 to vector<2x8xf32>
    %206 = arith.addf %205, %204 : vector<2x8xf32>
    %207 = arith.divf %205, %206 : vector<2x8xf32>
    %c0_93 = arith.constant 0 : index
    %c0_94 = arith.constant 0 : index
    %208 = vector.load %arg6[%c0_93, %c0_94] : memref<2x8xf32, #tpu.memory_space<vmem>>, vector<2x8xf32>
    %209 = arith.mulf %199, %208 : vector<2x8xf32>
    %210 = arith.mulf %193, %201 : vector<2x8xf32>
    %211 = arith.addf %209, %210 : vector<2x8xf32>
    %212 = math.tanh %211 : vector<2x8xf32>
    %213 = arith.mulf %207, %212 : vector<2x8xf32>
    %c0_95 = arith.constant 0 : index
    %c0_96 = arith.constant 0 : index
    %214 = vector.load %arg6[%c0_95, %c0_96] : memref<2x8xf32, #tpu.memory_space<vmem>>, vector<2x8xf32>
    tpu.vector_store %arg6[%c0_95, %c0_96], %211 {strides = array<i32>} : memref<2x8xf32, #tpu.memory_space<vmem>>, vector<2x8xf32>,
    %c0_97 = arith.constant 0 : index
    %c0_98 = arith.constant 0 : index
    %215 = vector.load %arg5[%c0_97, %c0_98] : memref<2x8xf32, #tpu.memory_space<vmem>>, vector<2x8xf32>
    tpu.vector_store %arg5[%c0_97, %c0_98], %213 {strides = array<i32>} : memref<2x8xf32, #tpu.memory_space<vmem>>, vector<2x8xf32>,
    %c0_99 = arith.constant 0 : index
    %216 = arith.index_cast %181 : i32 to index
    %c0_100 = arith.constant 0 : index
    %c0_101 = arith.constant 0 : index
    %217 = vector.load %arg4[%c0_99, %216, %c0_100, %c0_101] : memref<1x8x2x8xf32, #tpu.memory_space<vmem>>, vector<1x1x2x8xf32>
    %218 = vector.shape_cast %217 : vector<1x1x2x8xf32> to vector<2x8xf32>
    %219 = vector.shape_cast %213 : vector<2x8xf32> to vector<1x1x2x8xf32>
    tpu.vector_store %arg4[%c0_99, %216, %c0_100, %c0_101], %219 {strides = array<i32>} : memref<1x8x2x8xf32, #tpu.memory_space<vmem>>, vector<1x1x2x8xf32>,
    %c5_i32 = arith.constant 5 : i32
    %c1_i32_102 = arith.constant 1 : i32
    %220 = arith.subi %c1_i32_102, %arg0 : i32
    %221 = arith.muli %220, %c5_i32 : i32
    %c7_i32_103 = arith.constant 7 : i32
    %222 = arith.subi %c7_i32_103, %c5_i32 : i32
    %223 = arith.muli %arg0, %222 : i32
    %224 = arith.addi %221, %223 : i32
    %c0_104 = arith.constant 0 : index
    %225 = arith.index_cast %224 : i32 to index
    %c0_105 = arith.constant 0 : index
    %c0_106 = arith.constant 0 : index
    %226 = vector.load %arg2[%c0_104, %225, %c0_105, %c0_106] : memref<1x8x2x32xf32, #tpu.memory_space<vmem>>, vector<1x1x2x32xf32>
    %227 = vector.shape_cast %226 : vector<1x1x2x32xf32> to vector<2x32xf32>
    %c0_107 = arith.constant 0 : index
    %c0_108 = arith.constant 0 : index
    %228 = vector.load %arg5[%c0_107, %c0_108] : memref<2x8xf32, #tpu.memory_space<vmem>>, vector<2x8xf32>
    %cst_109 = arith.constant dense<0.000000e+00> : vector<2x32xf32>
    %229 = tpu.matmul %228, %4, %cst_109 {dimension_numbers = #tpu.dot_dimension_numbers<[1], [0], [0], [1], [0, 0, 1, 1], [], []>} : vector<2x8xf32>, vector<8x32xf32>, vector<2x32xf32> -> vector<2x32xf32>
    %230 = arith.addf %227, %229 : vector<2x32xf32>
    %231 = vector.extract_strided_slice %230 {offsets = [0, 0], sizes = [2, 8], strides = [1, 1]} : vector<2x32xf32> to vector<2x8xf32>
    %232 = arith.negf %231 : vector<2x8xf32>
    %233 = math.exp %232 : vector<2x8xf32>
    %cst_110 = arith.constant 1.000000e+00 : f32
    %234 = vector.broadcast %cst_110 : f32 to vector<2x8xf32>
    %235 = arith.addf %234, %233 : vector<2x8xf32>
    %236 = arith.divf %234, %235 : vector<2x8xf32>
    %237 = vector.extract_strided_slice %230 {offsets = [0, 8], sizes = [2, 8], strides = [1, 1]} : vector<2x32xf32> to vector<2x8xf32>
    %238 = arith.negf %237 : vector<2x8xf32>
    %239 = math.exp %238 : vector<2x8xf32>
    %cst_111 = arith.constant 1.000000e+00 : f32
    %240 = vector.broadcast %cst_111 : f32 to vector<2x8xf32>
    %241 = arith.addf %240, %239 : vector<2x8xf32>
    %242 = arith.divf %240, %241 : vector<2x8xf32>
    %243 = vector.extract_strided_slice %230 {offsets = [0, 16], sizes = [2, 8], strides = [1, 1]} : vector<2x32xf32> to vector<2x8xf32>
    %244 = math.tanh %243 : vector<2x8xf32>
    %245 = vector.extract_strided_slice %230 {offsets = [0, 24], sizes = [2, 8], strides = [1, 1]} : vector<2x32xf32> to vector<2x8xf32>
    %246 = arith.negf %245 : vector<2x8xf32>
    %247 = math.exp %246 : vector<2x8xf32>
    %cst_112 = arith.constant 1.000000e+00 : f32
    %248 = vector.broadcast %cst_112 : f32 to vector<2x8xf32>
    %249 = arith.addf %248, %247 : vector<2x8xf32>
    %250 = arith.divf %248, %249 : vector<2x8xf32>
    %c0_113 = arith.constant 0 : index
    %c0_114 = arith.constant 0 : index
    %251 = vector.load %arg6[%c0_113, %c0_114] : memref<2x8xf32, #tpu.memory_space<vmem>>, vector<2x8xf32>
    %252 = arith.mulf %242, %251 : vector<2x8xf32>
    %253 = arith.mulf %236, %244 : vector<2x8xf32>
    %254 = arith.addf %252, %253 : vector<2x8xf32>
    %255 = math.tanh %254 : vector<2x8xf32>
    %256 = arith.mulf %250, %255 : vector<2x8xf32>
    %c0_115 = arith.constant 0 : index
    %c0_116 = arith.constant 0 : index
    %257 = vector.load %arg6[%c0_115, %c0_116] : memref<2x8xf32, #tpu.memory_space<vmem>>, vector<2x8xf32>
    tpu.vector_store %arg6[%c0_115, %c0_116], %254 {strides = array<i32>} : memref<2x8xf32, #tpu.memory_space<vmem>>, vector<2x8xf32>,
    %c0_117 = arith.constant 0 : index
    %c0_118 = arith.constant 0 : index
    %258 = vector.load %arg5[%c0_117, %c0_118] : memref<2x8xf32, #tpu.memory_space<vmem>>, vector<2x8xf32>
    tpu.vector_store %arg5[%c0_117, %c0_118], %256 {strides = array<i32>} : memref<2x8xf32, #tpu.memory_space<vmem>>, vector<2x8xf32>,
    %c0_119 = arith.constant 0 : index
    %259 = arith.index_cast %224 : i32 to index
    %c0_120 = arith.constant 0 : index
    %c0_121 = arith.constant 0 : index
    %260 = vector.load %arg4[%c0_119, %259, %c0_120, %c0_121] : memref<1x8x2x8xf32, #tpu.memory_space<vmem>>, vector<1x1x2x8xf32>
    %261 = vector.shape_cast %260 : vector<1x1x2x8xf32> to vector<2x8xf32>
    %262 = vector.shape_cast %256 : vector<2x8xf32> to vector<1x1x2x8xf32>
    tpu.vector_store %arg4[%c0_119, %259, %c0_120, %c0_121], %262 {strides = array<i32>} : memref<1x8x2x8xf32, #tpu.memory_space<vmem>>, vector<1x1x2x8xf32>,
    %c6_i32 = arith.constant 6 : i32
    %c1_i32_122 = arith.constant 1 : i32
    %263 = arith.subi %c1_i32_122, %arg0 : i32
    %264 = arith.muli %263, %c6_i32 : i32
    %c7_i32_123 = arith.constant 7 : i32
    %265 = arith.subi %c7_i32_123, %c6_i32 : i32
    %266 = arith.muli %arg0, %265 : i32
    %267 = arith.addi %264, %266 : i32
    %c0_124 = arith.constant 0 : index
    %268 = arith.index_cast %267 : i32 to index
    %c0_125 = arith.constant 0 : index
    %c0_126 = arith.constant 0 : index
    %269 = vector.load %arg2[%c0_124, %268, %c0_125, %c0_126] : memref<1x8x2x32xf32, #tpu.memory_space<vmem>>, vector<1x1x2x32xf32>
    %270 = vector.shape_cast %269 : vector<1x1x2x32xf32> to vector<2x32xf32>
    %c0_127 = arith.constant 0 : index
    %c0_128 = arith.constant 0 : index
    %271 = vector.load %arg5[%c0_127, %c0_128] : memref<2x8xf32, #tpu.memory_space<vmem>>, vector<2x8xf32>
    %cst_129 = arith.constant dense<0.000000e+00> : vector<2x32xf32>
    %272 = tpu.matmul %271, %4, %cst_129 {dimension_numbers = #tpu.dot_dimension_numbers<[1], [0], [0], [1], [0, 0, 1, 1], [], []>} : vector<2x8xf32>, vector<8x32xf32>, vector<2x32xf32> -> vector<2x32xf32>
    %273 = arith.addf %270, %272 : vector<2x32xf32>
    %274 = vector.extract_strided_slice %273 {offsets = [0, 0], sizes = [2, 8], strides = [1, 1]} : vector<2x32xf32> to vector<2x8xf32>
    %275 = arith.negf %274 : vector<2x8xf32>
    %276 = math.exp %275 : vector<2x8xf32>
    %cst_130 = arith.constant 1.000000e+00 : f32
    %277 = vector.broadcast %cst_130 : f32 to vector<2x8xf32>
    %278 = arith.addf %277, %276 : vector<2x8xf32>
    %279 = arith.divf %277, %278 : vector<2x8xf32>
    %280 = vector.extract_strided_slice %273 {offsets = [0, 8], sizes = [2, 8], strides = [1, 1]} : vector<2x32xf32> to vector<2x8xf32>
    %281 = arith.negf %280 : vector<2x8xf32>
    %282 = math.exp %281 : vector<2x8xf32>
    %cst_131 = arith.constant 1.000000e+00 : f32
    %283 = vector.broadcast %cst_131 : f32 to vector<2x8xf32>
    %284 = arith.addf %283, %282 : vector<2x8xf32>
    %285 = arith.divf %283, %284 : vector<2x8xf32>
    %286 = vector.extract_strided_slice %273 {offsets = [0, 16], sizes = [2, 8], strides = [1, 1]} : vector<2x32xf32> to vector<2x8xf32>
    %287 = math.tanh %286 : vector<2x8xf32>
    %288 = vector.extract_strided_slice %273 {offsets = [0, 24], sizes = [2, 8], strides = [1, 1]} : vector<2x32xf32> to vector<2x8xf32>
    %289 = arith.negf %288 : vector<2x8xf32>
    %290 = math.exp %289 : vector<2x8xf32>
    %cst_132 = arith.constant 1.000000e+00 : f32
    %291 = vector.broadcast %cst_132 : f32 to vector<2x8xf32>
    %292 = arith.addf %291, %290 : vector<2x8xf32>
    %293 = arith.divf %291, %292 : vector<2x8xf32>
    %c0_133 = arith.constant 0 : index
    %c0_134 = arith.constant 0 : index
    %294 = vector.load %arg6[%c0_133, %c0_134] : memref<2x8xf32, #tpu.memory_space<vmem>>, vector<2x8xf32>
    %295 = arith.mulf %285, %294 : vector<2x8xf32>
    %296 = arith.mulf %279, %287 : vector<2x8xf32>
    %297 = arith.addf %295, %296 : vector<2x8xf32>
    %298 = math.tanh %297 : vector<2x8xf32>
    %299 = arith.mulf %293, %298 : vector<2x8xf32>
    %c0_135 = arith.constant 0 : index
    %c0_136 = arith.constant 0 : index
    %300 = vector.load %arg6[%c0_135, %c0_136] : memref<2x8xf32, #tpu.memory_space<vmem>>, vector<2x8xf32>
    tpu.vector_store %arg6[%c0_135, %c0_136], %297 {strides = array<i32>} : memref<2x8xf32, #tpu.memory_space<vmem>>, vector<2x8xf32>,
    %c0_137 = arith.constant 0 : index
    %c0_138 = arith.constant 0 : index
    %301 = vector.load %arg5[%c0_137, %c0_138] : memref<2x8xf32, #tpu.memory_space<vmem>>, vector<2x8xf32>
    tpu.vector_store %arg5[%c0_137, %c0_138], %299 {strides = array<i32>} : memref<2x8xf32, #tpu.memory_space<vmem>>, vector<2x8xf32>,
    %c0_139 = arith.constant 0 : index
    %302 = arith.index_cast %267 : i32 to index
    %c0_140 = arith.constant 0 : index
    %c0_141 = arith.constant 0 : index
    %303 = vector.load %arg4[%c0_139, %302, %c0_140, %c0_141] : memref<1x8x2x8xf32, #tpu.memory_space<vmem>>, vector<1x1x2x8xf32>
    %304 = vector.shape_cast %303 : vector<1x1x2x8xf32> to vector<2x8xf32>
    %305 = vector.shape_cast %299 : vector<2x8xf32> to vector<1x1x2x8xf32>
    tpu.vector_store %arg4[%c0_139, %302, %c0_140, %c0_141], %305 {strides = array<i32>} : memref<1x8x2x8xf32, #tpu.memory_space<vmem>>, vector<1x1x2x8xf32>,
    %c7_i32_142 = arith.constant 7 : i32
    %c1_i32_143 = arith.constant 1 : i32
    %306 = arith.subi %c1_i32_143, %arg0 : i32
    %307 = arith.muli %306, %c7_i32_142 : i32
    %c7_i32_144 = arith.constant 7 : i32
    %308 = arith.subi %c7_i32_144, %c7_i32_142 : i32
    %309 = arith.muli %arg0, %308 : i32
    %310 = arith.addi %307, %309 : i32
    %c0_145 = arith.constant 0 : index
    %311 = arith.index_cast %310 : i32 to index
    %c0_146 = arith.constant 0 : index
    %c0_147 = arith.constant 0 : index
    %312 = vector.load %arg2[%c0_145, %311, %c0_146, %c0_147] : memref<1x8x2x32xf32, #tpu.memory_space<vmem>>, vector<1x1x2x32xf32>
    %313 = vector.shape_cast %312 : vector<1x1x2x32xf32> to vector<2x32xf32>
    %c0_148 = arith.constant 0 : index
    %c0_149 = arith.constant 0 : index
    %314 = vector.load %arg5[%c0_148, %c0_149] : memref<2x8xf32, #tpu.memory_space<vmem>>, vector<2x8xf32>
    %cst_150 = arith.constant dense<0.000000e+00> : vector<2x32xf32>
    %315 = tpu.matmul %314, %4, %cst_150 {dimension_numbers = #tpu.dot_dimension_numbers<[1], [0], [0], [1], [0, 0, 1, 1], [], []>} : vector<2x8xf32>, vector<8x32xf32>, vector<2x32xf32> -> vector<2x32xf32>
    %316 = arith.addf %313, %315 : vector<2x32xf32>
    %317 = vector.extract_strided_slice %316 {offsets = [0, 0], sizes = [2, 8], strides = [1, 1]} : vector<2x32xf32> to vector<2x8xf32>
    %318 = arith.negf %317 : vector<2x8xf32>
    %319 = math.exp %318 : vector<2x8xf32>
    %cst_151 = arith.constant 1.000000e+00 : f32
    %320 = vector.broadcast %cst_151 : f32 to vector<2x8xf32>
    %321 = arith.addf %320, %319 : vector<2x8xf32>
    %322 = arith.divf %320, %321 : vector<2x8xf32>
    %323 = vector.extract_strided_slice %316 {offsets = [0, 8], sizes = [2, 8], strides = [1, 1]} : vector<2x32xf32> to vector<2x8xf32>
    %324 = arith.negf %323 : vector<2x8xf32>
    %325 = math.exp %324 : vector<2x8xf32>
    %cst_152 = arith.constant 1.000000e+00 : f32
    %326 = vector.broadcast %cst_152 : f32 to vector<2x8xf32>
    %327 = arith.addf %326, %325 : vector<2x8xf32>
    %328 = arith.divf %326, %327 : vector<2x8xf32>
    %329 = vector.extract_strided_slice %316 {offsets = [0, 16], sizes = [2, 8], strides = [1, 1]} : vector<2x32xf32> to vector<2x8xf32>
    %330 = math.tanh %329 : vector<2x8xf32>
    %331 = vector.extract_strided_slice %316 {offsets = [0, 24], sizes = [2, 8], strides = [1, 1]} : vector<2x32xf32> to vector<2x8xf32>
    %332 = arith.negf %331 : vector<2x8xf32>
    %333 = math.exp %332 : vector<2x8xf32>
    %cst_153 = arith.constant 1.000000e+00 : f32
    %334 = vector.broadcast %cst_153 : f32 to vector<2x8xf32>
    %335 = arith.addf %334, %333 : vector<2x8xf32>
    %336 = arith.divf %334, %335 : vector<2x8xf32>
    %c0_154 = arith.constant 0 : index
    %c0_155 = arith.constant 0 : index
    %337 = vector.load %arg6[%c0_154, %c0_155] : memref<2x8xf32, #tpu.memory_space<vmem>>, vector<2x8xf32>
    %338 = arith.mulf %328, %337 : vector<2x8xf32>
    %339 = arith.mulf %322, %330 : vector<2x8xf32>
    %340 = arith.addf %338, %339 : vector<2x8xf32>
    %341 = math.tanh %340 : vector<2x8xf32>
    %342 = arith.mulf %336, %341 : vector<2x8xf32>
    %c0_156 = arith.constant 0 : index
    %c0_157 = arith.constant 0 : index
    %343 = vector.load %arg6[%c0_156, %c0_157] : memref<2x8xf32, #tpu.memory_space<vmem>>, vector<2x8xf32>
    tpu.vector_store %arg6[%c0_156, %c0_157], %340 {strides = array<i32>} : memref<2x8xf32, #tpu.memory_space<vmem>>, vector<2x8xf32>,
    %c0_158 = arith.constant 0 : index
    %c0_159 = arith.constant 0 : index
    %344 = vector.load %arg5[%c0_158, %c0_159] : memref<2x8xf32, #tpu.memory_space<vmem>>, vector<2x8xf32>
    tpu.vector_store %arg5[%c0_158, %c0_159], %342 {strides = array<i32>} : memref<2x8xf32, #tpu.memory_space<vmem>>, vector<2x8xf32>,
    %c0_160 = arith.constant 0 : index
    %345 = arith.index_cast %310 : i32 to index
    %c0_161 = arith.constant 0 : index
    %c0_162 = arith.constant 0 : index
    %346 = vector.load %arg4[%c0_160, %345, %c0_161, %c0_162] : memref<1x8x2x8xf32, #tpu.memory_space<vmem>>, vector<1x1x2x8xf32>
    %347 = vector.shape_cast %346 : vector<1x1x2x8xf32> to vector<2x8xf32>
    %348 = vector.shape_cast %342 : vector<2x8xf32> to vector<1x1x2x8xf32>
    tpu.vector_store %arg4[%c0_160, %345, %c0_161, %c0_162], %348 {strides = array<i32>} : memref<1x8x2x8xf32, #tpu.memory_space<vmem>>, vector<1x1x2x8xf32>,
    %c8_i32 = arith.constant 8 : i32
    return
  }
  func.func @transform_0(%arg0: i32, %arg1: i32) -> (i32, i32, i32, i32) {
    %c1_i32 = arith.constant 1 : i32
    %0 = arith.subi %c1_i32, %arg0 : i32
    %1 = arith.muli %0, %arg1 : i32
    %c0_i32 = arith.constant 0 : i32
    %2 = arith.subi %c0_i32, %arg1 : i32
    %3 = arith.muli %arg0, %2 : i32
    %4 = arith.addi %1, %3 : i32
    %c0_i32_0 = arith.constant 0 : i32
    %c0_i32_1 = arith.constant 0 : i32
    %c0_i32_2 = arith.constant 0 : i32
    return %arg0, %4, %c0_i32_0, %c0_i32_1 : i32, i32, i32, i32
  }
  func.func @transform_1(%arg0: i32, %arg1: i32) -> (i32, i32, i32) {
    %c0_i32 = arith.constant 0 : i32
    %c0_i32_0 = arith.constant 0 : i32
    %c0_i32_1 = arith.constant 0 : i32
    return %arg0, %c0_i32, %c0_i32_0 : i32, i32, i32
  }
  func.func @transform_2(%arg0: i32, %arg1: i32) -> (i32, i32, i32, i32) {
    %c1_i32 = arith.constant 1 : i32
    %0 = arith.subi %c1_i32, %arg0 : i32
    %1 = arith.muli %0, %arg1 : i32
    %c0_i32 = arith.constant 0 : i32
    %2 = arith.subi %c0_i32, %arg1 : i32
    %3 = arith.muli %arg0, %2 : i32
    %4 = arith.addi %1, %3 : i32
    %c0_i32_0 = arith.constant 0 : i32
    %c0_i32_1 = arith.constant 0 : i32
    %c0_i32_2 = arith.constant 0 : i32
    return %arg0, %4, %c0_i32_0, %c0_i32_1 : i32, i32, i32, i32
  }
}

module attributes {stable_mosaic.version = 11 : i64} {
  func.func @_sum_last4_kernel(%arg0: i32, %arg1: memref<4x16x32xf32, #tpu.memory_space<vmem>>, %arg2: memref<16x32xf32, #tpu.memory_space<vmem>>) attributes {dimension_semantics = [#tpu.dimension_semantics<parallel>], iteration_bounds = array<i64: 1>, scalar_prefetch = 0 : i64, scratch_operands = 0 : i64, tpu.core_type = #tpu.core_type<tc>, window_params = [{transform_indices = @transform_0, window_bounds = array<i64: 4, 16, 32>}, {transform_indices = @transform_1, window_bounds = array<i64: 16, 32>}]} {
    %c0 = arith.constant 0 : index
    %c0_0 = arith.constant 0 : index
    %c0_1 = arith.constant 0 : index
    %0 = vector.load %arg1[%c0, %c0_0, %c0_1] : memref<4x16x32xf32, #tpu.memory_space<vmem>>, vector<1x16x32xf32>
    %1 = vector.shape_cast %0 : vector<1x16x32xf32> to vector<16x32xf32>
    %c1 = arith.constant 1 : index
    %c0_2 = arith.constant 0 : index
    %c0_3 = arith.constant 0 : index
    %2 = vector.load %arg1[%c1, %c0_2, %c0_3] : memref<4x16x32xf32, #tpu.memory_space<vmem>>, vector<1x16x32xf32>
    %3 = vector.shape_cast %2 : vector<1x16x32xf32> to vector<16x32xf32>
    %4 = arith.addf %1, %3 : vector<16x32xf32>
    %c2 = arith.constant 2 : index
    %c0_4 = arith.constant 0 : index
    %c0_5 = arith.constant 0 : index
    %5 = vector.load %arg1[%c2, %c0_4, %c0_5] : memref<4x16x32xf32, #tpu.memory_space<vmem>>, vector<1x16x32xf32>
    %6 = vector.shape_cast %5 : vector<1x16x32xf32> to vector<16x32xf32>
    %7 = arith.addf %4, %6 : vector<16x32xf32>
    %c3 = arith.constant 3 : index
    %c0_6 = arith.constant 0 : index
    %c0_7 = arith.constant 0 : index
    %8 = vector.load %arg1[%c3, %c0_6, %c0_7] : memref<4x16x32xf32, #tpu.memory_space<vmem>>, vector<1x16x32xf32>
    %9 = vector.shape_cast %8 : vector<1x16x32xf32> to vector<16x32xf32>
    %10 = arith.addf %7, %9 : vector<16x32xf32>
    %c0_8 = arith.constant 0 : index
    %c0_9 = arith.constant 0 : index
    %11 = vector.load %arg2[%c0_8, %c0_9] : memref<16x32xf32, #tpu.memory_space<vmem>>, vector<16x32xf32>
    tpu.vector_store %arg2[%c0_8, %c0_9], %10 {strides = array<i32>} : memref<16x32xf32, #tpu.memory_space<vmem>>, vector<16x32xf32>,
    return
  }
  func.func @transform_0(%arg0: i32) -> (i32, i32, i32) {
    %c0_i32 = arith.constant 0 : i32
    %c0_i32_0 = arith.constant 0 : i32
    %c0_i32_1 = arith.constant 0 : i32
    return %c0_i32, %arg0, %c0_i32_0 : i32, i32, i32
  }
  func.func @transform_1(%arg0: i32) -> (i32, i32) {
    %c0_i32 = arith.constant 0 : i32
    %c0_i32_0 = arith.constant 0 : i32
    return %arg0, %c0_i32 : i32, i32
  }
}

module attributes {stable_mosaic.version = 11 : i64} {
  func.func @kernel(%arg0: i32, %arg1: memref<16x1xf32, #tpu.memory_space<vmem>>, %arg2: memref<16x32xf32, #tpu.memory_space<vmem>>, %arg3: memref<1x16x8xf32, #tpu.memory_space<vmem>>, %arg4: memref<1x16x8xf32, #tpu.memory_space<vmem>>, %arg5: memref<2x1x64xf32, #tpu.memory_space<vmem>>, %arg6: memref<2x32x64xf32, #tpu.memory_space<vmem>>, %arg7: memref<2x8x64xf32, #tpu.memory_space<vmem>>, %arg8: memref<2x8x64xf32, #tpu.memory_space<vmem>>, %arg9: memref<2x1x64xf32, #tpu.memory_space<vmem>>, %arg10: memref<2x16x64xf32, #tpu.memory_space<vmem>>) attributes {dimension_semantics = [#tpu.dimension_semantics<parallel>], iteration_bounds = array<i64: 1>, scalar_prefetch = 0 : i64, scratch_operands = 0 : i64, tpu.core_type = #tpu.core_type<tc>, window_params = [{transform_indices = @transform_0, window_bounds = array<i64: 16, 1>}, {transform_indices = @transform_1, window_bounds = array<i64: 16, 32>}, {transform_indices = @transform_2, window_bounds = array<i64: 1, 16, 8>}, {transform_indices = @transform_3, window_bounds = array<i64: 1, 16, 8>}, {pipeline_mode = #tpu.pipeline_mode<synchronous>, transform_indices = @transform_4, window_bounds = array<i64: 2, 1, 64>}, {pipeline_mode = #tpu.pipeline_mode<synchronous>, transform_indices = @transform_5, window_bounds = array<i64: 2, 32, 64>}, {pipeline_mode = #tpu.pipeline_mode<synchronous>, transform_indices = @transform_6, window_bounds = array<i64: 2, 8, 64>}, {pipeline_mode = #tpu.pipeline_mode<synchronous>, transform_indices = @transform_7, window_bounds = array<i64: 2, 8, 64>}, {pipeline_mode = #tpu.pipeline_mode<synchronous>, transform_indices = @transform_8, window_bounds = array<i64: 2, 1, 64>}, {transform_indices = @transform_9, window_bounds = array<i64: 2, 16, 64>}]} {
    %c0 = arith.constant 0 : index
    %c0_0 = arith.constant 0 : index
    %0 = vector.load %arg1[%c0, %c0_0] : memref<16x1xf32, #tpu.memory_space<vmem>>, vector<16x1xf32>
    %c0_1 = arith.constant 0 : index
    %c0_2 = arith.constant 0 : index
    %c0_3 = arith.constant 0 : index
    %1 = vector.load %arg5[%c0_1, %c0_2, %c0_3] : memref<2x1x64xf32, #tpu.memory_space<vmem>>, vector<1x1x64xf32>
    %2 = vector.shape_cast %1 : vector<1x1x64xf32> to vector<1x64xf32>
    %3 = vector.broadcast %0 : vector<16x1xf32> to vector<16x64xf32>
    %4 = vector.broadcast %2 : vector<1x64xf32> to vector<16x64xf32>
    %5 = arith.mulf %3, %4 : vector<16x64xf32>
    %c0_4 = arith.constant 0 : index
    %c0_5 = arith.constant 0 : index
    %6 = vector.load %arg2[%c0_4, %c0_5] : memref<16x32xf32, #tpu.memory_space<vmem>>, vector<16x32xf32>
    %c0_6 = arith.constant 0 : index
    %c0_7 = arith.constant 0 : index
    %c0_8 = arith.constant 0 : index
    %7 = vector.load %arg6[%c0_6, %c0_7, %c0_8] : memref<2x32x64xf32, #tpu.memory_space<vmem>>, vector<1x32x64xf32>
    %8 = vector.shape_cast %7 : vector<1x32x64xf32> to vector<32x64xf32>
    %cst = arith.constant dense<0.000000e+00> : vector<16x64xf32>
    %9 = tpu.matmul %6, %8, %cst {dimension_numbers = #tpu.dot_dimension_numbers<[1], [0], [0], [1], [0, 0, 1, 1], [], []>} : vector<16x32xf32>, vector<32x64xf32>, vector<16x64xf32> -> vector<16x64xf32>
    %10 = arith.addf %5, %9 : vector<16x64xf32>
    %c0_9 = arith.constant 0 : index
    %c0_10 = arith.constant 0 : index
    %c0_11 = arith.constant 0 : index
    %11 = vector.load %arg3[%c0_9, %c0_10, %c0_11] : memref<1x16x8xf32, #tpu.memory_space<vmem>>, vector<1x16x8xf32>
    %12 = vector.shape_cast %11 : vector<1x16x8xf32> to vector<16x8xf32>
    %c0_12 = arith.constant 0 : index
    %c0_13 = arith.constant 0 : index
    %c0_14 = arith.constant 0 : index
    %13 = vector.load %arg7[%c0_12, %c0_13, %c0_14] : memref<2x8x64xf32, #tpu.memory_space<vmem>>, vector<1x8x64xf32>
    %14 = vector.shape_cast %13 : vector<1x8x64xf32> to vector<8x64xf32>
    %cst_15 = arith.constant dense<0.000000e+00> : vector<16x64xf32>
    %15 = tpu.matmul %12, %14, %cst_15 {dimension_numbers = #tpu.dot_dimension_numbers<[1], [0], [0], [1], [0, 0, 1, 1], [], []>} : vector<16x8xf32>, vector<8x64xf32>, vector<16x64xf32> -> vector<16x64xf32>
    %16 = arith.addf %10, %15 : vector<16x64xf32>
    %c0_16 = arith.constant 0 : index
    %c0_17 = arith.constant 0 : index
    %c0_18 = arith.constant 0 : index
    %17 = vector.load %arg4[%c0_16, %c0_17, %c0_18] : memref<1x16x8xf32, #tpu.memory_space<vmem>>, vector<1x16x8xf32>
    %18 = vector.shape_cast %17 : vector<1x16x8xf32> to vector<16x8xf32>
    %c0_19 = arith.constant 0 : index
    %c0_20 = arith.constant 0 : index
    %c0_21 = arith.constant 0 : index
    %19 = vector.load %arg8[%c0_19, %c0_20, %c0_21] : memref<2x8x64xf32, #tpu.memory_space<vmem>>, vector<1x8x64xf32>
    %20 = vector.shape_cast %19 : vector<1x8x64xf32> to vector<8x64xf32>
    %cst_22 = arith.constant dense<0.000000e+00> : vector<16x64xf32>
    %21 = tpu.matmul %18, %20, %cst_22 {dimension_numbers = #tpu.dot_dimension_numbers<[1], [0], [0], [1], [0, 0, 1, 1], [], []>} : vector<16x8xf32>, vector<8x64xf32>, vector<16x64xf32> -> vector<16x64xf32>
    %22 = arith.addf %16, %21 : vector<16x64xf32>
    %c0_23 = arith.constant 0 : index
    %c0_24 = arith.constant 0 : index
    %c0_25 = arith.constant 0 : index
    %23 = vector.load %arg9[%c0_23, %c0_24, %c0_25] : memref<2x1x64xf32, #tpu.memory_space<vmem>>, vector<1x1x64xf32>
    %24 = vector.shape_cast %23 : vector<1x1x64xf32> to vector<1x64xf32>
    %25 = vector.broadcast %24 : vector<1x64xf32> to vector<16x64xf32>
    %26 = arith.addf %22, %25 : vector<16x64xf32>
    %c0_26 = arith.constant 0 : index
    %c0_27 = arith.constant 0 : index
    %c0_28 = arith.constant 0 : index
    %27 = vector.load %arg10[%c0_26, %c0_27, %c0_28] : memref<2x16x64xf32, #tpu.memory_space<vmem>>, vector<1x16x64xf32>
    %28 = vector.shape_cast %27 : vector<1x16x64xf32> to vector<16x64xf32>
    %29 = vector.shape_cast %26 : vector<16x64xf32> to vector<1x16x64xf32>
    tpu.vector_store %arg10[%c0_26, %c0_27, %c0_28], %29 {strides = array<i32>} : memref<2x16x64xf32, #tpu.memory_space<vmem>>, vector<1x16x64xf32>,
    %c0_29 = arith.constant 0 : index
    %c0_30 = arith.constant 0 : index
    %30 = vector.load %arg1[%c0_29, %c0_30] : memref<16x1xf32, #tpu.memory_space<vmem>>, vector<16x1xf32>
    %c1 = arith.constant 1 : index
    %c0_31 = arith.constant 0 : index
    %c0_32 = arith.constant 0 : index
    %31 = vector.load %arg5[%c1, %c0_31, %c0_32] : memref<2x1x64xf32, #tpu.memory_space<vmem>>, vector<1x1x64xf32>
    %32 = vector.shape_cast %31 : vector<1x1x64xf32> to vector<1x64xf32>
    %33 = vector.broadcast %30 : vector<16x1xf32> to vector<16x64xf32>
    %34 = vector.broadcast %32 : vector<1x64xf32> to vector<16x64xf32>
    %35 = arith.mulf %33, %34 : vector<16x64xf32>
    %c0_33 = arith.constant 0 : index
    %c0_34 = arith.constant 0 : index
    %36 = vector.load %arg2[%c0_33, %c0_34] : memref<16x32xf32, #tpu.memory_space<vmem>>, vector<16x32xf32>
    %c1_35 = arith.constant 1 : index
    %c0_36 = arith.constant 0 : index
    %c0_37 = arith.constant 0 : index
    %37 = vector.load %arg6[%c1_35, %c0_36, %c0_37] : memref<2x32x64xf32, #tpu.memory_space<vmem>>, vector<1x32x64xf32>
    %38 = vector.shape_cast %37 : vector<1x32x64xf32> to vector<32x64xf32>
    %cst_38 = arith.constant dense<0.000000e+00> : vector<16x64xf32>
    %39 = tpu.matmul %36, %38, %cst_38 {dimension_numbers = #tpu.dot_dimension_numbers<[1], [0], [0], [1], [0, 0, 1, 1], [], []>} : vector<16x32xf32>, vector<32x64xf32>, vector<16x64xf32> -> vector<16x64xf32>
    %40 = arith.addf %35, %39 : vector<16x64xf32>
    %c0_39 = arith.constant 0 : index
    %c0_40 = arith.constant 0 : index
    %c0_41 = arith.constant 0 : index
    %41 = vector.load %arg3[%c0_39, %c0_40, %c0_41] : memref<1x16x8xf32, #tpu.memory_space<vmem>>, vector<1x16x8xf32>
    %42 = vector.shape_cast %41 : vector<1x16x8xf32> to vector<16x8xf32>
    %c1_42 = arith.constant 1 : index
    %c0_43 = arith.constant 0 : index
    %c0_44 = arith.constant 0 : index
    %43 = vector.load %arg7[%c1_42, %c0_43, %c0_44] : memref<2x8x64xf32, #tpu.memory_space<vmem>>, vector<1x8x64xf32>
    %44 = vector.shape_cast %43 : vector<1x8x64xf32> to vector<8x64xf32>
    %cst_45 = arith.constant dense<0.000000e+00> : vector<16x64xf32>
    %45 = tpu.matmul %42, %44, %cst_45 {dimension_numbers = #tpu.dot_dimension_numbers<[1], [0], [0], [1], [0, 0, 1, 1], [], []>} : vector<16x8xf32>, vector<8x64xf32>, vector<16x64xf32> -> vector<16x64xf32>
    %46 = arith.addf %40, %45 : vector<16x64xf32>
    %c0_46 = arith.constant 0 : index
    %c0_47 = arith.constant 0 : index
    %c0_48 = arith.constant 0 : index
    %47 = vector.load %arg4[%c0_46, %c0_47, %c0_48] : memref<1x16x8xf32, #tpu.memory_space<vmem>>, vector<1x16x8xf32>
    %48 = vector.shape_cast %47 : vector<1x16x8xf32> to vector<16x8xf32>
    %c1_49 = arith.constant 1 : index
    %c0_50 = arith.constant 0 : index
    %c0_51 = arith.constant 0 : index
    %49 = vector.load %arg8[%c1_49, %c0_50, %c0_51] : memref<2x8x64xf32, #tpu.memory_space<vmem>>, vector<1x8x64xf32>
    %50 = vector.shape_cast %49 : vector<1x8x64xf32> to vector<8x64xf32>
    %cst_52 = arith.constant dense<0.000000e+00> : vector<16x64xf32>
    %51 = tpu.matmul %48, %50, %cst_52 {dimension_numbers = #tpu.dot_dimension_numbers<[1], [0], [0], [1], [0, 0, 1, 1], [], []>} : vector<16x8xf32>, vector<8x64xf32>, vector<16x64xf32> -> vector<16x64xf32>
    %52 = arith.addf %46, %51 : vector<16x64xf32>
    %c1_53 = arith.constant 1 : index
    %c0_54 = arith.constant 0 : index
    %c0_55 = arith.constant 0 : index
    %53 = vector.load %arg9[%c1_53, %c0_54, %c0_55] : memref<2x1x64xf32, #tpu.memory_space<vmem>>, vector<1x1x64xf32>
    %54 = vector.shape_cast %53 : vector<1x1x64xf32> to vector<1x64xf32>
    %55 = vector.broadcast %54 : vector<1x64xf32> to vector<16x64xf32>
    %56 = arith.addf %52, %55 : vector<16x64xf32>
    %c1_56 = arith.constant 1 : index
    %c0_57 = arith.constant 0 : index
    %c0_58 = arith.constant 0 : index
    %57 = vector.load %arg10[%c1_56, %c0_57, %c0_58] : memref<2x16x64xf32, #tpu.memory_space<vmem>>, vector<1x16x64xf32>
    %58 = vector.shape_cast %57 : vector<1x16x64xf32> to vector<16x64xf32>
    %59 = vector.shape_cast %56 : vector<16x64xf32> to vector<1x16x64xf32>
    tpu.vector_store %arg10[%c1_56, %c0_57, %c0_58], %59 {strides = array<i32>} : memref<2x16x64xf32, #tpu.memory_space<vmem>>, vector<1x16x64xf32>,
    return
  }
  func.func @transform_0(%arg0: i32) -> (i32, i32) {
    %c0_i32 = arith.constant 0 : i32
    %c0_i32_0 = arith.constant 0 : i32
    return %arg0, %c0_i32 : i32, i32
  }
  func.func @transform_1(%arg0: i32) -> (i32, i32) {
    %c0_i32 = arith.constant 0 : i32
    %c0_i32_0 = arith.constant 0 : i32
    return %arg0, %c0_i32 : i32, i32
  }
  func.func @transform_2(%arg0: i32) -> (i32, i32, i32) {
    %c0_i32 = arith.constant 0 : i32
    %c0_i32_0 = arith.constant 0 : i32
    %c0_i32_1 = arith.constant 0 : i32
    return %c0_i32, %arg0, %c0_i32_0 : i32, i32, i32
  }
  func.func @transform_3(%arg0: i32) -> (i32, i32, i32) {
    %c1_i32 = arith.constant 1 : i32
    %c0_i32 = arith.constant 0 : i32
    %c0_i32_0 = arith.constant 0 : i32
    return %c1_i32, %arg0, %c0_i32 : i32, i32, i32
  }
  func.func @transform_4(%arg0: i32) -> (i32, i32, i32) {
    %c0_i32 = arith.constant 0 : i32
    %c0_i32_0 = arith.constant 0 : i32
    %c0_i32_1 = arith.constant 0 : i32
    %c0_i32_2 = arith.constant 0 : i32
    return %c0_i32, %c0_i32_0, %c0_i32_1 : i32, i32, i32
  }
  func.func @transform_5(%arg0: i32) -> (i32, i32, i32) {
    %c0_i32 = arith.constant 0 : i32
    %c0_i32_0 = arith.constant 0 : i32
    %c0_i32_1 = arith.constant 0 : i32
    %c0_i32_2 = arith.constant 0 : i32
    return %c0_i32, %c0_i32_0, %c0_i32_1 : i32, i32, i32
  }
  func.func @transform_6(%arg0: i32) -> (i32, i32, i32) {
    %c0_i32 = arith.constant 0 : i32
    %c0_i32_0 = arith.constant 0 : i32
    %c0_i32_1 = arith.constant 0 : i32
    %c0_i32_2 = arith.constant 0 : i32
    return %c0_i32, %c0_i32_0, %c0_i32_1 : i32, i32, i32
  }
  func.func @transform_7(%arg0: i32) -> (i32, i32, i32) {
    %c0_i32 = arith.constant 0 : i32
    %c0_i32_0 = arith.constant 0 : i32
    %c0_i32_1 = arith.constant 0 : i32
    %c0_i32_2 = arith.constant 0 : i32
    return %c0_i32, %c0_i32_0, %c0_i32_1 : i32, i32, i32
  }
  func.func @transform_8(%arg0: i32) -> (i32, i32, i32) {
    %c0_i32 = arith.constant 0 : i32
    %c0_i32_0 = arith.constant 0 : i32
    %c0_i32_1 = arith.constant 0 : i32
    %c0_i32_2 = arith.constant 0 : i32
    return %c0_i32, %c0_i32_0, %c0_i32_1 : i32, i32, i32
  }
  func.func @transform_9(%arg0: i32) -> (i32, i32, i32) {
    %c0_i32 = arith.constant 0 : i32
    %c0_i32_0 = arith.constant 0 : i32
    %c0_i32_1 = arith.constant 0 : i32
    return %c0_i32, %arg0, %c0_i32_0 : i32, i32, i32
  }
}

module attributes {stable_mosaic.version = 11 : i64} {
  func.func @kernel(%arg0: i32, %arg1: memref<1x16x16xf32, #tpu.memory_space<vmem>>, %arg2: memref<1x16x16xf32, #tpu.memory_space<vmem>>, %arg3: memref<2x16x64xf32, #tpu.memory_space<vmem>>, %arg4: memref<2x16x64xf32, #tpu.memory_space<vmem>>, %arg5: memref<2x1x64xf32, #tpu.memory_space<vmem>>, %arg6: memref<2x16x64xf32, #tpu.memory_space<vmem>>) attributes {dimension_semantics = [#tpu.dimension_semantics<parallel>], iteration_bounds = array<i64: 1>, scalar_prefetch = 0 : i64, scratch_operands = 0 : i64, tpu.core_type = #tpu.core_type<tc>, window_params = [{transform_indices = @transform_0, window_bounds = array<i64: 1, 16, 16>}, {transform_indices = @transform_1, window_bounds = array<i64: 1, 16, 16>}, {pipeline_mode = #tpu.pipeline_mode<synchronous>, transform_indices = @transform_2, window_bounds = array<i64: 2, 16, 64>}, {pipeline_mode = #tpu.pipeline_mode<synchronous>, transform_indices = @transform_3, window_bounds = array<i64: 2, 16, 64>}, {pipeline_mode = #tpu.pipeline_mode<synchronous>, transform_indices = @transform_4, window_bounds = array<i64: 2, 1, 64>}, {transform_indices = @transform_5, window_bounds = array<i64: 2, 16, 64>}]} {
    %c0 = arith.constant 0 : index
    %c0_0 = arith.constant 0 : index
    %c0_1 = arith.constant 0 : index
    %0 = vector.load %arg1[%c0, %c0_0, %c0_1] : memref<1x16x16xf32, #tpu.memory_space<vmem>>, vector<1x16x16xf32>
    %1 = vector.shape_cast %0 : vector<1x16x16xf32> to vector<16x16xf32>
    %c0_2 = arith.constant 0 : index
    %c0_3 = arith.constant 0 : index
    %c0_4 = arith.constant 0 : index
    %2 = vector.load %arg3[%c0_2, %c0_3, %c0_4] : memref<2x16x64xf32, #tpu.memory_space<vmem>>, vector<1x16x64xf32>
    %3 = vector.shape_cast %2 : vector<1x16x64xf32> to vector<16x64xf32>
    %cst = arith.constant dense<0.000000e+00> : vector<16x64xf32>
    %4 = tpu.matmul %1, %3, %cst {dimension_numbers = #tpu.dot_dimension_numbers<[1], [0], [0], [1], [0, 0, 1, 1], [], []>} : vector<16x16xf32>, vector<16x64xf32>, vector<16x64xf32> -> vector<16x64xf32>
    %c0_5 = arith.constant 0 : index
    %c0_6 = arith.constant 0 : index
    %c0_7 = arith.constant 0 : index
    %5 = vector.load %arg2[%c0_5, %c0_6, %c0_7] : memref<1x16x16xf32, #tpu.memory_space<vmem>>, vector<1x16x16xf32>
    %6 = vector.shape_cast %5 : vector<1x16x16xf32> to vector<16x16xf32>
    %c0_8 = arith.constant 0 : index
    %c0_9 = arith.constant 0 : index
    %c0_10 = arith.constant 0 : index
    %7 = vector.load %arg4[%c0_8, %c0_9, %c0_10] : memref<2x16x64xf32, #tpu.memory_space<vmem>>, vector<1x16x64xf32>
    %8 = vector.shape_cast %7 : vector<1x16x64xf32> to vector<16x64xf32>
    %cst_11 = arith.constant dense<0.000000e+00> : vector<16x64xf32>
    %9 = tpu.matmul %6, %8, %cst_11 {dimension_numbers = #tpu.dot_dimension_numbers<[1], [0], [0], [1], [0, 0, 1, 1], [], []>} : vector<16x16xf32>, vector<16x64xf32>, vector<16x64xf32> -> vector<16x64xf32>
    %10 = arith.addf %4, %9 : vector<16x64xf32>
    %c0_12 = arith.constant 0 : index
    %c0_13 = arith.constant 0 : index
    %c0_14 = arith.constant 0 : index
    %11 = vector.load %arg5[%c0_12, %c0_13, %c0_14] : memref<2x1x64xf32, #tpu.memory_space<vmem>>, vector<1x1x64xf32>
    %12 = vector.shape_cast %11 : vector<1x1x64xf32> to vector<1x64xf32>
    %13 = vector.broadcast %12 : vector<1x64xf32> to vector<16x64xf32>
    %14 = arith.addf %10, %13 : vector<16x64xf32>
    %c0_15 = arith.constant 0 : index
    %c0_16 = arith.constant 0 : index
    %c0_17 = arith.constant 0 : index
    %15 = vector.load %arg6[%c0_15, %c0_16, %c0_17] : memref<2x16x64xf32, #tpu.memory_space<vmem>>, vector<1x16x64xf32>
    %16 = vector.shape_cast %15 : vector<1x16x64xf32> to vector<16x64xf32>
    %17 = vector.shape_cast %14 : vector<16x64xf32> to vector<1x16x64xf32>
    tpu.vector_store %arg6[%c0_15, %c0_16, %c0_17], %17 {strides = array<i32>} : memref<2x16x64xf32, #tpu.memory_space<vmem>>, vector<1x16x64xf32>,
    %c0_18 = arith.constant 0 : index
    %c0_19 = arith.constant 0 : index
    %c0_20 = arith.constant 0 : index
    %18 = vector.load %arg1[%c0_18, %c0_19, %c0_20] : memref<1x16x16xf32, #tpu.memory_space<vmem>>, vector<1x16x16xf32>
    %19 = vector.shape_cast %18 : vector<1x16x16xf32> to vector<16x16xf32>
    %c1 = arith.constant 1 : index
    %c0_21 = arith.constant 0 : index
    %c0_22 = arith.constant 0 : index
    %20 = vector.load %arg3[%c1, %c0_21, %c0_22] : memref<2x16x64xf32, #tpu.memory_space<vmem>>, vector<1x16x64xf32>
    %21 = vector.shape_cast %20 : vector<1x16x64xf32> to vector<16x64xf32>
    %cst_23 = arith.constant dense<0.000000e+00> : vector<16x64xf32>
    %22 = tpu.matmul %19, %21, %cst_23 {dimension_numbers = #tpu.dot_dimension_numbers<[1], [0], [0], [1], [0, 0, 1, 1], [], []>} : vector<16x16xf32>, vector<16x64xf32>, vector<16x64xf32> -> vector<16x64xf32>
    %c0_24 = arith.constant 0 : index
    %c0_25 = arith.constant 0 : index
    %c0_26 = arith.constant 0 : index
    %23 = vector.load %arg2[%c0_24, %c0_25, %c0_26] : memref<1x16x16xf32, #tpu.memory_space<vmem>>, vector<1x16x16xf32>
    %24 = vector.shape_cast %23 : vector<1x16x16xf32> to vector<16x16xf32>
    %c1_27 = arith.constant 1 : index
    %c0_28 = arith.constant 0 : index
    %c0_29 = arith.constant 0 : index
    %25 = vector.load %arg4[%c1_27, %c0_28, %c0_29] : memref<2x16x64xf32, #tpu.memory_space<vmem>>, vector<1x16x64xf32>
    %26 = vector.shape_cast %25 : vector<1x16x64xf32> to vector<16x64xf32>
    %cst_30 = arith.constant dense<0.000000e+00> : vector<16x64xf32>
    %27 = tpu.matmul %24, %26, %cst_30 {dimension_numbers = #tpu.dot_dimension_numbers<[1], [0], [0], [1], [0, 0, 1, 1], [], []>} : vector<16x16xf32>, vector<16x64xf32>, vector<16x64xf32> -> vector<16x64xf32>
    %28 = arith.addf %22, %27 : vector<16x64xf32>
    %c1_31 = arith.constant 1 : index
    %c0_32 = arith.constant 0 : index
    %c0_33 = arith.constant 0 : index
    %29 = vector.load %arg5[%c1_31, %c0_32, %c0_33] : memref<2x1x64xf32, #tpu.memory_space<vmem>>, vector<1x1x64xf32>
    %30 = vector.shape_cast %29 : vector<1x1x64xf32> to vector<1x64xf32>
    %31 = vector.broadcast %30 : vector<1x64xf32> to vector<16x64xf32>
    %32 = arith.addf %28, %31 : vector<16x64xf32>
    %c1_34 = arith.constant 1 : index
    %c0_35 = arith.constant 0 : index
    %c0_36 = arith.constant 0 : index
    %33 = vector.load %arg6[%c1_34, %c0_35, %c0_36] : memref<2x16x64xf32, #tpu.memory_space<vmem>>, vector<1x16x64xf32>
    %34 = vector.shape_cast %33 : vector<1x16x64xf32> to vector<16x64xf32>
    %35 = vector.shape_cast %32 : vector<16x64xf32> to vector<1x16x64xf32>
    tpu.vector_store %arg6[%c1_34, %c0_35, %c0_36], %35 {strides = array<i32>} : memref<2x16x64xf32, #tpu.memory_space<vmem>>, vector<1x16x64xf32>,
    return
  }
  func.func @transform_0(%arg0: i32) -> (i32, i32, i32) {
    %c0_i32 = arith.constant 0 : i32
    %c0_i32_0 = arith.constant 0 : i32
    %c0_i32_1 = arith.constant 0 : i32
    return %c0_i32, %arg0, %c0_i32_0 : i32, i32, i32
  }
  func.func @transform_1(%arg0: i32) -> (i32, i32, i32) {
    %c1_i32 = arith.constant 1 : i32
    %c0_i32 = arith.constant 0 : i32
    %c0_i32_0 = arith.constant 0 : i32
    return %c1_i32, %arg0, %c0_i32 : i32, i32, i32
  }
  func.func @transform_2(%arg0: i32) -> (i32, i32, i32) {
    %c0_i32 = arith.constant 0 : i32
    %c0_i32_0 = arith.constant 0 : i32
    %c0_i32_1 = arith.constant 0 : i32
    %c0_i32_2 = arith.constant 0 : i32
    return %c0_i32, %c0_i32_0, %c0_i32_1 : i32, i32, i32
  }
  func.func @transform_3(%arg0: i32) -> (i32, i32, i32) {
    %c0_i32 = arith.constant 0 : i32
    %c0_i32_0 = arith.constant 0 : i32
    %c0_i32_1 = arith.constant 0 : i32
    %c0_i32_2 = arith.constant 0 : i32
    return %c0_i32, %c0_i32_0, %c0_i32_1 : i32, i32, i32
  }
  func.func @transform_4(%arg0: i32) -> (i32, i32, i32) {
    %c0_i32 = arith.constant 0 : i32
    %c0_i32_0 = arith.constant 0 : i32
    %c0_i32_1 = arith.constant 0 : i32
    %c0_i32_2 = arith.constant 0 : i32
    return %c0_i32, %c0_i32_0, %c0_i32_1 : i32, i32, i32
  }
  func.func @transform_5(%arg0: i32) -> (i32, i32, i32) {
    %c0_i32 = arith.constant 0 : i32
    %c0_i32_0 = arith.constant 0 : i32
    %c0_i32_1 = arith.constant 0 : i32
    return %c0_i32, %arg0, %c0_i32_0 : i32, i32, i32
  }
}

module attributes {stable_mosaic.version = 11 : i64} {
  func.func @kernel(%arg0: i32, %arg1: i32, %arg2: memref<1x8x2x64xf32, #tpu.memory_space<vmem>>, %arg3: memref<1x16x64xf32, #tpu.memory_space<vmem>>, %arg4: memref<1x8x2x16xf32, #tpu.memory_space<vmem>>, %arg5: memref<2x16xf32, #tpu.memory_space<vmem>>, %arg6: memref<2x16xf32, #tpu.memory_space<vmem>>) attributes {dimension_semantics = [#tpu.dimension_semantics<parallel>, #tpu.dimension_semantics<arbitrary>], iteration_bounds = array<i64: 2, 1>, scalar_prefetch = 0 : i64, scratch_operands = 2 : i64, tpu.core_type = #tpu.core_type<tc>, window_params = [{transform_indices = @transform_0, window_bounds = array<i64: 1, 8, 2, 64>}, {transform_indices = @transform_1, window_bounds = array<i64: 1, 16, 64>}, {transform_indices = @transform_2, window_bounds = array<i64: 1, 8, 2, 16>}]} {
    %c0_i32 = arith.constant 0 : i32
    %0 = arith.cmpi eq, %arg1, %c0_i32 : i32
    %1 = arith.extui %0 : i1 to i32
    %c0_i32_0 = arith.constant 0 : i32
    %2 = arith.cmpi ne, %1, %c0_i32_0 : i32
    scf.if %2 {
      %cst_163 = arith.constant 0.000000e+00 : f32
      %349 = vector.broadcast %cst_163 : f32 to vector<2x16xf32>
      %c0_164 = arith.constant 0 : index
      %c0_165 = arith.constant 0 : index
      %350 = vector.load %arg5[%c0_164, %c0_165] : memref<2x16xf32, #tpu.memory_space<vmem>>, vector<2x16xf32>
      tpu.vector_store %arg5[%c0_164, %c0_165], %349 {strides = array<i32>} : memref<2x16xf32, #tpu.memory_space<vmem>>, vector<2x16xf32>,
      %cst_166 = arith.constant 0.000000e+00 : f32
      %351 = vector.broadcast %cst_166 : f32 to vector<2x16xf32>
      %c0_167 = arith.constant 0 : index
      %c0_168 = arith.constant 0 : index
      %352 = vector.load %arg6[%c0_167, %c0_168] : memref<2x16xf32, #tpu.memory_space<vmem>>, vector<2x16xf32>
      tpu.vector_store %arg6[%c0_167, %c0_168], %351 {strides = array<i32>} : memref<2x16xf32, #tpu.memory_space<vmem>>, vector<2x16xf32>,
    } else {
    }
    %c0 = arith.constant 0 : index
    %c0_1 = arith.constant 0 : index
    %c0_2 = arith.constant 0 : index
    %3 = vector.load %arg3[%c0, %c0_1, %c0_2] : memref<1x16x64xf32, #tpu.memory_space<vmem>>, vector<1x16x64xf32>
    %4 = vector.shape_cast %3 : vector<1x16x64xf32> to vector<16x64xf32>
    %c0_i32_3 = arith.constant 0 : i32
    %c1_i32 = arith.constant 1 : i32
    %5 = arith.subi %c1_i32, %arg0 : i32
    %6 = arith.muli %5, %c0_i32_3 : i32
    %c7_i32 = arith.constant 7 : i32
    %7 = arith.subi %c7_i32, %c0_i32_3 : i32
    %8 = arith.muli %arg0, %7 : i32
    %9 = arith.addi %6, %8 : i32
    %c0_4 = arith.constant 0 : index
    %10 = arith.index_cast %9 : i32 to index
    %c0_5 = arith.constant 0 : index
    %c0_6 = arith.constant 0 : index
    %11 = vector.load %arg2[%c0_4, %10, %c0_5, %c0_6] : memref<1x8x2x64xf32, #tpu.memory_space<vmem>>, vector<1x1x2x64xf32>
    %12 = vector.shape_cast %11 : vector<1x1x2x64xf32> to vector<2x64xf32>
    %c0_7 = arith.constant 0 : index
    %c0_8 = arith.constant 0 : index
    %13 = vector.load %arg5[%c0_7, %c0_8] : memref<2x16xf32, #tpu.memory_space<vmem>>, vector<2x16xf32>
    %cst = arith.constant dense<0.000000e+00> : vector<2x64xf32>
    %14 = tpu.matmul %13, %4, %cst {dimension_numbers = #tpu.dot_dimension_numbers<[1], [0], [0], [1], [0, 0, 1, 1], [], []>} : vector<2x16xf32>, vector<16x64xf32>, vector<2x64xf32> -> vector<2x64xf32>
    %15 = arith.addf %12, %14 : vector<2x64xf32>
    %16 = vector.extract_strided_slice %15 {offsets = [0, 0], sizes = [2, 16], strides = [1, 1]} : vector<2x64xf32> to vector<2x16xf32>
    %17 = arith.negf %16 : vector<2x16xf32>
    %18 = math.exp %17 : vector<2x16xf32>
    %cst_9 = arith.constant 1.000000e+00 : f32
    %19 = vector.broadcast %cst_9 : f32 to vector<2x16xf32>
    %20 = arith.addf %19, %18 : vector<2x16xf32>
    %21 = arith.divf %19, %20 : vector<2x16xf32>
    %22 = vector.extract_strided_slice %15 {offsets = [0, 16], sizes = [2, 16], strides = [1, 1]} : vector<2x64xf32> to vector<2x16xf32>
    %23 = arith.negf %22 : vector<2x16xf32>
    %24 = math.exp %23 : vector<2x16xf32>
    %cst_10 = arith.constant 1.000000e+00 : f32
    %25 = vector.broadcast %cst_10 : f32 to vector<2x16xf32>
    %26 = arith.addf %25, %24 : vector<2x16xf32>
    %27 = arith.divf %25, %26 : vector<2x16xf32>
    %28 = vector.extract_strided_slice %15 {offsets = [0, 32], sizes = [2, 16], strides = [1, 1]} : vector<2x64xf32> to vector<2x16xf32>
    %29 = math.tanh %28 : vector<2x16xf32>
    %30 = vector.extract_strided_slice %15 {offsets = [0, 48], sizes = [2, 16], strides = [1, 1]} : vector<2x64xf32> to vector<2x16xf32>
    %31 = arith.negf %30 : vector<2x16xf32>
    %32 = math.exp %31 : vector<2x16xf32>
    %cst_11 = arith.constant 1.000000e+00 : f32
    %33 = vector.broadcast %cst_11 : f32 to vector<2x16xf32>
    %34 = arith.addf %33, %32 : vector<2x16xf32>
    %35 = arith.divf %33, %34 : vector<2x16xf32>
    %c0_12 = arith.constant 0 : index
    %c0_13 = arith.constant 0 : index
    %36 = vector.load %arg6[%c0_12, %c0_13] : memref<2x16xf32, #tpu.memory_space<vmem>>, vector<2x16xf32>
    %37 = arith.mulf %27, %36 : vector<2x16xf32>
    %38 = arith.mulf %21, %29 : vector<2x16xf32>
    %39 = arith.addf %37, %38 : vector<2x16xf32>
    %40 = math.tanh %39 : vector<2x16xf32>
    %41 = arith.mulf %35, %40 : vector<2x16xf32>
    %c0_14 = arith.constant 0 : index
    %c0_15 = arith.constant 0 : index
    %42 = vector.load %arg6[%c0_14, %c0_15] : memref<2x16xf32, #tpu.memory_space<vmem>>, vector<2x16xf32>
    tpu.vector_store %arg6[%c0_14, %c0_15], %39 {strides = array<i32>} : memref<2x16xf32, #tpu.memory_space<vmem>>, vector<2x16xf32>,
    %c0_16 = arith.constant 0 : index
    %c0_17 = arith.constant 0 : index
    %43 = vector.load %arg5[%c0_16, %c0_17] : memref<2x16xf32, #tpu.memory_space<vmem>>, vector<2x16xf32>
    tpu.vector_store %arg5[%c0_16, %c0_17], %41 {strides = array<i32>} : memref<2x16xf32, #tpu.memory_space<vmem>>, vector<2x16xf32>,
    %c0_18 = arith.constant 0 : index
    %44 = arith.index_cast %9 : i32 to index
    %c0_19 = arith.constant 0 : index
    %c0_20 = arith.constant 0 : index
    %45 = vector.load %arg4[%c0_18, %44, %c0_19, %c0_20] : memref<1x8x2x16xf32, #tpu.memory_space<vmem>>, vector<1x1x2x16xf32>
    %46 = vector.shape_cast %45 : vector<1x1x2x16xf32> to vector<2x16xf32>
    %47 = vector.shape_cast %41 : vector<2x16xf32> to vector<1x1x2x16xf32>
    tpu.vector_store %arg4[%c0_18, %44, %c0_19, %c0_20], %47 {strides = array<i32>} : memref<1x8x2x16xf32, #tpu.memory_space<vmem>>, vector<1x1x2x16xf32>,
    %c1_i32_21 = arith.constant 1 : i32
    %c1_i32_22 = arith.constant 1 : i32
    %48 = arith.subi %c1_i32_22, %arg0 : i32
    %49 = arith.muli %48, %c1_i32_21 : i32
    %c7_i32_23 = arith.constant 7 : i32
    %50 = arith.subi %c7_i32_23, %c1_i32_21 : i32
    %51 = arith.muli %arg0, %50 : i32
    %52 = arith.addi %49, %51 : i32
    %c0_24 = arith.constant 0 : index
    %53 = arith.index_cast %52 : i32 to index
    %c0_25 = arith.constant 0 : index
    %c0_26 = arith.constant 0 : index
    %54 = vector.load %arg2[%c0_24, %53, %c0_25, %c0_26] : memref<1x8x2x64xf32, #tpu.memory_space<vmem>>, vector<1x1x2x64xf32>
    %55 = vector.shape_cast %54 : vector<1x1x2x64xf32> to vector<2x64xf32>
    %c0_27 = arith.constant 0 : index
    %c0_28 = arith.constant 0 : index
    %56 = vector.load %arg5[%c0_27, %c0_28] : memref<2x16xf32, #tpu.memory_space<vmem>>, vector<2x16xf32>
    %cst_29 = arith.constant dense<0.000000e+00> : vector<2x64xf32>
    %57 = tpu.matmul %56, %4, %cst_29 {dimension_numbers = #tpu.dot_dimension_numbers<[1], [0], [0], [1], [0, 0, 1, 1], [], []>} : vector<2x16xf32>, vector<16x64xf32>, vector<2x64xf32> -> vector<2x64xf32>
    %58 = arith.addf %55, %57 : vector<2x64xf32>
    %59 = vector.extract_strided_slice %58 {offsets = [0, 0], sizes = [2, 16], strides = [1, 1]} : vector<2x64xf32> to vector<2x16xf32>
    %60 = arith.negf %59 : vector<2x16xf32>
    %61 = math.exp %60 : vector<2x16xf32>
    %cst_30 = arith.constant 1.000000e+00 : f32
    %62 = vector.broadcast %cst_30 : f32 to vector<2x16xf32>
    %63 = arith.addf %62, %61 : vector<2x16xf32>
    %64 = arith.divf %62, %63 : vector<2x16xf32>
    %65 = vector.extract_strided_slice %58 {offsets = [0, 16], sizes = [2, 16], strides = [1, 1]} : vector<2x64xf32> to vector<2x16xf32>
    %66 = arith.negf %65 : vector<2x16xf32>
    %67 = math.exp %66 : vector<2x16xf32>
    %cst_31 = arith.constant 1.000000e+00 : f32
    %68 = vector.broadcast %cst_31 : f32 to vector<2x16xf32>
    %69 = arith.addf %68, %67 : vector<2x16xf32>
    %70 = arith.divf %68, %69 : vector<2x16xf32>
    %71 = vector.extract_strided_slice %58 {offsets = [0, 32], sizes = [2, 16], strides = [1, 1]} : vector<2x64xf32> to vector<2x16xf32>
    %72 = math.tanh %71 : vector<2x16xf32>
    %73 = vector.extract_strided_slice %58 {offsets = [0, 48], sizes = [2, 16], strides = [1, 1]} : vector<2x64xf32> to vector<2x16xf32>
    %74 = arith.negf %73 : vector<2x16xf32>
    %75 = math.exp %74 : vector<2x16xf32>
    %cst_32 = arith.constant 1.000000e+00 : f32
    %76 = vector.broadcast %cst_32 : f32 to vector<2x16xf32>
    %77 = arith.addf %76, %75 : vector<2x16xf32>
    %78 = arith.divf %76, %77 : vector<2x16xf32>
    %c0_33 = arith.constant 0 : index
    %c0_34 = arith.constant 0 : index
    %79 = vector.load %arg6[%c0_33, %c0_34] : memref<2x16xf32, #tpu.memory_space<vmem>>, vector<2x16xf32>
    %80 = arith.mulf %70, %79 : vector<2x16xf32>
    %81 = arith.mulf %64, %72 : vector<2x16xf32>
    %82 = arith.addf %80, %81 : vector<2x16xf32>
    %83 = math.tanh %82 : vector<2x16xf32>
    %84 = arith.mulf %78, %83 : vector<2x16xf32>
    %c0_35 = arith.constant 0 : index
    %c0_36 = arith.constant 0 : index
    %85 = vector.load %arg6[%c0_35, %c0_36] : memref<2x16xf32, #tpu.memory_space<vmem>>, vector<2x16xf32>
    tpu.vector_store %arg6[%c0_35, %c0_36], %82 {strides = array<i32>} : memref<2x16xf32, #tpu.memory_space<vmem>>, vector<2x16xf32>,
    %c0_37 = arith.constant 0 : index
    %c0_38 = arith.constant 0 : index
    %86 = vector.load %arg5[%c0_37, %c0_38] : memref<2x16xf32, #tpu.memory_space<vmem>>, vector<2x16xf32>
    tpu.vector_store %arg5[%c0_37, %c0_38], %84 {strides = array<i32>} : memref<2x16xf32, #tpu.memory_space<vmem>>, vector<2x16xf32>,
    %c0_39 = arith.constant 0 : index
    %87 = arith.index_cast %52 : i32 to index
    %c0_40 = arith.constant 0 : index
    %c0_41 = arith.constant 0 : index
    %88 = vector.load %arg4[%c0_39, %87, %c0_40, %c0_41] : memref<1x8x2x16xf32, #tpu.memory_space<vmem>>, vector<1x1x2x16xf32>
    %89 = vector.shape_cast %88 : vector<1x1x2x16xf32> to vector<2x16xf32>
    %90 = vector.shape_cast %84 : vector<2x16xf32> to vector<1x1x2x16xf32>
    tpu.vector_store %arg4[%c0_39, %87, %c0_40, %c0_41], %90 {strides = array<i32>} : memref<1x8x2x16xf32, #tpu.memory_space<vmem>>, vector<1x1x2x16xf32>,
    %c2_i32 = arith.constant 2 : i32
    %c1_i32_42 = arith.constant 1 : i32
    %91 = arith.subi %c1_i32_42, %arg0 : i32
    %92 = arith.muli %91, %c2_i32 : i32
    %c7_i32_43 = arith.constant 7 : i32
    %93 = arith.subi %c7_i32_43, %c2_i32 : i32
    %94 = arith.muli %arg0, %93 : i32
    %95 = arith.addi %92, %94 : i32
    %c0_44 = arith.constant 0 : index
    %96 = arith.index_cast %95 : i32 to index
    %c0_45 = arith.constant 0 : index
    %c0_46 = arith.constant 0 : index
    %97 = vector.load %arg2[%c0_44, %96, %c0_45, %c0_46] : memref<1x8x2x64xf32, #tpu.memory_space<vmem>>, vector<1x1x2x64xf32>
    %98 = vector.shape_cast %97 : vector<1x1x2x64xf32> to vector<2x64xf32>
    %c0_47 = arith.constant 0 : index
    %c0_48 = arith.constant 0 : index
    %99 = vector.load %arg5[%c0_47, %c0_48] : memref<2x16xf32, #tpu.memory_space<vmem>>, vector<2x16xf32>
    %cst_49 = arith.constant dense<0.000000e+00> : vector<2x64xf32>
    %100 = tpu.matmul %99, %4, %cst_49 {dimension_numbers = #tpu.dot_dimension_numbers<[1], [0], [0], [1], [0, 0, 1, 1], [], []>} : vector<2x16xf32>, vector<16x64xf32>, vector<2x64xf32> -> vector<2x64xf32>
    %101 = arith.addf %98, %100 : vector<2x64xf32>
    %102 = vector.extract_strided_slice %101 {offsets = [0, 0], sizes = [2, 16], strides = [1, 1]} : vector<2x64xf32> to vector<2x16xf32>
    %103 = arith.negf %102 : vector<2x16xf32>
    %104 = math.exp %103 : vector<2x16xf32>
    %cst_50 = arith.constant 1.000000e+00 : f32
    %105 = vector.broadcast %cst_50 : f32 to vector<2x16xf32>
    %106 = arith.addf %105, %104 : vector<2x16xf32>
    %107 = arith.divf %105, %106 : vector<2x16xf32>
    %108 = vector.extract_strided_slice %101 {offsets = [0, 16], sizes = [2, 16], strides = [1, 1]} : vector<2x64xf32> to vector<2x16xf32>
    %109 = arith.negf %108 : vector<2x16xf32>
    %110 = math.exp %109 : vector<2x16xf32>
    %cst_51 = arith.constant 1.000000e+00 : f32
    %111 = vector.broadcast %cst_51 : f32 to vector<2x16xf32>
    %112 = arith.addf %111, %110 : vector<2x16xf32>
    %113 = arith.divf %111, %112 : vector<2x16xf32>
    %114 = vector.extract_strided_slice %101 {offsets = [0, 32], sizes = [2, 16], strides = [1, 1]} : vector<2x64xf32> to vector<2x16xf32>
    %115 = math.tanh %114 : vector<2x16xf32>
    %116 = vector.extract_strided_slice %101 {offsets = [0, 48], sizes = [2, 16], strides = [1, 1]} : vector<2x64xf32> to vector<2x16xf32>
    %117 = arith.negf %116 : vector<2x16xf32>
    %118 = math.exp %117 : vector<2x16xf32>
    %cst_52 = arith.constant 1.000000e+00 : f32
    %119 = vector.broadcast %cst_52 : f32 to vector<2x16xf32>
    %120 = arith.addf %119, %118 : vector<2x16xf32>
    %121 = arith.divf %119, %120 : vector<2x16xf32>
    %c0_53 = arith.constant 0 : index
    %c0_54 = arith.constant 0 : index
    %122 = vector.load %arg6[%c0_53, %c0_54] : memref<2x16xf32, #tpu.memory_space<vmem>>, vector<2x16xf32>
    %123 = arith.mulf %113, %122 : vector<2x16xf32>
    %124 = arith.mulf %107, %115 : vector<2x16xf32>
    %125 = arith.addf %123, %124 : vector<2x16xf32>
    %126 = math.tanh %125 : vector<2x16xf32>
    %127 = arith.mulf %121, %126 : vector<2x16xf32>
    %c0_55 = arith.constant 0 : index
    %c0_56 = arith.constant 0 : index
    %128 = vector.load %arg6[%c0_55, %c0_56] : memref<2x16xf32, #tpu.memory_space<vmem>>, vector<2x16xf32>
    tpu.vector_store %arg6[%c0_55, %c0_56], %125 {strides = array<i32>} : memref<2x16xf32, #tpu.memory_space<vmem>>, vector<2x16xf32>,
    %c0_57 = arith.constant 0 : index
    %c0_58 = arith.constant 0 : index
    %129 = vector.load %arg5[%c0_57, %c0_58] : memref<2x16xf32, #tpu.memory_space<vmem>>, vector<2x16xf32>
    tpu.vector_store %arg5[%c0_57, %c0_58], %127 {strides = array<i32>} : memref<2x16xf32, #tpu.memory_space<vmem>>, vector<2x16xf32>,
    %c0_59 = arith.constant 0 : index
    %130 = arith.index_cast %95 : i32 to index
    %c0_60 = arith.constant 0 : index
    %c0_61 = arith.constant 0 : index
    %131 = vector.load %arg4[%c0_59, %130, %c0_60, %c0_61] : memref<1x8x2x16xf32, #tpu.memory_space<vmem>>, vector<1x1x2x16xf32>
    %132 = vector.shape_cast %131 : vector<1x1x2x16xf32> to vector<2x16xf32>
    %133 = vector.shape_cast %127 : vector<2x16xf32> to vector<1x1x2x16xf32>
    tpu.vector_store %arg4[%c0_59, %130, %c0_60, %c0_61], %133 {strides = array<i32>} : memref<1x8x2x16xf32, #tpu.memory_space<vmem>>, vector<1x1x2x16xf32>,
    %c3_i32 = arith.constant 3 : i32
    %c1_i32_62 = arith.constant 1 : i32
    %134 = arith.subi %c1_i32_62, %arg0 : i32
    %135 = arith.muli %134, %c3_i32 : i32
    %c7_i32_63 = arith.constant 7 : i32
    %136 = arith.subi %c7_i32_63, %c3_i32 : i32
    %137 = arith.muli %arg0, %136 : i32
    %138 = arith.addi %135, %137 : i32
    %c0_64 = arith.constant 0 : index
    %139 = arith.index_cast %138 : i32 to index
    %c0_65 = arith.constant 0 : index
    %c0_66 = arith.constant 0 : index
    %140 = vector.load %arg2[%c0_64, %139, %c0_65, %c0_66] : memref<1x8x2x64xf32, #tpu.memory_space<vmem>>, vector<1x1x2x64xf32>
    %141 = vector.shape_cast %140 : vector<1x1x2x64xf32> to vector<2x64xf32>
    %c0_67 = arith.constant 0 : index
    %c0_68 = arith.constant 0 : index
    %142 = vector.load %arg5[%c0_67, %c0_68] : memref<2x16xf32, #tpu.memory_space<vmem>>, vector<2x16xf32>
    %cst_69 = arith.constant dense<0.000000e+00> : vector<2x64xf32>
    %143 = tpu.matmul %142, %4, %cst_69 {dimension_numbers = #tpu.dot_dimension_numbers<[1], [0], [0], [1], [0, 0, 1, 1], [], []>} : vector<2x16xf32>, vector<16x64xf32>, vector<2x64xf32> -> vector<2x64xf32>
    %144 = arith.addf %141, %143 : vector<2x64xf32>
    %145 = vector.extract_strided_slice %144 {offsets = [0, 0], sizes = [2, 16], strides = [1, 1]} : vector<2x64xf32> to vector<2x16xf32>
    %146 = arith.negf %145 : vector<2x16xf32>
    %147 = math.exp %146 : vector<2x16xf32>
    %cst_70 = arith.constant 1.000000e+00 : f32
    %148 = vector.broadcast %cst_70 : f32 to vector<2x16xf32>
    %149 = arith.addf %148, %147 : vector<2x16xf32>
    %150 = arith.divf %148, %149 : vector<2x16xf32>
    %151 = vector.extract_strided_slice %144 {offsets = [0, 16], sizes = [2, 16], strides = [1, 1]} : vector<2x64xf32> to vector<2x16xf32>
    %152 = arith.negf %151 : vector<2x16xf32>
    %153 = math.exp %152 : vector<2x16xf32>
    %cst_71 = arith.constant 1.000000e+00 : f32
    %154 = vector.broadcast %cst_71 : f32 to vector<2x16xf32>
    %155 = arith.addf %154, %153 : vector<2x16xf32>
    %156 = arith.divf %154, %155 : vector<2x16xf32>
    %157 = vector.extract_strided_slice %144 {offsets = [0, 32], sizes = [2, 16], strides = [1, 1]} : vector<2x64xf32> to vector<2x16xf32>
    %158 = math.tanh %157 : vector<2x16xf32>
    %159 = vector.extract_strided_slice %144 {offsets = [0, 48], sizes = [2, 16], strides = [1, 1]} : vector<2x64xf32> to vector<2x16xf32>
    %160 = arith.negf %159 : vector<2x16xf32>
    %161 = math.exp %160 : vector<2x16xf32>
    %cst_72 = arith.constant 1.000000e+00 : f32
    %162 = vector.broadcast %cst_72 : f32 to vector<2x16xf32>
    %163 = arith.addf %162, %161 : vector<2x16xf32>
    %164 = arith.divf %162, %163 : vector<2x16xf32>
    %c0_73 = arith.constant 0 : index
    %c0_74 = arith.constant 0 : index
    %165 = vector.load %arg6[%c0_73, %c0_74] : memref<2x16xf32, #tpu.memory_space<vmem>>, vector<2x16xf32>
    %166 = arith.mulf %156, %165 : vector<2x16xf32>
    %167 = arith.mulf %150, %158 : vector<2x16xf32>
    %168 = arith.addf %166, %167 : vector<2x16xf32>
    %169 = math.tanh %168 : vector<2x16xf32>
    %170 = arith.mulf %164, %169 : vector<2x16xf32>
    %c0_75 = arith.constant 0 : index
    %c0_76 = arith.constant 0 : index
    %171 = vector.load %arg6[%c0_75, %c0_76] : memref<2x16xf32, #tpu.memory_space<vmem>>, vector<2x16xf32>
    tpu.vector_store %arg6[%c0_75, %c0_76], %168 {strides = array<i32>} : memref<2x16xf32, #tpu.memory_space<vmem>>, vector<2x16xf32>,
    %c0_77 = arith.constant 0 : index
    %c0_78 = arith.constant 0 : index
    %172 = vector.load %arg5[%c0_77, %c0_78] : memref<2x16xf32, #tpu.memory_space<vmem>>, vector<2x16xf32>
    tpu.vector_store %arg5[%c0_77, %c0_78], %170 {strides = array<i32>} : memref<2x16xf32, #tpu.memory_space<vmem>>, vector<2x16xf32>,
    %c0_79 = arith.constant 0 : index
    %173 = arith.index_cast %138 : i32 to index
    %c0_80 = arith.constant 0 : index
    %c0_81 = arith.constant 0 : index
    %174 = vector.load %arg4[%c0_79, %173, %c0_80, %c0_81] : memref<1x8x2x16xf32, #tpu.memory_space<vmem>>, vector<1x1x2x16xf32>
    %175 = vector.shape_cast %174 : vector<1x1x2x16xf32> to vector<2x16xf32>
    %176 = vector.shape_cast %170 : vector<2x16xf32> to vector<1x1x2x16xf32>
    tpu.vector_store %arg4[%c0_79, %173, %c0_80, %c0_81], %176 {strides = array<i32>} : memref<1x8x2x16xf32, #tpu.memory_space<vmem>>, vector<1x1x2x16xf32>,
    %c4_i32 = arith.constant 4 : i32
    %c1_i32_82 = arith.constant 1 : i32
    %177 = arith.subi %c1_i32_82, %arg0 : i32
    %178 = arith.muli %177, %c4_i32 : i32
    %c7_i32_83 = arith.constant 7 : i32
    %179 = arith.subi %c7_i32_83, %c4_i32 : i32
    %180 = arith.muli %arg0, %179 : i32
    %181 = arith.addi %178, %180 : i32
    %c0_84 = arith.constant 0 : index
    %182 = arith.index_cast %181 : i32 to index
    %c0_85 = arith.constant 0 : index
    %c0_86 = arith.constant 0 : index
    %183 = vector.load %arg2[%c0_84, %182, %c0_85, %c0_86] : memref<1x8x2x64xf32, #tpu.memory_space<vmem>>, vector<1x1x2x64xf32>
    %184 = vector.shape_cast %183 : vector<1x1x2x64xf32> to vector<2x64xf32>
    %c0_87 = arith.constant 0 : index
    %c0_88 = arith.constant 0 : index
    %185 = vector.load %arg5[%c0_87, %c0_88] : memref<2x16xf32, #tpu.memory_space<vmem>>, vector<2x16xf32>
    %cst_89 = arith.constant dense<0.000000e+00> : vector<2x64xf32>
    %186 = tpu.matmul %185, %4, %cst_89 {dimension_numbers = #tpu.dot_dimension_numbers<[1], [0], [0], [1], [0, 0, 1, 1], [], []>} : vector<2x16xf32>, vector<16x64xf32>, vector<2x64xf32> -> vector<2x64xf32>
    %187 = arith.addf %184, %186 : vector<2x64xf32>
    %188 = vector.extract_strided_slice %187 {offsets = [0, 0], sizes = [2, 16], strides = [1, 1]} : vector<2x64xf32> to vector<2x16xf32>
    %189 = arith.negf %188 : vector<2x16xf32>
    %190 = math.exp %189 : vector<2x16xf32>
    %cst_90 = arith.constant 1.000000e+00 : f32
    %191 = vector.broadcast %cst_90 : f32 to vector<2x16xf32>
    %192 = arith.addf %191, %190 : vector<2x16xf32>
    %193 = arith.divf %191, %192 : vector<2x16xf32>
    %194 = vector.extract_strided_slice %187 {offsets = [0, 16], sizes = [2, 16], strides = [1, 1]} : vector<2x64xf32> to vector<2x16xf32>
    %195 = arith.negf %194 : vector<2x16xf32>
    %196 = math.exp %195 : vector<2x16xf32>
    %cst_91 = arith.constant 1.000000e+00 : f32
    %197 = vector.broadcast %cst_91 : f32 to vector<2x16xf32>
    %198 = arith.addf %197, %196 : vector<2x16xf32>
    %199 = arith.divf %197, %198 : vector<2x16xf32>
    %200 = vector.extract_strided_slice %187 {offsets = [0, 32], sizes = [2, 16], strides = [1, 1]} : vector<2x64xf32> to vector<2x16xf32>
    %201 = math.tanh %200 : vector<2x16xf32>
    %202 = vector.extract_strided_slice %187 {offsets = [0, 48], sizes = [2, 16], strides = [1, 1]} : vector<2x64xf32> to vector<2x16xf32>
    %203 = arith.negf %202 : vector<2x16xf32>
    %204 = math.exp %203 : vector<2x16xf32>
    %cst_92 = arith.constant 1.000000e+00 : f32
    %205 = vector.broadcast %cst_92 : f32 to vector<2x16xf32>
    %206 = arith.addf %205, %204 : vector<2x16xf32>
    %207 = arith.divf %205, %206 : vector<2x16xf32>
    %c0_93 = arith.constant 0 : index
    %c0_94 = arith.constant 0 : index
    %208 = vector.load %arg6[%c0_93, %c0_94] : memref<2x16xf32, #tpu.memory_space<vmem>>, vector<2x16xf32>
    %209 = arith.mulf %199, %208 : vector<2x16xf32>
    %210 = arith.mulf %193, %201 : vector<2x16xf32>
    %211 = arith.addf %209, %210 : vector<2x16xf32>
    %212 = math.tanh %211 : vector<2x16xf32>
    %213 = arith.mulf %207, %212 : vector<2x16xf32>
    %c0_95 = arith.constant 0 : index
    %c0_96 = arith.constant 0 : index
    %214 = vector.load %arg6[%c0_95, %c0_96] : memref<2x16xf32, #tpu.memory_space<vmem>>, vector<2x16xf32>
    tpu.vector_store %arg6[%c0_95, %c0_96], %211 {strides = array<i32>} : memref<2x16xf32, #tpu.memory_space<vmem>>, vector<2x16xf32>,
    %c0_97 = arith.constant 0 : index
    %c0_98 = arith.constant 0 : index
    %215 = vector.load %arg5[%c0_97, %c0_98] : memref<2x16xf32, #tpu.memory_space<vmem>>, vector<2x16xf32>
    tpu.vector_store %arg5[%c0_97, %c0_98], %213 {strides = array<i32>} : memref<2x16xf32, #tpu.memory_space<vmem>>, vector<2x16xf32>,
    %c0_99 = arith.constant 0 : index
    %216 = arith.index_cast %181 : i32 to index
    %c0_100 = arith.constant 0 : index
    %c0_101 = arith.constant 0 : index
    %217 = vector.load %arg4[%c0_99, %216, %c0_100, %c0_101] : memref<1x8x2x16xf32, #tpu.memory_space<vmem>>, vector<1x1x2x16xf32>
    %218 = vector.shape_cast %217 : vector<1x1x2x16xf32> to vector<2x16xf32>
    %219 = vector.shape_cast %213 : vector<2x16xf32> to vector<1x1x2x16xf32>
    tpu.vector_store %arg4[%c0_99, %216, %c0_100, %c0_101], %219 {strides = array<i32>} : memref<1x8x2x16xf32, #tpu.memory_space<vmem>>, vector<1x1x2x16xf32>,
    %c5_i32 = arith.constant 5 : i32
    %c1_i32_102 = arith.constant 1 : i32
    %220 = arith.subi %c1_i32_102, %arg0 : i32
    %221 = arith.muli %220, %c5_i32 : i32
    %c7_i32_103 = arith.constant 7 : i32
    %222 = arith.subi %c7_i32_103, %c5_i32 : i32
    %223 = arith.muli %arg0, %222 : i32
    %224 = arith.addi %221, %223 : i32
    %c0_104 = arith.constant 0 : index
    %225 = arith.index_cast %224 : i32 to index
    %c0_105 = arith.constant 0 : index
    %c0_106 = arith.constant 0 : index
    %226 = vector.load %arg2[%c0_104, %225, %c0_105, %c0_106] : memref<1x8x2x64xf32, #tpu.memory_space<vmem>>, vector<1x1x2x64xf32>
    %227 = vector.shape_cast %226 : vector<1x1x2x64xf32> to vector<2x64xf32>
    %c0_107 = arith.constant 0 : index
    %c0_108 = arith.constant 0 : index
    %228 = vector.load %arg5[%c0_107, %c0_108] : memref<2x16xf32, #tpu.memory_space<vmem>>, vector<2x16xf32>
    %cst_109 = arith.constant dense<0.000000e+00> : vector<2x64xf32>
    %229 = tpu.matmul %228, %4, %cst_109 {dimension_numbers = #tpu.dot_dimension_numbers<[1], [0], [0], [1], [0, 0, 1, 1], [], []>} : vector<2x16xf32>, vector<16x64xf32>, vector<2x64xf32> -> vector<2x64xf32>
    %230 = arith.addf %227, %229 : vector<2x64xf32>
    %231 = vector.extract_strided_slice %230 {offsets = [0, 0], sizes = [2, 16], strides = [1, 1]} : vector<2x64xf32> to vector<2x16xf32>
    %232 = arith.negf %231 : vector<2x16xf32>
    %233 = math.exp %232 : vector<2x16xf32>
    %cst_110 = arith.constant 1.000000e+00 : f32
    %234 = vector.broadcast %cst_110 : f32 to vector<2x16xf32>
    %235 = arith.addf %234, %233 : vector<2x16xf32>
    %236 = arith.divf %234, %235 : vector<2x16xf32>
    %237 = vector.extract_strided_slice %230 {offsets = [0, 16], sizes = [2, 16], strides = [1, 1]} : vector<2x64xf32> to vector<2x16xf32>
    %238 = arith.negf %237 : vector<2x16xf32>
    %239 = math.exp %238 : vector<2x16xf32>
    %cst_111 = arith.constant 1.000000e+00 : f32
    %240 = vector.broadcast %cst_111 : f32 to vector<2x16xf32>
    %241 = arith.addf %240, %239 : vector<2x16xf32>
    %242 = arith.divf %240, %241 : vector<2x16xf32>
    %243 = vector.extract_strided_slice %230 {offsets = [0, 32], sizes = [2, 16], strides = [1, 1]} : vector<2x64xf32> to vector<2x16xf32>
    %244 = math.tanh %243 : vector<2x16xf32>
    %245 = vector.extract_strided_slice %230 {offsets = [0, 48], sizes = [2, 16], strides = [1, 1]} : vector<2x64xf32> to vector<2x16xf32>
    %246 = arith.negf %245 : vector<2x16xf32>
    %247 = math.exp %246 : vector<2x16xf32>
    %cst_112 = arith.constant 1.000000e+00 : f32
    %248 = vector.broadcast %cst_112 : f32 to vector<2x16xf32>
    %249 = arith.addf %248, %247 : vector<2x16xf32>
    %250 = arith.divf %248, %249 : vector<2x16xf32>
    %c0_113 = arith.constant 0 : index
    %c0_114 = arith.constant 0 : index
    %251 = vector.load %arg6[%c0_113, %c0_114] : memref<2x16xf32, #tpu.memory_space<vmem>>, vector<2x16xf32>
    %252 = arith.mulf %242, %251 : vector<2x16xf32>
    %253 = arith.mulf %236, %244 : vector<2x16xf32>
    %254 = arith.addf %252, %253 : vector<2x16xf32>
    %255 = math.tanh %254 : vector<2x16xf32>
    %256 = arith.mulf %250, %255 : vector<2x16xf32>
    %c0_115 = arith.constant 0 : index
    %c0_116 = arith.constant 0 : index
    %257 = vector.load %arg6[%c0_115, %c0_116] : memref<2x16xf32, #tpu.memory_space<vmem>>, vector<2x16xf32>
    tpu.vector_store %arg6[%c0_115, %c0_116], %254 {strides = array<i32>} : memref<2x16xf32, #tpu.memory_space<vmem>>, vector<2x16xf32>,
    %c0_117 = arith.constant 0 : index
    %c0_118 = arith.constant 0 : index
    %258 = vector.load %arg5[%c0_117, %c0_118] : memref<2x16xf32, #tpu.memory_space<vmem>>, vector<2x16xf32>
    tpu.vector_store %arg5[%c0_117, %c0_118], %256 {strides = array<i32>} : memref<2x16xf32, #tpu.memory_space<vmem>>, vector<2x16xf32>,
    %c0_119 = arith.constant 0 : index
    %259 = arith.index_cast %224 : i32 to index
    %c0_120 = arith.constant 0 : index
    %c0_121 = arith.constant 0 : index
    %260 = vector.load %arg4[%c0_119, %259, %c0_120, %c0_121] : memref<1x8x2x16xf32, #tpu.memory_space<vmem>>, vector<1x1x2x16xf32>
    %261 = vector.shape_cast %260 : vector<1x1x2x16xf32> to vector<2x16xf32>
    %262 = vector.shape_cast %256 : vector<2x16xf32> to vector<1x1x2x16xf32>
    tpu.vector_store %arg4[%c0_119, %259, %c0_120, %c0_121], %262 {strides = array<i32>} : memref<1x8x2x16xf32, #tpu.memory_space<vmem>>, vector<1x1x2x16xf32>,
    %c6_i32 = arith.constant 6 : i32
    %c1_i32_122 = arith.constant 1 : i32
    %263 = arith.subi %c1_i32_122, %arg0 : i32
    %264 = arith.muli %263, %c6_i32 : i32
    %c7_i32_123 = arith.constant 7 : i32
    %265 = arith.subi %c7_i32_123, %c6_i32 : i32
    %266 = arith.muli %arg0, %265 : i32
    %267 = arith.addi %264, %266 : i32
    %c0_124 = arith.constant 0 : index
    %268 = arith.index_cast %267 : i32 to index
    %c0_125 = arith.constant 0 : index
    %c0_126 = arith.constant 0 : index
    %269 = vector.load %arg2[%c0_124, %268, %c0_125, %c0_126] : memref<1x8x2x64xf32, #tpu.memory_space<vmem>>, vector<1x1x2x64xf32>
    %270 = vector.shape_cast %269 : vector<1x1x2x64xf32> to vector<2x64xf32>
    %c0_127 = arith.constant 0 : index
    %c0_128 = arith.constant 0 : index
    %271 = vector.load %arg5[%c0_127, %c0_128] : memref<2x16xf32, #tpu.memory_space<vmem>>, vector<2x16xf32>
    %cst_129 = arith.constant dense<0.000000e+00> : vector<2x64xf32>
    %272 = tpu.matmul %271, %4, %cst_129 {dimension_numbers = #tpu.dot_dimension_numbers<[1], [0], [0], [1], [0, 0, 1, 1], [], []>} : vector<2x16xf32>, vector<16x64xf32>, vector<2x64xf32> -> vector<2x64xf32>
    %273 = arith.addf %270, %272 : vector<2x64xf32>
    %274 = vector.extract_strided_slice %273 {offsets = [0, 0], sizes = [2, 16], strides = [1, 1]} : vector<2x64xf32> to vector<2x16xf32>
    %275 = arith.negf %274 : vector<2x16xf32>
    %276 = math.exp %275 : vector<2x16xf32>
    %cst_130 = arith.constant 1.000000e+00 : f32
    %277 = vector.broadcast %cst_130 : f32 to vector<2x16xf32>
    %278 = arith.addf %277, %276 : vector<2x16xf32>
    %279 = arith.divf %277, %278 : vector<2x16xf32>
    %280 = vector.extract_strided_slice %273 {offsets = [0, 16], sizes = [2, 16], strides = [1, 1]} : vector<2x64xf32> to vector<2x16xf32>
    %281 = arith.negf %280 : vector<2x16xf32>
    %282 = math.exp %281 : vector<2x16xf32>
    %cst_131 = arith.constant 1.000000e+00 : f32
    %283 = vector.broadcast %cst_131 : f32 to vector<2x16xf32>
    %284 = arith.addf %283, %282 : vector<2x16xf32>
    %285 = arith.divf %283, %284 : vector<2x16xf32>
    %286 = vector.extract_strided_slice %273 {offsets = [0, 32], sizes = [2, 16], strides = [1, 1]} : vector<2x64xf32> to vector<2x16xf32>
    %287 = math.tanh %286 : vector<2x16xf32>
    %288 = vector.extract_strided_slice %273 {offsets = [0, 48], sizes = [2, 16], strides = [1, 1]} : vector<2x64xf32> to vector<2x16xf32>
    %289 = arith.negf %288 : vector<2x16xf32>
    %290 = math.exp %289 : vector<2x16xf32>
    %cst_132 = arith.constant 1.000000e+00 : f32
    %291 = vector.broadcast %cst_132 : f32 to vector<2x16xf32>
    %292 = arith.addf %291, %290 : vector<2x16xf32>
    %293 = arith.divf %291, %292 : vector<2x16xf32>
    %c0_133 = arith.constant 0 : index
    %c0_134 = arith.constant 0 : index
    %294 = vector.load %arg6[%c0_133, %c0_134] : memref<2x16xf32, #tpu.memory_space<vmem>>, vector<2x16xf32>
    %295 = arith.mulf %285, %294 : vector<2x16xf32>
    %296 = arith.mulf %279, %287 : vector<2x16xf32>
    %297 = arith.addf %295, %296 : vector<2x16xf32>
    %298 = math.tanh %297 : vector<2x16xf32>
    %299 = arith.mulf %293, %298 : vector<2x16xf32>
    %c0_135 = arith.constant 0 : index
    %c0_136 = arith.constant 0 : index
    %300 = vector.load %arg6[%c0_135, %c0_136] : memref<2x16xf32, #tpu.memory_space<vmem>>, vector<2x16xf32>
    tpu.vector_store %arg6[%c0_135, %c0_136], %297 {strides = array<i32>} : memref<2x16xf32, #tpu.memory_space<vmem>>, vector<2x16xf32>,
    %c0_137 = arith.constant 0 : index
    %c0_138 = arith.constant 0 : index
    %301 = vector.load %arg5[%c0_137, %c0_138] : memref<2x16xf32, #tpu.memory_space<vmem>>, vector<2x16xf32>
    tpu.vector_store %arg5[%c0_137, %c0_138], %299 {strides = array<i32>} : memref<2x16xf32, #tpu.memory_space<vmem>>, vector<2x16xf32>,
    %c0_139 = arith.constant 0 : index
    %302 = arith.index_cast %267 : i32 to index
    %c0_140 = arith.constant 0 : index
    %c0_141 = arith.constant 0 : index
    %303 = vector.load %arg4[%c0_139, %302, %c0_140, %c0_141] : memref<1x8x2x16xf32, #tpu.memory_space<vmem>>, vector<1x1x2x16xf32>
    %304 = vector.shape_cast %303 : vector<1x1x2x16xf32> to vector<2x16xf32>
    %305 = vector.shape_cast %299 : vector<2x16xf32> to vector<1x1x2x16xf32>
    tpu.vector_store %arg4[%c0_139, %302, %c0_140, %c0_141], %305 {strides = array<i32>} : memref<1x8x2x16xf32, #tpu.memory_space<vmem>>, vector<1x1x2x16xf32>,
    %c7_i32_142 = arith.constant 7 : i32
    %c1_i32_143 = arith.constant 1 : i32
    %306 = arith.subi %c1_i32_143, %arg0 : i32
    %307 = arith.muli %306, %c7_i32_142 : i32
    %c7_i32_144 = arith.constant 7 : i32
    %308 = arith.subi %c7_i32_144, %c7_i32_142 : i32
    %309 = arith.muli %arg0, %308 : i32
    %310 = arith.addi %307, %309 : i32
    %c0_145 = arith.constant 0 : index
    %311 = arith.index_cast %310 : i32 to index
    %c0_146 = arith.constant 0 : index
    %c0_147 = arith.constant 0 : index
    %312 = vector.load %arg2[%c0_145, %311, %c0_146, %c0_147] : memref<1x8x2x64xf32, #tpu.memory_space<vmem>>, vector<1x1x2x64xf32>
    %313 = vector.shape_cast %312 : vector<1x1x2x64xf32> to vector<2x64xf32>
    %c0_148 = arith.constant 0 : index
    %c0_149 = arith.constant 0 : index
    %314 = vector.load %arg5[%c0_148, %c0_149] : memref<2x16xf32, #tpu.memory_space<vmem>>, vector<2x16xf32>
    %cst_150 = arith.constant dense<0.000000e+00> : vector<2x64xf32>
    %315 = tpu.matmul %314, %4, %cst_150 {dimension_numbers = #tpu.dot_dimension_numbers<[1], [0], [0], [1], [0, 0, 1, 1], [], []>} : vector<2x16xf32>, vector<16x64xf32>, vector<2x64xf32> -> vector<2x64xf32>
    %316 = arith.addf %313, %315 : vector<2x64xf32>
    %317 = vector.extract_strided_slice %316 {offsets = [0, 0], sizes = [2, 16], strides = [1, 1]} : vector<2x64xf32> to vector<2x16xf32>
    %318 = arith.negf %317 : vector<2x16xf32>
    %319 = math.exp %318 : vector<2x16xf32>
    %cst_151 = arith.constant 1.000000e+00 : f32
    %320 = vector.broadcast %cst_151 : f32 to vector<2x16xf32>
    %321 = arith.addf %320, %319 : vector<2x16xf32>
    %322 = arith.divf %320, %321 : vector<2x16xf32>
    %323 = vector.extract_strided_slice %316 {offsets = [0, 16], sizes = [2, 16], strides = [1, 1]} : vector<2x64xf32> to vector<2x16xf32>
    %324 = arith.negf %323 : vector<2x16xf32>
    %325 = math.exp %324 : vector<2x16xf32>
    %cst_152 = arith.constant 1.000000e+00 : f32
    %326 = vector.broadcast %cst_152 : f32 to vector<2x16xf32>
    %327 = arith.addf %326, %325 : vector<2x16xf32>
    %328 = arith.divf %326, %327 : vector<2x16xf32>
    %329 = vector.extract_strided_slice %316 {offsets = [0, 32], sizes = [2, 16], strides = [1, 1]} : vector<2x64xf32> to vector<2x16xf32>
    %330 = math.tanh %329 : vector<2x16xf32>
    %331 = vector.extract_strided_slice %316 {offsets = [0, 48], sizes = [2, 16], strides = [1, 1]} : vector<2x64xf32> to vector<2x16xf32>
    %332 = arith.negf %331 : vector<2x16xf32>
    %333 = math.exp %332 : vector<2x16xf32>
    %cst_153 = arith.constant 1.000000e+00 : f32
    %334 = vector.broadcast %cst_153 : f32 to vector<2x16xf32>
    %335 = arith.addf %334, %333 : vector<2x16xf32>
    %336 = arith.divf %334, %335 : vector<2x16xf32>
    %c0_154 = arith.constant 0 : index
    %c0_155 = arith.constant 0 : index
    %337 = vector.load %arg6[%c0_154, %c0_155] : memref<2x16xf32, #tpu.memory_space<vmem>>, vector<2x16xf32>
    %338 = arith.mulf %328, %337 : vector<2x16xf32>
    %339 = arith.mulf %322, %330 : vector<2x16xf32>
    %340 = arith.addf %338, %339 : vector<2x16xf32>
    %341 = math.tanh %340 : vector<2x16xf32>
    %342 = arith.mulf %336, %341 : vector<2x16xf32>
    %c0_156 = arith.constant 0 : index
    %c0_157 = arith.constant 0 : index
    %343 = vector.load %arg6[%c0_156, %c0_157] : memref<2x16xf32, #tpu.memory_space<vmem>>, vector<2x16xf32>
    tpu.vector_store %arg6[%c0_156, %c0_157], %340 {strides = array<i32>} : memref<2x16xf32, #tpu.memory_space<vmem>>, vector<2x16xf32>,
    %c0_158 = arith.constant 0 : index
    %c0_159 = arith.constant 0 : index
    %344 = vector.load %arg5[%c0_158, %c0_159] : memref<2x16xf32, #tpu.memory_space<vmem>>, vector<2x16xf32>
    tpu.vector_store %arg5[%c0_158, %c0_159], %342 {strides = array<i32>} : memref<2x16xf32, #tpu.memory_space<vmem>>, vector<2x16xf32>,
    %c0_160 = arith.constant 0 : index
    %345 = arith.index_cast %310 : i32 to index
    %c0_161 = arith.constant 0 : index
    %c0_162 = arith.constant 0 : index
    %346 = vector.load %arg4[%c0_160, %345, %c0_161, %c0_162] : memref<1x8x2x16xf32, #tpu.memory_space<vmem>>, vector<1x1x2x16xf32>
    %347 = vector.shape_cast %346 : vector<1x1x2x16xf32> to vector<2x16xf32>
    %348 = vector.shape_cast %342 : vector<2x16xf32> to vector<1x1x2x16xf32>
    tpu.vector_store %arg4[%c0_160, %345, %c0_161, %c0_162], %348 {strides = array<i32>} : memref<1x8x2x16xf32, #tpu.memory_space<vmem>>, vector<1x1x2x16xf32>,
    %c8_i32 = arith.constant 8 : i32
    return
  }
  func.func @transform_0(%arg0: i32, %arg1: i32) -> (i32, i32, i32, i32) {
    %c1_i32 = arith.constant 1 : i32
    %0 = arith.subi %c1_i32, %arg0 : i32
    %1 = arith.muli %0, %arg1 : i32
    %c0_i32 = arith.constant 0 : i32
    %2 = arith.subi %c0_i32, %arg1 : i32
    %3 = arith.muli %arg0, %2 : i32
    %4 = arith.addi %1, %3 : i32
    %c0_i32_0 = arith.constant 0 : i32
    %c0_i32_1 = arith.constant 0 : i32
    %c0_i32_2 = arith.constant 0 : i32
    return %arg0, %4, %c0_i32_0, %c0_i32_1 : i32, i32, i32, i32
  }
  func.func @transform_1(%arg0: i32, %arg1: i32) -> (i32, i32, i32) {
    %c0_i32 = arith.constant 0 : i32
    %c0_i32_0 = arith.constant 0 : i32
    %c0_i32_1 = arith.constant 0 : i32
    return %arg0, %c0_i32, %c0_i32_0 : i32, i32, i32
  }
  func.func @transform_2(%arg0: i32, %arg1: i32) -> (i32, i32, i32, i32) {
    %c1_i32 = arith.constant 1 : i32
    %0 = arith.subi %c1_i32, %arg0 : i32
    %1 = arith.muli %0, %arg1 : i32
    %c0_i32 = arith.constant 0 : i32
    %2 = arith.subi %c0_i32, %arg1 : i32
    %3 = arith.muli %arg0, %2 : i32
    %4 = arith.addi %1, %3 : i32
    %c0_i32_0 = arith.constant 0 : i32
    %c0_i32_1 = arith.constant 0 : i32
    %c0_i32_2 = arith.constant 0 : i32
    return %arg0, %4, %c0_i32_0, %c0_i32_1 : i32, i32, i32, i32
  }
}

</mosaic_0001>

<bundles_post_ra>
// kernel: pos_biaffine_forward.10
= control target key start
LH: loop header
LB: loop body
LE: loop exit
PB: predicated region body
PF: predicated region fallthrough
CT: control target
= control target key end

     0   :  { %vm26_vm0 = vcmask 146432   ;;  %vm33_vm1 = vcmask 1041408   ;;  %vm112_vm2 = vcmask 261120   ;;  %s336_s1 = inlined_call_operand.vmem [shape: f32[2,18,32], index: 1, kind: input, shape index: {}]   ;;  %s337_s0 = inlined_call_operand.vmem [shape: f32[16,18], index: 0, kind: input, shape index: {}]   ;;  %s338_s2 = inlined_call_operand.vmem [shape: f32[2,1,32], index: 2, kind: input, shape index: {}]   ;;  %s339_s3 = inlined_call_operand.vmem [shape: f32[2,16,32], index: 3, kind: output, shape index: {}]  }
   0x1   :  { %v16_v0 = vld [vmem:[%s336_s1] sm:$0xff]  ;;  %v17_v1 = vld [vmem:[%s336_s1 + $0x8] sm:$0xff]  ;;  %v224_v2 = vld [vmem:[%s336_s1 + $0x18] sm:$0xff] }
   0x2   :  { %v262_v3 = vpack.c.bf16 %v17_v1, %v16_v0  ;;  %v225_v4 = vld [vmem:[%s336_s1 + $0x20] sm:$0xff]  ;;  %v18_v6 = vld [vmem:[%s336_s1 + $0x10] sm:$0x3]  ;;  %v226_v8 = vld [vmem:[%s336_s1 + $0x28] sm:$0x3] }
   0x3   :  { %v266_v5 = vpack.c.bf16 %v225_v4, %v224_v2  ;;  %v14_v7 = vld [vmem:[%s337_s0] sm:$0xff]  ;;  %v15_v9 = vld [vmem:[%s337_s0 + $0x8] sm:$0xff] }
   0x4   :  { %263 = vmatprep.subr.bf16.mxu0 %v262_v3  ;;  %250 = vmatprep.mubr.msk.f32.mxu0 %vm26_vm0, %v14_v7  ;;  %v220_v10 = vld [vmem:[%s338_s2] ss:$0 sm:$0xff]  ;;  %v228_v11 = vld [vmem:[%s338_s2 + $0x1] ss:$0 sm:$0xff] }
   0x5   :  { %267 = vmatprep.subr.bf16.mxu1 %v266_v5  ;;  %265 = vmatpush3.bf16.msra.mxu0 %v262_v3 }
   0x6   :  { %269 = vmatpush3.bf16.msra.mxu1 %v266_v5  ;;  %248 = vmatprep.subr.msk.mxu0 %vm33_vm1, %v18_v6 }
   0x7   :  { %257 = vmatprep.subr.msk.mxu1 %vm33_vm1, %v226_v8  ;;  %259 = vmatprep.mubr.msk.f32.mxu1 %vm26_vm0, %v14_v7 }
   0x9   :  { %249 = vmatpush3.msk.msra.mxu0 %vm33_vm1, %v18_v6 }
   0xa   :  { %258 = vmatpush3.msk.msra.mxu1 %vm33_vm1, %v226_v8  ;;  %251 = vmatmul.mubr.msk.f32.vlgmr.msra.gmra.mrb[0].mxu0 %vm26_vm0, %v15_v9 }
   0xb   :  { %260 = vmatmul.mubr.msk.f32.vlgmr.msra.gmra.mrb[0].mxu1 %vm26_vm0, %v15_v9 }
  0xdd   :  { %v252_v12 = vpop.f32.mrb[0].mxu0 }
  0xde   :  { %v109_v13 = vadd.f32 %v252_v12, %v220_v10  ;;  %v261_v14 = vpop.f32.mrb[0].mxu1  ;;  %v103_v15 = vpop.f32.mrb[1].mxu0 }
  0xdf   :  { %v210_v16 = vadd.f32 %v261_v14, %v228_v11  ;;  %v104_v17 = vadd.f32 %v220_v10, %v103_v15  ;;  %v204_v18 = vpop.f32.mrb[1].mxu1 }
  0xe0   :  { %114 = vst.msk [vmem:[%s339_s3 + $0x8] sm:$0xff] %vm112_vm2, %v109_v13  ;;  %v205_v19 = vadd.f32 %v228_v11, %v204_v18 }
  0xe1   :  { %233 = vst.msk [vmem:[%s339_s3 + $0x18] sm:$0xff] %vm112_vm2, %v210_v16  ;;  %113 = vst.msk [vmem:[%s339_s3] sm:$0xff] %vm112_vm2, %v104_v17 }
  0xe2   :  { %232 = vst.msk [vmem:[%s339_s3 + $0x10] sm:$0xff] %vm112_vm2, %v205_v19 }

// kernel: pos_biaffine_forward.9
= control target key start
LH: loop header
LB: loop body
LE: loop exit
PB: predicated region body
PF: predicated region fallthrough
CT: control target
= control target key end

     0   :  { %vm25_vm0 = vcmask 261120   ;;  %s78_s0 = inlined_call_operand.vmem [shape: f32[4,16,32], index: 0, kind: input, shape index: {}]   ;;  %s79_s1 = inlined_call_operand.vmem [shape: f32[16,32], index: 1, kind: output, shape index: {}]  }
   0x1   :  { %v8_v0 = vld [vmem:[%s78_s0] sm:$0xff]  ;;  %v32_v1 = vld [vmem:[%s78_s0 + $0x10] sm:$0xff]  ;;  %v9_v4 = vld [vmem:[%s78_s0 + $0x8] sm:$0xff] }
   0x2   :  { %v34_v2 = vld [vmem:[%s78_s0 + $0x20] sm:$0xff]  ;;  %v13_v3 = vadd.f32 %v32_v1, %v8_v0  ;;  %v33_v5 = vld [vmem:[%s78_s0 + $0x18] sm:$0xff]  ;;  %v36_v6 = vld [vmem:[%s78_s0 + $0x30] sm:$0xff] }
   0x3   :  { %v14_v7 = vadd.f32 %v33_v5, %v9_v4  ;;  %v35_v8 = vld [vmem:[%s78_s0 + $0x28] sm:$0xff]  ;;  %v37_v10 = vld [vmem:[%s78_s0 + $0x38] sm:$0xff] }
   0x4   :  { %v18_v9 = vadd.f32 %v34_v2, %v13_v3 }
   0x5   :  { %v19_v11 = vadd.f32 %v35_v8, %v14_v7 }
   0x6   :  { %v23_v12 = vadd.f32 %v36_v6, %v18_v9 }
   0x7   :  { %v24_v13 = vadd.f32 %v37_v10, %v19_v11 }
   0x8   :  { %26 = vst.msk [vmem:[%s79_s1] sm:$0xff] %vm25_vm0, %v23_v12 }
   0x9   :  { %27 = vst.msk [vmem:[%s79_s1 + $0x8] sm:$0xff] %vm25_vm0, %v24_v13 }

// kernel: pos_biaffine_forward.12
= control target key start
LH: loop header
LB: loop body
LE: loop exit
PB: predicated region body
PF: predicated region fallthrough
CT: control target
= control target key end

     0   :  { %vm62_vm0 = vcmask 261120   ;;  %v761_v3 = vmov 0   ;;  %vm149_vm1 = vcmask 64512   ;;  %vm328_vm2 = vcmask 523264   ;;  %s908_s5 = inlined_call_operand.vmem [shape: f32[2,32,64], index: 5, kind: input, shape index: {}]   ;;  %s909_s1 = inlined_call_operand.vmem [shape: f32[16,32], index: 1, kind: input, shape index: {}]   ;;  %s910_s6 = inlined_call_operand.vmem [shape: f32[2,8,64], index: 6, kind: input, shape index: {}]   ;;  %s911_s0 = inlined_call_operand.vmem [shape: f32[16,1], index: 0, kind: input, shape index: {}]   ;;  %s912_s2 = inlined_call_operand.vmem [shape: f32[2,16,8], index: 2, kind: input, shape index: {}, may-alias: {2,3}]   ;;  %s913_s7 = inlined_call_operand.vmem [shape: f32[2,8,64], index: 7, kind: input, shape index: {}]   ;;  %s914_s3 = inlined_call_operand.vmem [shape: f32[2,16,8], index: 3, kind: input, shape index: {}, may-alias: {2,3}]   ;;  %s915_s4 = inlined_call_operand.vmem [shape: f32[2,1,64], index: 4, kind: input, shape index: {}]   ;;  %s916_s8 = inlined_call_operand.vmem [shape: f32[2,1,64], index: 8, kind: input, shape index: {}]   ;;  %s917_s9 = inlined_call_operand.vmem [shape: f32[2,16,64], index: 9, kind: output, shape index: {}]  }
   0x1   :  { %v58_v0 = vld [vmem:[%s908_s5] sm:$0xff]  ;;  %v59_v1 = vld [vmem:[%s908_s5 + $0x8] sm:$0xff]  ;;  %760 = vset.pattern.permute.xlu1 %v761_v3  ;;  %759 = vset.pattern.permute.xlu0 %v761_v3  ;;  %v60_v6 = vld [vmem:[%s908_s5 + $0x10] sm:$0xff] }
   0x2   :  { %v646_v2 = vld [vmem:[%s908_s5 + $0x20] sm:$0xff]  ;;  %v730_v4 = vpack.c.bf16 %v59_v1, %v58_v0  ;;  %v647_v5 = vld [vmem:[%s908_s5 + $0x28] sm:$0xff]  ;;  %v61_v7 = vld [vmem:[%s908_s5 + $0x18] sm:$0xff] }
   0x3   :  { %v738_v8 = vpack.c.bf16 %v647_v5, %v646_v2  ;;  %v734_v9 = vpack.c.bf16 %v61_v7, %v60_v6  ;;  %v648_v10 = vld [vmem:[%s908_s5 + $0x30] sm:$0xff]  ;;  %v649_v11 = vld [vmem:[%s908_s5 + $0x38] sm:$0xff]  ;;  %v56_v12 = vld [vmem:[%s909_s1] sm:$0xff] }
   0x4   :  { %731 = vmatprep.subr.bf16.mxu0 %v730_v4  ;;  %v742_v13 = vpack.c.bf16 %v649_v11, %v648_v10  ;;  %696 = vmatprep.mubr.msk.f32.mxu0 %vm62_vm0, %v56_v12  ;;  %v148_v14 = vld [vmem:[%s910_s6] sm:$0xff]  ;;  %v652_v16 = vld [vmem:[%s910_s6 + $0x8] sm:$0xff]  ;;  %v639_v23 = vld [vmem:[%s914_s3 + $0x10] sm:$0xff] }
   0x5   :  { %739 = vmatprep.subr.bf16.mxu1 %v738_v8  ;;  %733 = vmatpush3.bf16.msra.mxu0 %v730_v4  ;;  %v331_v15 = vld [vmem:[%s911_s0] sm:$0xff]  ;;  %v57_v17 = vld [vmem:[%s909_s1 + $0x8] sm:$0xff]  ;;  %v640_v24 = vld [vmem:[%s914_s3 + $0x18] sm:$0xff] }
   0x6   :  { %741 = vmatpush3.bf16.msra.mxu1 %v738_v8  ;;  %735 = vmatprep.subr.bf16.mxu0 %v734_v9  ;;  %v332_v18 = vld [vmem:[%s911_s0 + $0x8] sm:$0xff]  ;;  %v146_v19 = vld [vmem:[%s912_s2] sm:$0xff] }
   0x7   :  { %743 = vmatprep.subr.bf16.mxu1 %v742_v13  ;;  %717 = vmatprep.mubr.msk.f32.mxu1 %vm62_vm0, %v56_v12  ;;  %v235_v20 = vld [vmem:[%s913_s7] sm:$0xff]  ;;  %v657_v21 = vld [vmem:[%s913_s7 + $0x8] sm:$0xff] }
   0x8   :  { %337 = vperm.xlu1 %760, %v331_v15   ;;  %40 = vperm.xlu0 %759, %v331_v15   ;;  %v147_v22 = vld [vmem:[%s912_s2 + $0x8] sm:$0xff]  ;;  %v634_v27 = vld [vmem:[%s915_s4] ss:$0 sm:$0xff]  ;;  %v645_v29 = vld [vmem:[%s915_s4 + $0x1] ss:$0 sm:$0xff] }
   0x9   :  { %737 = vmatpush3.bf16.msra.mxu0 %v734_v9  ;;  %v643_v35 = vld [vmem:[%s916_s8] ss:$0 sm:$0xff]  ;;  %v661_v39 = vld [vmem:[%s916_s8 + $0x1] ss:$0 sm:$0xff] }
   0xa   :  { %745 = vmatpush3.bf16.msra.mxu1 %v742_v13  ;;  %699 = vmatprep.subr.mxu0 %v148_v14 }
   0xb   :  { %720 = vmatprep.subr.mxu1 %v652_v16 }
   0xc   :  { %697 = vmatmul.mubr.msk.f32.vlgmr.msra.gmra.mrb[0].mxu0 %vm62_vm0, %v57_v17  ;;  %342 = vperm.xlu1 %760, %v332_v18  }
   0xd   :  { %718 = vmatmul.mubr.msk.f32.vlgmr.msra.gmra.mrb[0].mxu1 %vm62_vm0, %v57_v17  ;;  %700 = vmatpush3.msra.mxu0 %v148_v14 }
   0xe   :  { %721 = vmatpush3.msra.mxu1 %v652_v16  ;;  %701 = vmatprep.mubr.msk.f32.mxu0 %vm149_vm1, %v146_v19 }
   0xf   :  { %722 = vmatprep.mubr.msk.f32.mxu1 %vm149_vm1, %v146_v19  ;;  %704 = vmatprep.subr.mxu0 %v235_v20 }
  0x10   :  { %725 = vmatprep.subr.mxu1 %v657_v21  ;;  %45 = vperm.xlu0 %759, %v332_v18  }
  0x14   :  { %702 = vmatmul.mubr.msk.f32.vlgmr.msra.gmra.mrb[0].mxu0 %vm149_vm1, %v147_v22 }
  0x15   :  { %723 = vmatmul.mubr.msk.f32.vlgmr.msra.gmra.mrb[0].mxu1 %vm149_vm1, %v147_v22  ;;  %705 = vmatpush3.msra.mxu0 %v235_v20 }
  0x16   :  { %726 = vmatpush3.msra.mxu1 %v657_v21  ;;  %706 = vmatprep.mubr.msk.f32.mxu0 %vm149_vm1, %v639_v23 }
  0x17   :  { %727 = vmatprep.mubr.msk.f32.mxu1 %vm149_vm1, %v639_v23 }
  0x1c   :  { %707 = vmatmul.mubr.msk.f32.vlgmr.msra.gmra.mrb[0].mxu0 %vm149_vm1, %v640_v24 }
  0x1d   :  { %728 = vmatmul.mubr.msk.f32.vlgmr.msra.gmra.mrb[0].mxu1 %vm149_vm1, %v640_v24 }
  0x87   :  { %v41_v25 = vpop.permute.xlu0 %40  ;;  %v338_v26 = vpop.permute.xlu1 %337 }
  0x88   :  { %v54_v32 = vmul.f32 %v634_v27, %v41_v25  ;;  %v351_v36 = vmul.f32 %v645_v29, %v338_v26 }
  0x8b   :  { %v343_v30 = vpop.permute.xlu1 %342 }
  0x8c   :  { %v352_v33 = vmul.f32 %v645_v29, %v343_v30 }
  0x8f   :  { %v46_v28 = vpop.permute.xlu0 %45 }
  0x90   :  { %v55_v31 = vmul.f32 %v634_v27, %v46_v28 }
  0xef   :  { %v708_v34 = vpop.f32.mrb[0].mxu0 }
  0xf0   :  { %v746_v37 = vadd.f32 %v708_v34, %v55_v31  ;;  %v729_v38 = vpop.f32.mrb[0].mxu1  ;;  %v308_v40 = vpop.f32.mrb[1].mxu0 }
  0xf1   :  { %v748_v41 = vadd.f32 %v729_v38, %v352_v33  ;;  %v747_v42 = vadd.f32 %v308_v40, %v54_v32  ;;  %v606_v43 = vpop.f32.mrb[1].mxu1 }
  0xf2   :  { %v327_v44 = vadd.f32 %v746_v37, %v643_v35  ;;  %v749_v45 = vadd.f32 %v606_v43, %v351_v36 }
  0xf3   :  { %v626_v46 = vadd.f32 %v748_v41, %v661_v39  ;;  %v326_v47 = vadd.f32 %v747_v42, %v643_v35 }
  0xf4   :  { %330 = vst.msk [vmem:[%s917_s9 + $0x8] sm:$0xff] %vm328_vm2, %v327_v44  ;;  %v625_v48 = vadd.f32 %v749_v45, %v661_v39 }
  0xf5   :  { %663 = vst.msk [vmem:[%s917_s9 + $0x18] sm:$0xff] %vm328_vm2, %v626_v46  ;;  %329 = vst.msk [vmem:[%s917_s9] sm:$0xff] %vm328_vm2, %v326_v47 }
  0xf6   :  { %662 = vst.msk [vmem:[%s917_s9 + $0x10] sm:$0xff] %vm328_vm2, %v625_v48 }

// kernel: pos_biaffine_forward.11
= control target key start
LH: loop header
LB: loop body
LE: loop exit
PB: predicated region body
PF: predicated region fallthrough
CT: control target
= control target key end

     0   :  { %s1658_s9 = smov 0   ;;  %s1660_s10 = smov 0   ;;  %s1911_s0 = inlined_call_operand.vmem [shape: f32[2,8,2,32], index: 0, kind: input, shape index: {}]   ;;  %s1912_s1 = inlined_call_operand.vmem [shape: f32[2,8,32], index: 1, kind: input, shape index: {}]   ;;  %s1913_s2 = inlined_call_operand.vmem [shape: f32[2,8,2,8], index: 2, kind: output, shape index: {}]  }
   0x1   :  { %s1662_s11 = smov 0  }
   0x2 LB: > { %s24_s12 = sadd.s32 1, %s1630_s10  ;;  %p1423_p0 = scmp.ge.s32.totalorder %s1634_s11, 1  ;;  %s1634_s11 = sphi %s1662_s11, %s12_s11   ;;  %s1630_s10 = sphi %s1660_s10, %s1915_s10   ;;  %s1626_s9 = sphi %s1658_s9, %s1914_s9  }
   0x3   : > { %p26_p1 = scmp.ge.s32.totalorder %s24_s12, 2  ;;  %p172_p2 = scmp.lt.s32.totalorder %s1634_s11, 3 }
   0x5   : > { %s1917_s12 = smov (%p26_p1, %s24_s12), 0  ;;  %p173_p3 = pnand %p1423_p0, %p172_p2 }
   0x6   : > { %p222_p4 = scmp.lt.s32.totalorder (!%p173_p3), %s1626_s9, 1  ;;  %vm264_vm0 = vcmask (!%p173_p3), 58368   ;;  %v1636_v0 = vmov (!%p173_p3), 0.0   ;;  %vm1637_vm1 = vmmov (!%p173_p3), 0   ;;  %vm273_vm2 = vcmask (!%p173_p3), 64512   ;;  %s1429_s19 = smul.u32 (!%p173_p3), 14, %s1626_s9 }
   0x7   : > { %176 = sbr.rel (%p173_p3) target bundleno = 5694 (0x163e), region = 28  ;;  %1477 = vmatprep.subr.mxu0 (!%p173_p3), %v1636_v0  ;;  %1479 = vmatprep.mubr.msk.f32.mxu0 (!%p173_p3), %vm1637_vm1, %v1636_v0  ;;  %265 = vst.msk [vmem:[#allocation2] sm:$0x3] (!%p173_p3), %vm264_vm0, %v1636_v0  ;;  %266 = vst.msk [vmem:[#allocation3] sm:$0x3] (!%p173_p3), %vm264_vm0, %v1636_v0  ;;  %s1638_s24 = smov (!%p173_p3), 112  }
   0x8   : > { %1482 = vmatprep.subr.mxu1 (!%p173_p3), %v1636_v0  ;;  %1484 = vmatprep.mubr.msk.f32.mxu1 (!%p173_p3), %vm1637_vm1, %v1636_v0  ;;  %s1639_s25 = smov (!%p173_p3), 8   ;;  %s1640_s26 = smov (!%p173_p3), 16  }
   0x9   : > { %s1641_s27 = smov (!%p173_p3), 120   ;;  %s1642_s28 = smov (!%p173_p3), 104  }
   0xa   : > { %s391_s5 = smul.u32 (!%p173_p3), 6, %s1626_s9  ;;  %s1746_s6 = ssub.s32 (!%p173_p3), 1, %s1626_s9 }
   0xb   : > { %s513_s15 = smul.u32 (!%p173_p3), 5, %s1626_s9  ;;  %s1435_s16 = sshll.u32 (!%p173_p3), %s1746_s6, 1 }
   0xc   : > { %s1749_s7 = sadd.s32 (!%p173_p3), %s391_s5, %s1746_s6  ;;  %s634_s21 = smul.u32 (!%p173_p3), 3, %s1746_s6 }
   0xd   : > { %s1432_s8 = sshll.u32 (!%p173_p3), %s1749_s7, 1  ;;  %s757_s7 = smul.u32 (!%p173_p3), 3, %s1626_s9 }
   0xe   : > { %s1687_s13 = scalar_select %p222_p4, %s1626_s9, 1  ;;  %v272_v2 = vld [vmem:[#allocation2] sm:$0x3]  ;;  %v355_v8 = vld [vmem:[#allocation3] sm:$0x3] }
  0x10   : > { %s1426_s14 = sshll.u32 %s1687_s13, 3  ;;  %s1459_s18 = sshll.u32 %s1687_s13, 4 }
  0x11   : > { %s239_s17 = scalar_lea.vmem %s1912_s1, %s1426_s14  ;;  %s1714_s22 = scalar_lea.vmem %s1911_s0, %s1459_s18 }
  0x12   : > { %v1696_v1 = vld [vmem:[%s239_s17] sm:$0xff]  ;;  %s270_s23 = scalar_lea.vmem %s1714_s22, %s1429_s19  ;;  %s1732_s3 = scalar_lea.vmem %s1913_s2, %s1459_s18 }
  0x13   : > { %1478 = vmatpush3.msra.mxu0 %v1696_v1  ;;  %1483 = vmatpush3.msra.mxu1 %v1696_v1  ;;  %v271_v3 = vld [vmem:[%s270_s23] sm:$0x3]  ;;  %s388_s4 = scalar_lea.vmem %s1732_s3, %s1429_s19  ;;  %s394_s13 = scalar_lea.vmem %s1714_s22, %s1432_s8 }
  0x14   : > { %1487 = vmatprep.subr.mxu0 %v1636_v0  ;;  %1492 = vmatprep.subr.mxu1 %v1636_v0  ;;  %v395_v26 = vld [vmem:[%s394_s13] sm:$0x3]  ;;  %s510_s14 = scalar_lea.vmem %s1732_s3, %s1432_s8  ;;  %s1774_s17 = sadd.s32 %s1435_s16, %s513_s15 }
  0x15   : > { %1480 = vmatmul.mubr.msk.f32.vlgmr.msra.gmra.mrb[0].mxu0 %vm273_vm2, %v272_v2  ;;  %s1436_s18 = sshll.u32 %s1774_s17, 1  ;;  %s1439_s23 = sshll.u32 %s1626_s9, 2 }
  0x16   : > { %1488 = vmatpush3.msra.mxu0 %v1696_v1  ;;  %1489 = vmatprep.mubr.msk.f32.mxu0 %vm1637_vm1, %v1636_v0  ;;  %s516_s19 = scalar_lea.vmem %s1714_s22, %s1436_s18  ;;  %s632_s20 = scalar_lea.vmem %s1732_s3, %s1436_s18 }
  0x17   : > { %1497 = vmatprep.subr.mxu0 %v1636_v0  ;;  %v517_v48 = vld [vmem:[%s516_s19] sm:$0x3]  ;;  %s1799_s29 = sadd.s32 %s1439_s23, %s634_s21  ;;  %s1443_s8 = sshll.u32 %s1746_s6, 2 }
  0x18   : > { %s1440_s30 = sshll.u32 %s1799_s29, 1  ;;  %s1823_s13 = sadd.s32 %s1443_s8, %s757_s7 }
  0x19   : > { %s754_s5 = scalar_lea.vmem %s1732_s3, %s1440_s30  ;;  %s878_s17 = smul.u32 5, %s1746_s6 }
  0x1a   : > { %s1447_s18 = sshll.u32 %s1626_s9, 1  ;;  %s1000_s29 = smul.u32 6, %s1746_s6 }
  0x1b   : > { %s1847_s19 = sadd.s32 %s1447_s18, %s878_s17  ;;  %s1454_s7 = smul.u32 14, %s1746_s6 }
  0x1d   : > { %s1123_s8 = scalar_lea.vmem %s1714_s22, %s1454_s7 }
  0xe8   : > { %v343_v4 = vpop.f32.mrb[0].mxu0 }
  0xe9   : > { %v347_v5 = vadd.f32 %v343_v4, %v271_v3  ;;  %v1481_v6 = vpop.f32.mrb[1].mxu0 }
  0xeb   : > { %1548 = vtanh.f32 %v347_v5  ;;  %v1431_v9 = vmul.f32 -1.442695, %v347_v5 }
  0xed   : > { %1550 = vpow2.f32 %v1431_v9 }
  0xf5   : > { %v1549_v7 = vpop.eup %1548 }
  0xf6   : > { %362 = vrot.lane.b32.xlu0 %v1549_v7, %s1638_s24 }
  0xf7   : > { %v1551_v10 = vpop.eup %1550 }
  0xf8   : > { %v351_v11 = vadd.f32 1.0, %v1551_v10 }
  0xfa   : > { %357 = vrot.lane.b32.xlu0 %v355_v8, %s1639_s25  ;;  %1552 = vrcp.f32 %v351_v11 }
 0x104   : > { %v1553_v12 = vpop.eup %1552 }
 0x168   : > { %v363_v13 = vpop.permute.xlu0 %362 }
 0x169   : > { %v365_v14 = vmul.f32 %v1553_v12, %v363_v13 }
 0x16b   : > { %367 = vrot.lane.b32.xlu1 %v365_v14, %s1639_s25 }
 0x16c   : > { %v358_v15 = vpop.permute.xlu0 %357 }
 0x16d   : > { %v360_v16 = vmul.f32 %v1553_v12, %v358_v15 }
 0x1dd   : > { %v368_v17 = vpop.permute.xlu1 %367 }
 0x1de   : > { %v370_v18 = vadd.f32 %v368_v17, %v360_v16 }
 0x1e0   : > { %1554 = vtanh.f32 %v370_v18 }
 0x1ea   : > { %v1555_v19 = vpop.eup %1554 }
 0x1eb   : > { %373 = vrot.lane.b32.xlu1 %v1555_v19, %s1640_s26 }
 0x1ef   : > { %378 = vrot.lane.b32.xlu1 %v370_v18, %s1641_s27 }
 0x25d   : > { %v374_v20 = vpop.permute.xlu1 %373 }
 0x25e   : > { %v376_v21 = vmul.f32 %v1553_v12, %v374_v20 }
 0x260   : > { %384 = vrot.lane.b32.xlu0 %v376_v21, %s1642_s28 }
 0x261   : > { %v379_v22 = vpop.permute.xlu1 %378 }
 0x262   : > { %382 = vst.msk [vmem:[#allocation3] sm:$0x3] %vm264_vm0, %v379_v22 }
 0x269   : > { %v478_v23 = vld [vmem:[#allocation3] sm:$0x3] }
 0x26a   : > { %480 = vrot.lane.b32.xlu1 %v478_v23, %s1639_s25 }
 0x2d2   : > { %v385_v24 = vpop.permute.xlu0 %384 }
 0x2d3   : > { %387 = vst.msk [vmem:[#allocation2] sm:$0x3] %vm264_vm0, %v385_v24  ;;  %389 = vst.msk [vmem:[%s388_s4] sm:$0x3] %vm264_vm0, %v385_v24  ;;  %s638_s4 = scalar_lea.vmem %s1714_s22, %s1440_s30  ;;  %s1868_s30 = sadd.s32 %s1626_s9, %s1000_s29 }
 0x2d4   : > { %v639_v8 = vld [vmem:[%s638_s4] sm:$0x3]  ;;  %s1451_s4 = sshll.u32 %s1868_s30, 1 }
 0x2d5   : > { %s1119_s9 = scalar_lea.vmem %s1732_s3, %s1451_s4 }
 0x2da   : > { %v396_v25 = vld [vmem:[#allocation2] sm:$0x3] }
 0x2db   : > { %1485 = vmatmul.mubr.msk.f32.vlgmr.msra.gmra.mrb[0].mxu1 %vm273_vm2, %v396_v25 }
 0x2dc   : > { %1493 = vmatpush3.msra.mxu1 %v1696_v1  ;;  %1494 = vmatprep.mubr.msk.f32.mxu1 %vm1637_vm1, %v1636_v0  ;;  %v481_v37 = vpop.permute.xlu1 %480 }
 0x2dd   : > { %1502 = vmatprep.subr.mxu1 %v1636_v0 }
 0x3ae   : > { %v466_v27 = vpop.f32.mrb[0].mxu1 }
 0x3af   : > { %v470_v28 = vadd.f32 %v466_v27, %v395_v26  ;;  %v1486_v29 = vpop.f32.mrb[1].mxu1 }
 0x3b1   : > { %1556 = vtanh.f32 %v470_v28  ;;  %v1434_v31 = vmul.f32 -1.442695, %v470_v28 }
 0x3b3   : > { %1558 = vpow2.f32 %v1434_v31 }
 0x3bb   : > { %v1557_v30 = vpop.eup %1556 }
 0x3bc   : > { %485 = vrot.lane.b32.xlu0 %v1557_v30, %s1638_s24 }
 0x3bd   : > { %v1559_v32 = vpop.eup %1558 }
 0x3be   : > { %v474_v33 = vadd.f32 1.0, %v1559_v32 }
 0x3c0   : > { %1560 = vrcp.f32 %v474_v33 }
 0x3ca   : > { %v1561_v34 = vpop.eup %1560 }
 0x3cb   : > { %v483_v38 = vmul.f32 %v1561_v34, %v481_v37 }
 0x42e   : > { %v486_v35 = vpop.permute.xlu0 %485 }
 0x42f   : > { %v488_v36 = vmul.f32 %v1561_v34, %v486_v35 }
 0x431   : > { %490 = vrot.lane.b32.xlu0 %v488_v36, %s1639_s25 }
 0x4a3   : > { %v491_v39 = vpop.permute.xlu0 %490 }
 0x4a4   : > { %v493_v40 = vadd.f32 %v491_v39, %v483_v38 }
 0x4a6   : > { %1562 = vtanh.f32 %v493_v40 }
 0x4b0   : > { %v1563_v41 = vpop.eup %1562 }
 0x4b1   : > { %496 = vrot.lane.b32.xlu1 %v1563_v41, %s1640_s26 }
 0x4b5   : > { %501 = vrot.lane.b32.xlu1 %v493_v40, %s1641_s27 }
 0x523   : > { %v497_v42 = vpop.permute.xlu1 %496 }
 0x524   : > { %v499_v43 = vmul.f32 %v1561_v34, %v497_v42 }
 0x526   : > { %506 = vrot.lane.b32.xlu0 %v499_v43, %s1642_s28 }
 0x527   : > { %v502_v44 = vpop.permute.xlu1 %501 }
 0x528   : > { %504 = vst.msk [vmem:[#allocation3] sm:$0x3] %vm264_vm0, %v502_v44 }
 0x52f   : > { %v600_v45 = vld [vmem:[#allocation3] sm:$0x3] }
 0x530   : > { %602 = vrot.lane.b32.xlu1 %v600_v45, %s1639_s25 }
 0x598   : > { %v507_v46 = vpop.permute.xlu0 %506 }
 0x599   : > { %509 = vst.msk [vmem:[#allocation2] sm:$0x3] %vm264_vm0, %v507_v46  ;;  %511 = vst.msk [vmem:[%s510_s14] sm:$0x3] %vm264_vm0, %v507_v46  ;;  %s1444_s14 = sshll.u32 %s1823_s13, 1 }
 0x59a   : > { %s760_s15 = scalar_lea.vmem %s1714_s22, %s1444_s14  ;;  %s876_s16 = scalar_lea.vmem %s1732_s3, %s1444_s14 }
 0x59b   : > { %v761_v30 = vld [vmem:[%s760_s15] sm:$0x3] }
 0x5a0   : > { %v518_v47 = vld [vmem:[#allocation2] sm:$0x3] }
 0x5a1   : > { %1490 = vmatmul.mubr.msk.f32.vlgmr.msra.gmra.mrb[2].mxu0 %vm273_vm2, %v518_v47 }
 0x5a2   : > { %1498 = vmatpush3.msra.mxu0 %v1696_v1  ;;  %1499 = vmatprep.mubr.msk.f32.mxu0 %vm1637_vm1, %v1636_v0  ;;  %v603_v59 = vpop.permute.xlu1 %602 }
 0x5a3   : > { %1507 = vmatprep.subr.mxu0 %v1636_v0 }
 0x674   : > { %v588_v49 = vpop.f32.mrb[2].mxu0 }
 0x675   : > { %v592_v50 = vadd.f32 %v588_v49, %v517_v48  ;;  %v1491_v51 = vpop.f32.mrb[3].mxu0 }
 0x677   : > { %1564 = vtanh.f32 %v592_v50  ;;  %v1438_v53 = vmul.f32 -1.442695, %v592_v50 }
 0x679   : > { %1566 = vpow2.f32 %v1438_v53 }
 0x681   : > { %v1565_v52 = vpop.eup %1564 }
 0x682   : > { %607 = vrot.lane.b32.xlu0 %v1565_v52, %s1638_s24 }
 0x683   : > { %v1567_v54 = vpop.eup %1566 }
 0x684   : > { %v596_v55 = vadd.f32 1.0, %v1567_v54 }
 0x686   : > { %1568 = vrcp.f32 %v596_v55 }
 0x690   : > { %v1569_v56 = vpop.eup %1568 }
 0x691   : > { %v605_v60 = vmul.f32 %v1569_v56, %v603_v59 }
 0x6f4   : > { %v608_v57 = vpop.permute.xlu0 %607 }
 0x6f5   : > { %v610_v58 = vmul.f32 %v1569_v56, %v608_v57 }
 0x6f7   : > { %612 = vrot.lane.b32.xlu0 %v610_v58, %s1639_s25 }
 0x769   : > { %v613_v61 = vpop.permute.xlu0 %612 }
 0x76a   : > { %v615_v62 = vadd.f32 %v613_v61, %v605_v60 }
 0x76c   : > { %1570 = vtanh.f32 %v615_v62 }
 0x776   : > { %v1571_v63 = vpop.eup %1570 }
 0x777   : > { %618 = vrot.lane.b32.xlu1 %v1571_v63, %s1640_s26 }
 0x77b   : > { %623 = vrot.lane.b32.xlu1 %v615_v62, %s1641_s27 }
 0x7e9   : > { %v619_v2 = vpop.permute.xlu1 %618 }
 0x7ea   : > { %v621_v3 = vmul.f32 %v1569_v56, %v619_v2 }
 0x7ec   : > { %628 = vrot.lane.b32.xlu0 %v621_v3, %s1642_s28 }
 0x7ed   : > { %v624_v4 = vpop.permute.xlu1 %623 }
 0x7ee   : > { %626 = vst.msk [vmem:[#allocation3] sm:$0x3] %vm264_vm0, %v624_v4 }
 0x7f5   : > { %v722_v5 = vld [vmem:[#allocation3] sm:$0x3] }
 0x7f6   : > { %724 = vrot.lane.b32.xlu1 %v722_v5, %s1639_s25 }
 0x85e   : > { %v629_v6 = vpop.permute.xlu0 %628 }
 0x85f   : > { %631 = vst.msk [vmem:[#allocation2] sm:$0x3] %vm264_vm0, %v629_v6  ;;  %633 = vst.msk [vmem:[%s632_s20] sm:$0x3] %vm264_vm0, %v629_v6  ;;  %s1448_s20 = sshll.u32 %s1847_s19, 1 }
 0x860   : > { %s882_s21 = scalar_lea.vmem %s1714_s22, %s1448_s20  ;;  %s998_s23 = scalar_lea.vmem %s1732_s3, %s1448_s20 }
 0x861   : > { %v883_v52 = vld [vmem:[%s882_s21] sm:$0x3] }
 0x866   : > { %v640_v7 = vld [vmem:[#allocation2] sm:$0x3] }
 0x867   : > { %1495 = vmatmul.mubr.msk.f32.vlgmr.msra.gmra.mrb[2].mxu1 %vm273_vm2, %v640_v7 }
 0x868   : > { %1503 = vmatpush3.msra.mxu1 %v1696_v1  ;;  %1504 = vmatprep.mubr.msk.f32.mxu1 %vm1637_vm1, %v1636_v0  ;;  %v725_v19 = vpop.permute.xlu1 %724 }
 0x869   : > { %1512 = vmatprep.subr.mxu1 %v1636_v0 }
 0x93a   : > { %v710_v9 = vpop.f32.mrb[2].mxu1 }
 0x93b   : > { %v714_v10 = vadd.f32 %v710_v9, %v639_v8  ;;  %v1496_v11 = vpop.f32.mrb[3].mxu1 }
 0x93d   : > { %1572 = vtanh.f32 %v714_v10  ;;  %v1442_v13 = vmul.f32 -1.442695, %v714_v10 }
 0x93f   : > { %1574 = vpow2.f32 %v1442_v13 }
 0x947   : > { %v1573_v12 = vpop.eup %1572 }
 0x948   : > { %729 = vrot.lane.b32.xlu0 %v1573_v12, %s1638_s24 }
 0x949   : > { %v1575_v14 = vpop.eup %1574 }
 0x94a   : > { %v718_v15 = vadd.f32 1.0, %v1575_v14 }
 0x94c   : > { %1576 = vrcp.f32 %v718_v15 }
 0x956   : > { %v1577_v16 = vpop.eup %1576 }
 0x957   : > { %v727_v20 = vmul.f32 %v1577_v16, %v725_v19 }
 0x9ba   : > { %v730_v17 = vpop.permute.xlu0 %729 }
 0x9bb   : > { %v732_v18 = vmul.f32 %v1577_v16, %v730_v17 }
 0x9bd   : > { %734 = vrot.lane.b32.xlu0 %v732_v18, %s1639_s25 }
 0xa2f   : > { %v735_v21 = vpop.permute.xlu0 %734 }
 0xa30   : > { %v737_v22 = vadd.f32 %v735_v21, %v727_v20 }
 0xa32   : > { %1578 = vtanh.f32 %v737_v22 }
 0xa3c   : > { %v1579_v23 = vpop.eup %1578 }
 0xa3d   : > { %740 = vrot.lane.b32.xlu1 %v1579_v23, %s1640_s26 }
 0xa41   : > { %745 = vrot.lane.b32.xlu1 %v737_v22, %s1641_s27 }
 0xaaf   : > { %v741_v24 = vpop.permute.xlu1 %740 }
 0xab0   : > { %v743_v25 = vmul.f32 %v1577_v16, %v741_v24 }
 0xab2   : > { %750 = vrot.lane.b32.xlu0 %v743_v25, %s1642_s28 }
 0xab3   : > { %v746_v26 = vpop.permute.xlu1 %745 }
 0xab4   : > { %748 = vst.msk [vmem:[#allocation3] sm:$0x3] %vm264_vm0, %v746_v26 }
 0xabb   : > { %v844_v27 = vld [vmem:[#allocation3] sm:$0x3] }
 0xabc   : > { %846 = vrot.lane.b32.xlu1 %v844_v27, %s1639_s25 }
 0xb24   : > { %v751_v28 = vpop.permute.xlu0 %750 }
 0xb25   : > { %753 = vst.msk [vmem:[#allocation2] sm:$0x3] %vm264_vm0, %v751_v28  ;;  %755 = vst.msk [vmem:[%s754_s5] sm:$0x3] %vm264_vm0, %v751_v28  ;;  %s1003_s5 = scalar_lea.vmem %s1714_s22, %s1451_s4  ;;  %s1239_s22 = scalar_lea.vmem %s1732_s3, %s1454_s7 }
 0xb26   : > { %v1004_v10 = vld [vmem:[%s1003_s5] sm:$0x3] }
 0xb2c   : > { %v762_v29 = vld [vmem:[#allocation2] sm:$0x3] }
 0xb2d   : > { %1500 = vmatmul.mubr.msk.f32.vlgmr.msra.gmra.mrb[4].mxu0 %vm273_vm2, %v762_v29 }
 0xb2e   : > { %1508 = vmatpush3.msra.mxu0 %v1696_v1  ;;  %1509 = vmatprep.mubr.msk.f32.mxu0 %vm1637_vm1, %v1636_v0  ;;  %v847_v41 = vpop.permute.xlu1 %846 }
 0xc00   : > { %v832_v31 = vpop.f32.mrb[4].mxu0 }
 0xc01   : > { %v836_v32 = vadd.f32 %v832_v31, %v761_v30  ;;  %v1501_v33 = vpop.f32.mrb[5].mxu0 }
 0xc03   : > { %1580 = vtanh.f32 %v836_v32  ;;  %v1446_v35 = vmul.f32 -1.442695, %v836_v32  ;;  %v1124_v32 = vld [vmem:[%s1123_s8] sm:$0x3] }
 0xc05   : > { %1582 = vpow2.f32 %v1446_v35 }
 0xc0d   : > { %v1581_v34 = vpop.eup %1580 }
 0xc0e   : > { %851 = vrot.lane.b32.xlu0 %v1581_v34, %s1638_s24 }
 0xc0f   : > { %v1583_v36 = vpop.eup %1582 }
 0xc10   : > { %v840_v37 = vadd.f32 1.0, %v1583_v36 }
 0xc12   : > { %1584 = vrcp.f32 %v840_v37 }
 0xc1c   : > { %v1585_v38 = vpop.eup %1584 }
 0xc1d   : > { %v849_v42 = vmul.f32 %v1585_v38, %v847_v41 }
 0xc80   : > { %v852_v39 = vpop.permute.xlu0 %851 }
 0xc81   : > { %v854_v40 = vmul.f32 %v1585_v38, %v852_v39 }
 0xc83   : > { %856 = vrot.lane.b32.xlu0 %v854_v40, %s1639_s25 }
 0xcf5   : > { %v857_v43 = vpop.permute.xlu0 %856 }
 0xcf6   : > { %v859_v44 = vadd.f32 %v857_v43, %v849_v42 }
 0xcf8   : > { %1586 = vtanh.f32 %v859_v44 }
 0xd02   : > { %v1587_v45 = vpop.eup %1586 }
 0xd03   : > { %862 = vrot.lane.b32.xlu1 %v1587_v45, %s1640_s26 }
 0xd07   : > { %867 = vrot.lane.b32.xlu1 %v859_v44, %s1641_s27 }
 0xd75   : > { %v863_v46 = vpop.permute.xlu1 %862 }
 0xd76   : > { %v865_v47 = vmul.f32 %v1585_v38, %v863_v46 }
 0xd78   : > { %872 = vrot.lane.b32.xlu0 %v865_v47, %s1642_s28 }
 0xd79   : > { %v868_v48 = vpop.permute.xlu1 %867 }
 0xd7a   : > { %870 = vst.msk [vmem:[#allocation3] sm:$0x3] %vm264_vm0, %v868_v48 }
 0xd81   : > { %v966_v49 = vld [vmem:[#allocation3] sm:$0x3] }
 0xd82   : > { %968 = vrot.lane.b32.xlu1 %v966_v49, %s1639_s25 }
 0xdea   : > { %v873_v50 = vpop.permute.xlu0 %872 }
 0xdeb   : > { %875 = vst.msk [vmem:[#allocation2] sm:$0x3] %vm264_vm0, %v873_v50  ;;  %877 = vst.msk [vmem:[%s876_s16] sm:$0x3] %vm264_vm0, %v873_v50 }
 0xdf2   : > { %v884_v51 = vld [vmem:[#allocation2] sm:$0x3] }
 0xdf3   : > { %1505 = vmatmul.mubr.msk.f32.vlgmr.msra.gmra.mrb[4].mxu1 %vm273_vm2, %v884_v51 }
 0xdf4   : > { %1513 = vmatpush3.msra.mxu1 %v1696_v1  ;;  %1514 = vmatprep.mubr.msk.f32.mxu1 %vm1637_vm1, %v1636_v0  ;;  %v969_v61 = vpop.permute.xlu1 %968 }
 0xec6   : > { %v954_v53 = vpop.f32.mrb[4].mxu1 }
 0xec7   : > { %v958_v54 = vadd.f32 %v954_v53, %v883_v52  ;;  %v1506_v55 = vpop.f32.mrb[5].mxu1 }
 0xec9   : > { %1588 = vtanh.f32 %v958_v54  ;;  %v1450_v1 = vmul.f32 -1.442695, %v958_v54 }
 0xecb   : > { %1590 = vpow2.f32 %v1450_v1 }
 0xed3   : > { %v1589_v56 = vpop.eup %1588 }
 0xed4   : > { %973 = vrot.lane.b32.xlu0 %v1589_v56, %s1638_s24 }
 0xed5   : > { %v1591_v0 = vpop.eup %1590 }
 0xed6   : > { %v962_v57 = vadd.f32 1.0, %v1591_v0 }
 0xed8   : > { %1592 = vrcp.f32 %v962_v57 }
 0xee2   : > { %v1593_v58 = vpop.eup %1592 }
 0xee3   : > { %v971_v62 = vmul.f32 %v1593_v58, %v969_v61 }
 0xf46   : > { %v974_v59 = vpop.permute.xlu0 %973 }
 0xf47   : > { %v976_v60 = vmul.f32 %v1593_v58, %v974_v59 }
 0xf49   : > { %978 = vrot.lane.b32.xlu0 %v976_v60, %s1639_s25 }
 0xfbb   : > { %v979_v63 = vpop.permute.xlu0 %978 }
 0xfbc   : > { %v981_v2 = vadd.f32 %v979_v63, %v971_v62 }
 0xfbe   : > { %1594 = vtanh.f32 %v981_v2 }
 0xfc8   : > { %v1595_v3 = vpop.eup %1594 }
 0xfc9   : > { %984 = vrot.lane.b32.xlu1 %v1595_v3, %s1640_s26 }
 0xfcd   : > { %989 = vrot.lane.b32.xlu1 %v981_v2, %s1641_s27 }
0x103b   : > { %v985_v4 = vpop.permute.xlu1 %984 }
0x103c   : > { %v987_v5 = vmul.f32 %v1593_v58, %v985_v4 }
0x103e   : > { %994 = vrot.lane.b32.xlu0 %v987_v5, %s1642_s28 }
0x103f   : > { %v990_v6 = vpop.permute.xlu1 %989 }
0x1040   : > { %992 = vst.msk [vmem:[#allocation3] sm:$0x3] %vm264_vm0, %v990_v6 }
0x1047   : > { %v1087_v7 = vld [vmem:[#allocation3] sm:$0x3] }
0x1048   : > { %1089 = vrot.lane.b32.xlu1 %v1087_v7, %s1639_s25 }
0x10b0   : > { %v995_v8 = vpop.permute.xlu0 %994 }
0x10b1   : > { %997 = vst.msk [vmem:[#allocation2] sm:$0x3] %vm264_vm0, %v995_v8  ;;  %999 = vst.msk [vmem:[%s998_s23] sm:$0x3] %vm264_vm0, %v995_v8 }
0x10b8   : > { %v1005_v9 = vld [vmem:[#allocation2] sm:$0x3] }
0x10b9   : > { %1510 = vmatmul.mubr.msk.f32.vlgmr.msra.gmra.mrb[6].mxu0 %vm273_vm2, %v1005_v9 }
0x10ba   : > { %v1090_v21 = vpop.permute.xlu1 %1089 }
0x118c   : > { %v1075_v11 = vpop.f32.mrb[6].mxu0 }
0x118d   : > { %v1079_v12 = vadd.f32 %v1075_v11, %v1004_v10  ;;  %v1511_v13 = vpop.f32.mrb[7].mxu0 }
0x118f   : > { %1596 = vtanh.f32 %v1079_v12  ;;  %v1453_v15 = vmul.f32 -1.442695, %v1079_v12 }
0x1191   : > { %1598 = vpow2.f32 %v1453_v15 }
0x1199   : > { %v1597_v14 = vpop.eup %1596 }
0x119a   : > { %1094 = vrot.lane.b32.xlu0 %v1597_v14, %s1638_s24 }
0x119b   : > { %v1599_v16 = vpop.eup %1598 }
0x119c   : > { %v1083_v17 = vadd.f32 1.0, %v1599_v16 }
0x119e   : > { %1600 = vrcp.f32 %v1083_v17 }
0x11a8   : > { %v1601_v18 = vpop.eup %1600 }
0x11a9   : > { %v1092_v22 = vmul.f32 %v1601_v18, %v1090_v21 }
0x120c   : > { %v1095_v19 = vpop.permute.xlu0 %1094 }
0x120d   : > { %v1097_v20 = vmul.f32 %v1601_v18, %v1095_v19 }
0x120f   : > { %1099 = vrot.lane.b32.xlu0 %v1097_v20, %s1639_s25 }
0x1281   : > { %v1100_v23 = vpop.permute.xlu0 %1099 }
0x1282   : > { %v1102_v24 = vadd.f32 %v1100_v23, %v1092_v22 }
0x1284   : > { %1602 = vtanh.f32 %v1102_v24 }
0x128e   : > { %v1603_v25 = vpop.eup %1602 }
0x128f   : > { %1105 = vrot.lane.b32.xlu1 %v1603_v25, %s1640_s26 }
0x1293   : > { %1110 = vrot.lane.b32.xlu1 %v1102_v24, %s1641_s27 }
0x1301   : > { %v1106_v26 = vpop.permute.xlu1 %1105 }
0x1302   : > { %v1108_v27 = vmul.f32 %v1601_v18, %v1106_v26 }
0x1304   : > { %1115 = vrot.lane.b32.xlu0 %v1108_v27, %s1642_s28 }
0x1305   : > { %v1111_v28 = vpop.permute.xlu1 %1110 }
0x1306   : > { %1113 = vst.msk [vmem:[#allocation3] sm:$0x3] %vm264_vm0, %v1111_v28 }
0x130d   : > { %v1207_v29 = vld [vmem:[#allocation3] sm:$0x3] }
0x130e   : > { %1209 = vrot.lane.b32.xlu1 %v1207_v29, %s1639_s25 }
0x1376   : > { %v1116_v30 = vpop.permute.xlu0 %1115 }
0x1377   : > { %1118 = vst.msk [vmem:[#allocation2] sm:$0x3] %vm264_vm0, %v1116_v30  ;;  %1120 = vst.msk [vmem:[%s1119_s9] sm:$0x3] %vm264_vm0, %v1116_v30 }
0x137e   : > { %v1125_v31 = vld [vmem:[#allocation2] sm:$0x3] }
0x137f   : > { %1515 = vmatmul.mubr.msk.f32.vlgmr.msra.gmra.mrb[6].mxu1 %vm273_vm2, %v1125_v31 }
0x1380   : > { %v1210_v43 = vpop.permute.xlu1 %1209 }
0x1452   : > { %v1195_v33 = vpop.f32.mrb[6].mxu1 }
0x1453   : > { %v1199_v34 = vadd.f32 %v1195_v33, %v1124_v32  ;;  %v1516_v35 = vpop.f32.mrb[7].mxu1 }
0x1455   : > { %1604 = vtanh.f32 %v1199_v34  ;;  %v1456_v37 = vmul.f32 -1.442695, %v1199_v34 }
0x1457   : > { %1606 = vpow2.f32 %v1456_v37 }
0x145f   : > { %v1605_v36 = vpop.eup %1604 }
0x1460   : > { %1214 = vrot.lane.b32.xlu0 %v1605_v36, %s1638_s24 }
0x1461   : > { %v1607_v38 = vpop.eup %1606 }
0x1462   : > { %v1203_v39 = vadd.f32 1.0, %v1607_v38 }
0x1464   : > { %1608 = vrcp.f32 %v1203_v39 }
0x146e   : > { %v1609_v40 = vpop.eup %1608 }
0x146f   : > { %v1212_v44 = vmul.f32 %v1609_v40, %v1210_v43 }
0x14d2   : > { %v1215_v41 = vpop.permute.xlu0 %1214 }
0x14d3   : > { %v1217_v42 = vmul.f32 %v1609_v40, %v1215_v41 }
0x14d5   : > { %1219 = vrot.lane.b32.xlu0 %v1217_v42, %s1639_s25 }
0x1547   : > { %v1220_v45 = vpop.permute.xlu0 %1219 }
0x1548   : > { %v1222_v46 = vadd.f32 %v1220_v45, %v1212_v44 }
0x154a   : > { %1610 = vtanh.f32 %v1222_v46  ;;  %1230 = vrot.lane.b32.xlu0 %v1222_v46, %s1641_s27 }
0x1554   : > { %v1611_v47 = vpop.eup %1610 }
0x1555   : > { %1225 = vrot.lane.b32.xlu1 %v1611_v47, %s1640_s26 }
0x15bc   : > { %v1231_v48 = vpop.permute.xlu0 %1230 }
0x15bd   : > { %1233 = vst.msk [vmem:[#allocation3] sm:$0x3] %vm264_vm0, %v1231_v48 }
0x15c7   : > { %v1226_v49 = vpop.permute.xlu1 %1225 }
0x15c8   : > { %v1228_v50 = vmul.f32 %v1609_v40, %v1226_v49 }
0x15ca   : > { %1235 = vrot.lane.b32.xlu1 %v1228_v50, %s1642_s28 }
0x163c   : > { %v1236_v51 = vpop.permute.xlu1 %1235 }
0x163d   : > { %1238 = vst.msk [vmem:[#allocation2] sm:$0x3] %vm264_vm0, %v1236_v51  ;;  %1240 = vst.msk [vmem:[%s1239_s22] sm:$0x3] %vm264_vm0, %v1236_v51 }
0x163e PF: > { %s12_s11 = sadd.s32 1, %s1634_s11   ;;  %s1914_s9 = smov %s1630_s10 }
0x163f   : > { %p9_p5 = scmp.ge.s32.totalorder %s12_s11, 4   ;;  %s1915_s10 = smov %s1917_s12 }
0x1641   :  { %11 = sbr.rel (!%p9_p5) target bundleno = 2 (0x2), region = 81 }

// kernel: pos_biaffine_forward.14
= control target key start
LH: loop header
LB: loop body
LE: loop exit
PB: predicated region body
PF: predicated region fallthrough
CT: control target
= control target key end

     0   :  { %vm31_vm0 = vcmask 130048   ;;  %vm203_vm1 = vcmask 523264   ;;  %s572_s3 = inlined_call_operand.vmem [shape: f32[2,16,64], index: 3, kind: input, shape index: {}]   ;;  %s573_s1 = inlined_call_operand.vmem [shape: f32[2,16,16], index: 1, kind: input, shape index: {}, may-alias: {0,1}]   ;;  %s574_s2 = inlined_call_operand.vmem [shape: f32[2,16,64], index: 2, kind: input, shape index: {}]   ;;  %s575_s0 = inlined_call_operand.vmem [shape: f32[2,16,16], index: 0, kind: input, shape index: {}, may-alias: {0,1}]   ;;  %s576_s4 = inlined_call_operand.vmem [shape: f32[2,1,64], index: 4, kind: input, shape index: {}]   ;;  %s577_s5 = inlined_call_operand.vmem [shape: f32[2,16,64], index: 5, kind: output, shape index: {}]  }
   0x1   :  { %v29_v0 = vld [vmem:[%s572_s3] sm:$0xff]  ;;  %v30_v1 = vld [vmem:[%s572_s3 + $0x8] sm:$0xff]  ;;  %v406_v2 = vld [vmem:[%s572_s3 + $0x10] sm:$0xff] }
   0x2   :  { %v460_v3 = vpack.c.bf16 %v30_v1, %v29_v0  ;;  %v407_v4 = vld [vmem:[%s572_s3 + $0x18] sm:$0xff]  ;;  %v395_v5 = vld [vmem:[%s573_s1 + $0x10] sm:$0xff]  ;;  %v25_v7 = vld [vmem:[%s574_s2] sm:$0xff] }
   0x3   :  { %v468_v6 = vpack.c.bf16 %v407_v4, %v406_v2  ;;  %436 = vmatprep.mubr.msk.f32.mxu0 %vm31_vm0, %v395_v5  ;;  %450 = vmatprep.mubr.msk.f32.mxu1 %vm31_vm0, %v395_v5  ;;  %v26_v8 = vld [vmem:[%s574_s2 + $0x8] sm:$0xff]  ;;  %v402_v9 = vld [vmem:[%s574_s2 + $0x10] sm:$0xff]  ;;  %v403_v11 = vld [vmem:[%s574_s2 + $0x18] sm:$0xff] }
   0x4   :  { %461 = vmatprep.subr.bf16.mxu0 %v460_v3  ;;  %v464_v10 = vpack.c.bf16 %v26_v8, %v25_v7  ;;  %v396_v12 = vld [vmem:[%s573_s1 + $0x18] sm:$0xff]  ;;  %v472_v13 = vpack.c.bf16 %v403_v11, %v402_v9  ;;  %v23_v14 = vld [vmem:[%s575_s0] sm:$0xff]  ;;  %v24_v15 = vld [vmem:[%s575_s0 + $0x8] sm:$0xff] }
   0x5   :  { %469 = vmatprep.subr.bf16.mxu1 %v468_v6  ;;  %463 = vmatpush3.bf16.msra.mxu0 %v460_v3  ;;  %v401_v16 = vld [vmem:[%s576_s4] ss:$0 sm:$0xff]  ;;  %v413_v17 = vld [vmem:[%s576_s4 + $0x1] ss:$0 sm:$0xff] }
   0x6   :  { %471 = vmatpush3.bf16.msra.mxu1 %v468_v6  ;;  %465 = vmatprep.subr.bf16.mxu0 %v464_v10 }
   0x7   :  { %473 = vmatprep.subr.bf16.mxu1 %v472_v13 }
   0x8   :  { %437 = vmatmul.mubr.msk.f32.vlgmr.msra.gmra.mrb[0].mxu0 %vm31_vm0, %v396_v12 }
   0x9   :  { %451 = vmatmul.mubr.msk.f32.vlgmr.msra.gmra.mrb[0].mxu1 %vm31_vm0, %v396_v12  ;;  %467 = vmatpush3.bf16.msra.mxu0 %v464_v10 }
   0xa   :  { %475 = vmatpush3.bf16.msra.mxu1 %v472_v13  ;;  %443 = vmatprep.mubr.msk.f32.mxu0 %vm31_vm0, %v23_v14 }
   0xb   :  { %457 = vmatprep.mubr.msk.f32.mxu1 %vm31_vm0, %v23_v14 }
  0x10   :  { %444 = vmatmul.mubr.msk.f32.vlgmr.msra.gmra.mrb[0].mxu0 %vm31_vm0, %v24_v15 }
  0x11   :  { %458 = vmatmul.mubr.msk.f32.vlgmr.msra.gmra.mrb[0].mxu1 %vm31_vm0, %v24_v15 }
  0xe3   :  { %v445_v18 = vpop.f32.mrb[0].mxu0 }
  0xe4   :  { %v202_v19 = vadd.f32 %v445_v18, %v401_v16  ;;  %v459_v20 = vpop.f32.mrb[0].mxu1  ;;  %v185_v21 = vpop.f32.mrb[1].mxu0 }
  0xe5   :  { %v387_v22 = vadd.f32 %v459_v20, %v413_v17  ;;  %v201_v23 = vadd.f32 %v401_v16, %v185_v21  ;;  %v369_v24 = vpop.f32.mrb[1].mxu1 }
  0xe6   :  { %205 = vst.msk [vmem:[%s577_s5 + $0x8] sm:$0xff] %vm203_vm1, %v202_v19  ;;  %v386_v25 = vadd.f32 %v413_v17, %v369_v24 }
  0xe7   :  { %415 = vst.msk [vmem:[%s577_s5 + $0x18] sm:$0xff] %vm203_vm1, %v387_v22  ;;  %204 = vst.msk [vmem:[%s577_s5] sm:$0xff] %vm203_vm1, %v201_v23 }
  0xe8   :  { %414 = vst.msk [vmem:[%s577_s5 + $0x10] sm:$0xff] %vm203_vm1, %v386_v25 }

// kernel: pos_biaffine_forward.13
= control target key start
LH: loop header
LB: loop body
LE: loop exit
PB: predicated region body
PF: predicated region fallthrough
CT: control target
= control target key end

     0   :  { %s1714_s9 = smov 0   ;;  %s1716_s10 = smov 0   ;;  %s1964_s0 = inlined_call_operand.vmem [shape: f32[2,8,2,64], index: 0, kind: input, shape index: {}]   ;;  %s1965_s1 = inlined_call_operand.vmem [shape: f32[2,16,64], index: 1, kind: input, shape index: {}]   ;;  %s1966_s2 = inlined_call_operand.vmem [shape: f32[2,8,2,16], index: 2, kind: output, shape index: {}]  }
   0x1   :  { %s1718_s11 = smov 0  }
   0x2 LB: > { %s24_s12 = sadd.s32 1, %s1685_s10  ;;  %p1427_p0 = scmp.ge.s32.totalorder %s1689_s11, 1  ;;  %s1689_s11 = sphi %s1718_s11, %s12_s11   ;;  %s1685_s10 = sphi %s1716_s10, %s1968_s10   ;;  %s1681_s9 = sphi %s1714_s9, %s1967_s9  }
   0x3   : > { %p26_p1 = scmp.ge.s32.totalorder %s24_s12, 2  ;;  %p173_p2 = scmp.lt.s32.totalorder %s1689_s11, 3 }
   0x5   : > { %s1970_s12 = smov (%p26_p1, %s24_s12), 0  ;;  %p174_p3 = pnand %p1427_p0, %p173_p2 }
   0x6   : > { %p224_p4 = scmp.lt.s32.totalorder (!%p174_p3), %s1681_s9, 1  ;;  %vm267_vm0 = vcmask (!%p174_p3), 123904   ;;  %v1691_v0 = vmov (!%p174_p3), 0.0|0.0   ;;  %v1692_v1 = vmov (!%p174_p3), 0.0   ;;  %vm1693_vm1 = vmmov (!%p174_p3), 0   ;;  %s1434_s18 = smul.u32 (!%p174_p3), 14, %s1681_s9 }
   0x7   : > { %177 = sbr.rel (%p174_p3) target bundleno = 5697 (0x1641), region = 28  ;;  %1547 = vmatprep.subr.bf16.mxu0 (!%p174_p3), %v1691_v0  ;;  %268 = vst.msk [vmem:[#allocation2] sm:$0x3] (!%p174_p3), %vm267_vm0, %v1692_v1  ;;  %269 = vst.msk [vmem:[#allocation3] sm:$0x3] (!%p174_p3), %vm267_vm0, %v1692_v1  ;;  %1495 = vmatprep.mubr.msk.f32.mxu0 (!%p174_p3), %vm1693_vm1, %v1692_v1  ;;  %vm277_vm2 = vcmask (!%p174_p3), 130048  }
   0x8   : > { %1550 = vmatprep.subr.bf16.mxu1 (!%p174_p3), %v1691_v0  ;;  %1502 = vmatprep.mubr.msk.f32.mxu1 (!%p174_p3), %vm1693_vm1, %v1692_v1  ;;  %s1694_s23 = smov (!%p174_p3), 96   ;;  %s1695_s24 = smov (!%p174_p3), 16  }
   0x9   : > { %s1696_s25 = smov (!%p174_p3), 32   ;;  %s1697_s26 = smov (!%p174_p3), 112  }
   0xa   : > { %s1698_s27 = smov (!%p174_p3), 80   ;;  %s395_s4 = smul.u32 (!%p174_p3), 6, %s1681_s9 }
   0xb   : > { %s1799_s5 = ssub.s32 (!%p174_p3), 1, %s1681_s9 }
   0xc   : > { %s1802_s6 = sadd.s32 (!%p174_p3), %s395_s4, %s1799_s5  ;;  %s1440_s15 = sshll.u32 (!%p174_p3), %s1799_s5, 1 }
   0xd   : > { %s1437_s7 = sshll.u32 (!%p174_p3), %s1802_s6, 1  ;;  %s638_s20 = smul.u32 (!%p174_p3), 3, %s1799_s5 }
   0xe   : > { %s225_s13 = scalar_select %p224_p4, %s1681_s9, 1  ;;  %v276_v5 = vld [vmem:[#allocation2] sm:$0x3]  ;;  %v359_v11 = vld [vmem:[#allocation3] sm:$0x3] }
   0xf   : > { %s761_s6 = smul.u32 3, %s1681_s9 }
  0x10   : > { %s1746_s14 = sshll.u32 %s225_s13, 4 }
  0x11   : > { %s242_s17 = scalar_lea.vmem %s1965_s1, %s1746_s14  ;;  %s1768_s21 = scalar_lea.vmem %s1964_s0, %s1746_s14 }
  0x12   : > { %v270_v2 = vld [vmem:[%s242_s17] sm:$0xff]  ;;  %v271_v3 = vld [vmem:[%s242_s17 + $0x8] sm:$0xff]  ;;  %s274_s22 = scalar_lea.vmem %s1768_s21, %s1434_s18  ;;  %s1785_s30 = scalar_lea.vmem %s1966_s2, %s1746_s14 }
  0x13   : > { %v1752_v4 = vpack.c.bf16 %v271_v3, %v270_v2  ;;  %v275_v6 = vld [vmem:[%s274_s22] sm:$0x3]  ;;  %s392_s3 = scalar_lea.vmem %s1785_s30, %s1434_s18  ;;  %s398_s8 = scalar_lea.vmem %s1768_s21, %s1437_s7 }
  0x14   : > { %v399_v29 = vld [vmem:[%s398_s8] sm:$0x3]  ;;  %s514_s13 = scalar_lea.vmem %s1785_s30, %s1437_s7  ;;  %s517_s14 = smul.u32 5, %s1681_s9 }
  0x15   : > { %1549 = vmatpush3.bf16.msra.mxu0 %v1752_v4  ;;  %1552 = vmatpush3.bf16.msra.mxu1 %v1752_v4  ;;  %s1444_s22 = sshll.u32 %s1681_s9, 2  ;;  %s1448_s7 = sshll.u32 %s1799_s5, 2 }
  0x16   : > { %1553 = vmatprep.subr.bf16.mxu0 %v1691_v0  ;;  %1556 = vmatprep.subr.bf16.mxu1 %v1691_v0  ;;  %s1827_s16 = sadd.s32 %s1440_s15, %s517_s14  ;;  %s1852_s28 = sadd.s32 %s1444_s22, %s638_s20 }
  0x17   : > { %s1441_s17 = sshll.u32 %s1827_s16, 1  ;;  %s1445_s29 = sshll.u32 %s1852_s28, 1 }
  0x18   : > { %1496 = vmatmul.mubr.msk.f32.vlgmr.msra.gmra.mrb[0].mxu0 %vm277_vm2, %v276_v5  ;;  %s520_s18 = scalar_lea.vmem %s1768_s21, %s1441_s17  ;;  %s636_s19 = scalar_lea.vmem %s1785_s30, %s1441_s17 }
  0x19   : > { %1555 = vmatpush3.bf16.msra.mxu0 %v1752_v4  ;;  %1509 = vmatprep.mubr.msk.f32.mxu0 %vm1693_vm1, %v1692_v1  ;;  %v521_v51 = vld [vmem:[%s520_s18] sm:$0x3]  ;;  %s758_s4 = scalar_lea.vmem %s1785_s30, %s1445_s29  ;;  %s1876_s8 = sadd.s32 %s1448_s7, %s761_s6 }
  0x1a   : > { %1559 = vmatprep.subr.bf16.mxu0 %v1691_v0  ;;  %s882_s16 = smul.u32 5, %s1799_s5  ;;  %s1452_s17 = sshll.u32 %s1681_s9, 1 }
  0x1b   : > { %s1004_s28 = smul.u32 6, %s1799_s5 }
  0x1c   : > { %s1900_s18 = sadd.s32 %s1452_s17, %s882_s16  ;;  %s1459_s6 = smul.u32 14, %s1799_s5 }
  0x1e   : > { %s1127_s7 = scalar_lea.vmem %s1768_s21, %s1459_s6 }
  0xeb   : > { %v347_v7 = vpop.f32.mrb[0].mxu0 }
  0xec   : > { %v351_v8 = vadd.f32 %v347_v7, %v275_v6  ;;  %v1497_v9 = vpop.f32.mrb[1].mxu0 }
  0xee   : > { %1603 = vtanh.f32 %v351_v8  ;;  %v1436_v12 = vmul.f32 -1.442695, %v351_v8 }
  0xf0   : > { %1605 = vpow2.f32 %v1436_v12 }
  0xf8   : > { %v1604_v10 = vpop.eup %1603 }
  0xf9   : > { %366 = vrot.lane.b32.xlu0 %v1604_v10, %s1694_s23 }
  0xfa   : > { %v1606_v13 = vpop.eup %1605 }
  0xfb   : > { %v355_v14 = vadd.f32 1.0, %v1606_v13 }
  0xfd   : > { %361 = vrot.lane.b32.xlu0 %v359_v11, %s1695_s24  ;;  %1607 = vrcp.f32 %v355_v14 }
 0x107   : > { %v1608_v15 = vpop.eup %1607 }
 0x16b   : > { %v367_v16 = vpop.permute.xlu0 %366 }
 0x16c   : > { %v369_v17 = vmul.f32 %v1608_v15, %v367_v16 }
 0x16e   : > { %371 = vrot.lane.b32.xlu1 %v369_v17, %s1695_s24 }
 0x16f   : > { %v362_v18 = vpop.permute.xlu0 %361 }
 0x170   : > { %v364_v19 = vmul.f32 %v1608_v15, %v362_v18 }
 0x1e0   : > { %v372_v20 = vpop.permute.xlu1 %371 }
 0x1e1   : > { %v374_v21 = vadd.f32 %v372_v20, %v364_v19 }
 0x1e3   : > { %1609 = vtanh.f32 %v374_v21 }
 0x1ed   : > { %v1610_v22 = vpop.eup %1609 }
 0x1ee   : > { %377 = vrot.lane.b32.xlu1 %v1610_v22, %s1696_s25 }
 0x1f2   : > { %382 = vrot.lane.b32.xlu1 %v374_v21, %s1697_s26 }
 0x260   : > { %v378_v23 = vpop.permute.xlu1 %377 }
 0x261   : > { %v380_v24 = vmul.f32 %v1608_v15, %v378_v23 }
 0x263   : > { %388 = vrot.lane.b32.xlu0 %v380_v24, %s1698_s27 }
 0x264   : > { %v383_v25 = vpop.permute.xlu1 %382 }
 0x265   : > { %386 = vst.msk [vmem:[#allocation3] sm:$0x3] %vm267_vm0, %v383_v25 }
 0x26c   : > { %v482_v26 = vld [vmem:[#allocation3] sm:$0x3] }
 0x26d   : > { %484 = vrot.lane.b32.xlu1 %v482_v26, %s1695_s24 }
 0x2d5   : > { %v389_v27 = vpop.permute.xlu0 %388 }
 0x2d6   : > { %391 = vst.msk [vmem:[#allocation2] sm:$0x3] %vm267_vm0, %v389_v27  ;;  %393 = vst.msk [vmem:[%s392_s3] sm:$0x3] %vm267_vm0, %v389_v27  ;;  %s642_s3 = scalar_lea.vmem %s1768_s21, %s1445_s29  ;;  %s1921_s29 = sadd.s32 %s1681_s9, %s1004_s28 }
 0x2d7   : > { %v643_v12 = vld [vmem:[%s642_s3] sm:$0x3]  ;;  %s1456_s3 = sshll.u32 %s1921_s29, 1 }
 0x2d8   : > { %s1123_s9 = scalar_lea.vmem %s1785_s30, %s1456_s3 }
 0x2dd   : > { %v400_v28 = vld [vmem:[#allocation2] sm:$0x3] }
 0x2de   : > { %1503 = vmatmul.mubr.msk.f32.vlgmr.msra.gmra.mrb[0].mxu1 %vm277_vm2, %v400_v28 }
 0x2df   : > { %1558 = vmatpush3.bf16.msra.mxu1 %v1752_v4  ;;  %1516 = vmatprep.mubr.msk.f32.mxu1 %vm1693_vm1, %v1692_v1  ;;  %v485_v40 = vpop.permute.xlu1 %484 }
 0x2e0   : > { %1562 = vmatprep.subr.bf16.mxu1 %v1691_v0 }
 0x3b1   : > { %v470_v30 = vpop.f32.mrb[0].mxu1 }
 0x3b2   : > { %v474_v31 = vadd.f32 %v470_v30, %v399_v29  ;;  %v1504_v32 = vpop.f32.mrb[1].mxu1 }
 0x3b4   : > { %1611 = vtanh.f32 %v474_v31  ;;  %v1439_v34 = vmul.f32 -1.442695, %v474_v31 }
 0x3b6   : > { %1613 = vpow2.f32 %v1439_v34 }
 0x3be   : > { %v1612_v33 = vpop.eup %1611 }
 0x3bf   : > { %489 = vrot.lane.b32.xlu0 %v1612_v33, %s1694_s23 }
 0x3c0   : > { %v1614_v35 = vpop.eup %1613 }
 0x3c1   : > { %v478_v36 = vadd.f32 1.0, %v1614_v35 }
 0x3c3   : > { %1615 = vrcp.f32 %v478_v36 }
 0x3cd   : > { %v1616_v37 = vpop.eup %1615 }
 0x3ce   : > { %v487_v41 = vmul.f32 %v1616_v37, %v485_v40 }
 0x431   : > { %v490_v38 = vpop.permute.xlu0 %489 }
 0x432   : > { %v492_v39 = vmul.f32 %v1616_v37, %v490_v38 }
 0x434   : > { %494 = vrot.lane.b32.xlu0 %v492_v39, %s1695_s24 }
 0x4a6   : > { %v495_v42 = vpop.permute.xlu0 %494 }
 0x4a7   : > { %v497_v43 = vadd.f32 %v495_v42, %v487_v41 }
 0x4a9   : > { %1617 = vtanh.f32 %v497_v43 }
 0x4b3   : > { %v1618_v44 = vpop.eup %1617 }
 0x4b4   : > { %500 = vrot.lane.b32.xlu1 %v1618_v44, %s1696_s25 }
 0x4b8   : > { %505 = vrot.lane.b32.xlu1 %v497_v43, %s1697_s26 }
 0x526   : > { %v501_v45 = vpop.permute.xlu1 %500 }
 0x527   : > { %v503_v46 = vmul.f32 %v1616_v37, %v501_v45 }
 0x529   : > { %510 = vrot.lane.b32.xlu0 %v503_v46, %s1698_s27 }
 0x52a   : > { %v506_v47 = vpop.permute.xlu1 %505 }
 0x52b   : > { %508 = vst.msk [vmem:[#allocation3] sm:$0x3] %vm267_vm0, %v506_v47 }
 0x532   : > { %v604_v48 = vld [vmem:[#allocation3] sm:$0x3] }
 0x533   : > { %606 = vrot.lane.b32.xlu1 %v604_v48, %s1695_s24 }
 0x59b   : > { %v511_v49 = vpop.permute.xlu0 %510 }
 0x59c   : > { %513 = vst.msk [vmem:[#allocation2] sm:$0x3] %vm267_vm0, %v511_v49  ;;  %515 = vst.msk [vmem:[%s514_s13] sm:$0x3] %vm267_vm0, %v511_v49  ;;  %s1449_s13 = sshll.u32 %s1876_s8, 1 }
 0x59d   : > { %s764_s14 = scalar_lea.vmem %s1768_s21, %s1449_s13  ;;  %s880_s15 = scalar_lea.vmem %s1785_s30, %s1449_s13 }
 0x59e   : > { %v765_v33 = vld [vmem:[%s764_s14] sm:$0x3] }
 0x5a3   : > { %v522_v50 = vld [vmem:[#allocation2] sm:$0x3] }
 0x5a4   : > { %1510 = vmatmul.mubr.msk.f32.vlgmr.msra.gmra.mrb[2].mxu0 %vm277_vm2, %v522_v50 }
 0x5a5   : > { %1561 = vmatpush3.bf16.msra.mxu0 %v1752_v4  ;;  %1523 = vmatprep.mubr.msk.f32.mxu0 %vm1693_vm1, %v1692_v1  ;;  %v607_v62 = vpop.permute.xlu1 %606 }
 0x5a6   : > { %1565 = vmatprep.subr.bf16.mxu0 %v1691_v0 }
 0x677   : > { %v592_v52 = vpop.f32.mrb[2].mxu0 }
 0x678   : > { %v596_v53 = vadd.f32 %v592_v52, %v521_v51  ;;  %v1511_v54 = vpop.f32.mrb[3].mxu0 }
 0x67a   : > { %1619 = vtanh.f32 %v596_v53  ;;  %v1443_v56 = vmul.f32 -1.442695, %v596_v53 }
 0x67c   : > { %1621 = vpow2.f32 %v1443_v56 }
 0x684   : > { %v1620_v55 = vpop.eup %1619 }
 0x685   : > { %611 = vrot.lane.b32.xlu0 %v1620_v55, %s1694_s23 }
 0x686   : > { %v1622_v57 = vpop.eup %1621 }
 0x687   : > { %v600_v58 = vadd.f32 1.0, %v1622_v57 }
 0x689   : > { %1623 = vrcp.f32 %v600_v58 }
 0x693   : > { %v1624_v59 = vpop.eup %1623 }
 0x694   : > { %v609_v63 = vmul.f32 %v1624_v59, %v607_v62 }
 0x6f7   : > { %v612_v60 = vpop.permute.xlu0 %611 }
 0x6f8   : > { %v614_v61 = vmul.f32 %v1624_v59, %v612_v60 }
 0x6fa   : > { %616 = vrot.lane.b32.xlu0 %v614_v61, %s1695_s24 }
 0x76c   : > { %v617_v2 = vpop.permute.xlu0 %616 }
 0x76d   : > { %v619_v3 = vadd.f32 %v617_v2, %v609_v63 }
 0x76f   : > { %1625 = vtanh.f32 %v619_v3 }
 0x779   : > { %v1626_v5 = vpop.eup %1625 }
 0x77a   : > { %622 = vrot.lane.b32.xlu1 %v1626_v5, %s1696_s25 }
 0x77e   : > { %627 = vrot.lane.b32.xlu1 %v619_v3, %s1697_s26 }
 0x7ec   : > { %v623_v6 = vpop.permute.xlu1 %622 }
 0x7ed   : > { %v625_v7 = vmul.f32 %v1624_v59, %v623_v6 }
 0x7ef   : > { %632 = vrot.lane.b32.xlu0 %v625_v7, %s1698_s27 }
 0x7f0   : > { %v628_v8 = vpop.permute.xlu1 %627 }
 0x7f1   : > { %630 = vst.msk [vmem:[#allocation3] sm:$0x3] %vm267_vm0, %v628_v8 }
 0x7f8   : > { %v726_v9 = vld [vmem:[#allocation3] sm:$0x3] }
 0x7f9   : > { %728 = vrot.lane.b32.xlu1 %v726_v9, %s1695_s24 }
 0x861   : > { %v633_v10 = vpop.permute.xlu0 %632 }
 0x862   : > { %635 = vst.msk [vmem:[#allocation2] sm:$0x3] %vm267_vm0, %v633_v10  ;;  %637 = vst.msk [vmem:[%s636_s19] sm:$0x3] %vm267_vm0, %v633_v10  ;;  %s1453_s19 = sshll.u32 %s1900_s18, 1 }
 0x863   : > { %s886_s20 = scalar_lea.vmem %s1768_s21, %s1453_s19  ;;  %s1002_s22 = scalar_lea.vmem %s1785_s30, %s1453_s19 }
 0x864   : > { %v887_v55 = vld [vmem:[%s886_s20] sm:$0x3] }
 0x869   : > { %v644_v11 = vld [vmem:[#allocation2] sm:$0x3] }
 0x86a   : > { %1517 = vmatmul.mubr.msk.f32.vlgmr.msra.gmra.mrb[2].mxu1 %vm277_vm2, %v644_v11 }
 0x86b   : > { %1564 = vmatpush3.bf16.msra.mxu1 %v1752_v4  ;;  %1530 = vmatprep.mubr.msk.f32.mxu1 %vm1693_vm1, %v1692_v1  ;;  %v729_v22 = vpop.permute.xlu1 %728 }
 0x86c   : > { %1568 = vmatprep.subr.bf16.mxu1 %v1691_v0 }
 0x93d   : > { %v714_v13 = vpop.f32.mrb[2].mxu1 }
 0x93e   : > { %v718_v14 = vadd.f32 %v714_v13, %v643_v12  ;;  %v1518_v15 = vpop.f32.mrb[3].mxu1 }
 0x940   : > { %1627 = vtanh.f32 %v718_v14  ;;  %v1447_v17 = vmul.f32 -1.442695, %v718_v14 }
 0x942   : > { %1629 = vpow2.f32 %v1447_v17 }
 0x94a   : > { %v1628_v16 = vpop.eup %1627 }
 0x94b   : > { %733 = vrot.lane.b32.xlu0 %v1628_v16, %s1694_s23 }
 0x94c   : > { %v1630_v0 = vpop.eup %1629 }
 0x94d   : > { %v722_v18 = vadd.f32 1.0, %v1630_v0 }
 0x94f   : > { %1631 = vrcp.f32 %v722_v18 }
 0x959   : > { %v1632_v19 = vpop.eup %1631 }
 0x95a   : > { %v731_v23 = vmul.f32 %v1632_v19, %v729_v22 }
 0x9bd   : > { %v734_v20 = vpop.permute.xlu0 %733 }
 0x9be   : > { %v736_v21 = vmul.f32 %v1632_v19, %v734_v20 }
 0x9c0   : > { %738 = vrot.lane.b32.xlu0 %v736_v21, %s1695_s24 }
 0xa32   : > { %v739_v24 = vpop.permute.xlu0 %738 }
 0xa33   : > { %v741_v25 = vadd.f32 %v739_v24, %v731_v23 }
 0xa35   : > { %1633 = vtanh.f32 %v741_v25 }
 0xa3f   : > { %v1634_v26 = vpop.eup %1633 }
 0xa40   : > { %744 = vrot.lane.b32.xlu1 %v1634_v26, %s1696_s25 }
 0xa44   : > { %749 = vrot.lane.b32.xlu1 %v741_v25, %s1697_s26 }
 0xab2   : > { %v745_v27 = vpop.permute.xlu1 %744 }
 0xab3   : > { %v747_v28 = vmul.f32 %v1632_v19, %v745_v27 }
 0xab5   : > { %754 = vrot.lane.b32.xlu0 %v747_v28, %s1698_s27 }
 0xab6   : > { %v750_v29 = vpop.permute.xlu1 %749 }
 0xab7   : > { %752 = vst.msk [vmem:[#allocation3] sm:$0x3] %vm267_vm0, %v750_v29 }
 0xabe   : > { %v848_v30 = vld [vmem:[#allocation3] sm:$0x3] }
 0xabf   : > { %850 = vrot.lane.b32.xlu1 %v848_v30, %s1695_s24 }
 0xb27   : > { %v755_v31 = vpop.permute.xlu0 %754 }
 0xb28   : > { %757 = vst.msk [vmem:[#allocation2] sm:$0x3] %vm267_vm0, %v755_v31  ;;  %759 = vst.msk [vmem:[%s758_s4] sm:$0x3] %vm267_vm0, %v755_v31  ;;  %s1007_s4 = scalar_lea.vmem %s1768_s21, %s1456_s3  ;;  %s1243_s21 = scalar_lea.vmem %s1785_s30, %s1459_s6 }
 0xb29   : > { %v1008_v14 = vld [vmem:[%s1007_s4] sm:$0x3] }
 0xb2f   : > { %v766_v32 = vld [vmem:[#allocation2] sm:$0x3] }
 0xb30   : > { %1524 = vmatmul.mubr.msk.f32.vlgmr.msra.gmra.mrb[4].mxu0 %vm277_vm2, %v766_v32 }
 0xb31   : > { %1567 = vmatpush3.bf16.msra.mxu0 %v1752_v4  ;;  %1537 = vmatprep.mubr.msk.f32.mxu0 %vm1693_vm1, %v1692_v1  ;;  %v851_v44 = vpop.permute.xlu1 %850 }
 0xc03   : > { %v836_v34 = vpop.f32.mrb[4].mxu0 }
 0xc04   : > { %v840_v35 = vadd.f32 %v836_v34, %v765_v33  ;;  %v1525_v36 = vpop.f32.mrb[5].mxu0 }
 0xc06   : > { %1635 = vtanh.f32 %v840_v35  ;;  %v1451_v38 = vmul.f32 -1.442695, %v840_v35  ;;  %v1128_v35 = vld [vmem:[%s1127_s7] sm:$0x3] }
 0xc08   : > { %1637 = vpow2.f32 %v1451_v38 }
 0xc10   : > { %v1636_v37 = vpop.eup %1635 }
 0xc11   : > { %855 = vrot.lane.b32.xlu0 %v1636_v37, %s1694_s23 }
 0xc12   : > { %v1638_v39 = vpop.eup %1637 }
 0xc13   : > { %v844_v40 = vadd.f32 1.0, %v1638_v39 }
 0xc15   : > { %1639 = vrcp.f32 %v844_v40 }
 0xc1f   : > { %v1640_v41 = vpop.eup %1639 }
 0xc20   : > { %v853_v45 = vmul.f32 %v1640_v41, %v851_v44 }
 0xc83   : > { %v856_v42 = vpop.permute.xlu0 %855 }
 0xc84   : > { %v858_v43 = vmul.f32 %v1640_v41, %v856_v42 }
 0xc86   : > { %860 = vrot.lane.b32.xlu0 %v858_v43, %s1695_s24 }
 0xcf8   : > { %v861_v46 = vpop.permute.xlu0 %860 }
 0xcf9   : > { %v863_v47 = vadd.f32 %v861_v46, %v853_v45 }
 0xcfb   : > { %1641 = vtanh.f32 %v863_v47 }
 0xd05   : > { %v1642_v48 = vpop.eup %1641 }
 0xd06   : > { %866 = vrot.lane.b32.xlu1 %v1642_v48, %s1696_s25 }
 0xd0a   : > { %871 = vrot.lane.b32.xlu1 %v863_v47, %s1697_s26 }
 0xd78   : > { %v867_v49 = vpop.permute.xlu1 %866 }
 0xd79   : > { %v869_v50 = vmul.f32 %v1640_v41, %v867_v49 }
 0xd7b   : > { %876 = vrot.lane.b32.xlu0 %v869_v50, %s1698_s27 }
 0xd7c   : > { %v872_v51 = vpop.permute.xlu1 %871 }
 0xd7d   : > { %874 = vst.msk [vmem:[#allocation3] sm:$0x3] %vm267_vm0, %v872_v51 }
 0xd84   : > { %v970_v52 = vld [vmem:[#allocation3] sm:$0x3] }
 0xd85   : > { %972 = vrot.lane.b32.xlu1 %v970_v52, %s1695_s24 }
 0xded   : > { %v877_v53 = vpop.permute.xlu0 %876 }
 0xdee   : > { %879 = vst.msk [vmem:[#allocation2] sm:$0x3] %vm267_vm0, %v877_v53  ;;  %881 = vst.msk [vmem:[%s880_s15] sm:$0x3] %vm267_vm0, %v877_v53 }
 0xdf5   : > { %v888_v54 = vld [vmem:[#allocation2] sm:$0x3] }
 0xdf6   : > { %1531 = vmatmul.mubr.msk.f32.vlgmr.msra.gmra.mrb[4].mxu1 %vm277_vm2, %v888_v54 }
 0xdf7   : > { %1570 = vmatpush3.bf16.msra.mxu1 %v1752_v4  ;;  %1544 = vmatprep.mubr.msk.f32.mxu1 %vm1693_vm1, %v1692_v1  ;;  %v973_v2 = vpop.permute.xlu1 %972 }
 0xec9   : > { %v958_v56 = vpop.f32.mrb[4].mxu1 }
 0xeca   : > { %v962_v57 = vadd.f32 %v958_v56, %v887_v55  ;;  %v1532_v58 = vpop.f32.mrb[5].mxu1 }
 0xecc   : > { %1643 = vtanh.f32 %v962_v57  ;;  %v1455_v4 = vmul.f32 -1.442695, %v962_v57 }
 0xece   : > { %1645 = vpow2.f32 %v1455_v4 }
 0xed6   : > { %v1644_v59 = vpop.eup %1643 }
 0xed7   : > { %977 = vrot.lane.b32.xlu0 %v1644_v59, %s1694_s23 }
 0xed8   : > { %v1646_v1 = vpop.eup %1645 }
 0xed9   : > { %v966_v60 = vadd.f32 1.0, %v1646_v1 }
 0xedb   : > { %1647 = vrcp.f32 %v966_v60 }
 0xee5   : > { %v1648_v61 = vpop.eup %1647 }
 0xee6   : > { %v975_v3 = vmul.f32 %v1648_v61, %v973_v2 }
 0xf49   : > { %v978_v62 = vpop.permute.xlu0 %977 }
 0xf4a   : > { %v980_v63 = vmul.f32 %v1648_v61, %v978_v62 }
 0xf4c   : > { %982 = vrot.lane.b32.xlu0 %v980_v63, %s1695_s24 }
 0xfbe   : > { %v983_v5 = vpop.permute.xlu0 %982 }
 0xfbf   : > { %v985_v6 = vadd.f32 %v983_v5, %v975_v3 }
 0xfc1   : > { %1649 = vtanh.f32 %v985_v6 }
 0xfcb   : > { %v1650_v7 = vpop.eup %1649 }
 0xfcc   : > { %988 = vrot.lane.b32.xlu1 %v1650_v7, %s1696_s25 }
 0xfd0   : > { %993 = vrot.lane.b32.xlu1 %v985_v6, %s1697_s26 }
0x103e   : > { %v989_v8 = vpop.permute.xlu1 %988 }
0x103f   : > { %v991_v9 = vmul.f32 %v1648_v61, %v989_v8 }
0x1041   : > { %998 = vrot.lane.b32.xlu0 %v991_v9, %s1698_s27 }
0x1042   : > { %v994_v10 = vpop.permute.xlu1 %993 }
0x1043   : > { %996 = vst.msk [vmem:[#allocation3] sm:$0x3] %vm267_vm0, %v994_v10 }
0x104a   : > { %v1091_v11 = vld [vmem:[#allocation3] sm:$0x3] }
0x104b   : > { %1093 = vrot.lane.b32.xlu1 %v1091_v11, %s1695_s24 }
0x10b3   : > { %v999_v12 = vpop.permute.xlu0 %998 }
0x10b4   : > { %1001 = vst.msk [vmem:[#allocation2] sm:$0x3] %vm267_vm0, %v999_v12  ;;  %1003 = vst.msk [vmem:[%s1002_s22] sm:$0x3] %vm267_vm0, %v999_v12 }
0x10bb   : > { %v1009_v13 = vld [vmem:[#allocation2] sm:$0x3] }
0x10bc   : > { %1538 = vmatmul.mubr.msk.f32.vlgmr.msra.gmra.mrb[6].mxu0 %vm277_vm2, %v1009_v13 }
0x10bd   : > { %v1094_v24 = vpop.permute.xlu1 %1093 }
0x118f   : > { %v1079_v15 = vpop.f32.mrb[6].mxu0 }
0x1190   : > { %v1083_v16 = vadd.f32 %v1079_v15, %v1008_v14  ;;  %v1539_v17 = vpop.f32.mrb[7].mxu0 }
0x1192   : > { %1651 = vtanh.f32 %v1083_v16  ;;  %v1458_v18 = vmul.f32 -1.442695, %v1083_v16 }
0x1194   : > { %1653 = vpow2.f32 %v1458_v18 }
0x119c   : > { %v1652_v0 = vpop.eup %1651 }
0x119d   : > { %1098 = vrot.lane.b32.xlu0 %v1652_v0, %s1694_s23 }
0x119e   : > { %v1654_v19 = vpop.eup %1653 }
0x119f   : > { %v1087_v20 = vadd.f32 1.0, %v1654_v19 }
0x11a1   : > { %1655 = vrcp.f32 %v1087_v20 }
0x11ab   : > { %v1656_v21 = vpop.eup %1655 }
0x11ac   : > { %v1096_v25 = vmul.f32 %v1656_v21, %v1094_v24 }
0x120f   : > { %v1099_v22 = vpop.permute.xlu0 %1098 }
0x1210   : > { %v1101_v23 = vmul.f32 %v1656_v21, %v1099_v22 }
0x1212   : > { %1103 = vrot.lane.b32.xlu0 %v1101_v23, %s1695_s24 }
0x1284   : > { %v1104_v26 = vpop.permute.xlu0 %1103 }
0x1285   : > { %v1106_v27 = vadd.f32 %v1104_v26, %v1096_v25 }
0x1287   : > { %1657 = vtanh.f32 %v1106_v27 }
0x1291   : > { %v1658_v28 = vpop.eup %1657 }
0x1292   : > { %1109 = vrot.lane.b32.xlu1 %v1658_v28, %s1696_s25 }
0x1296   : > { %1114 = vrot.lane.b32.xlu1 %v1106_v27, %s1697_s26 }
0x1304   : > { %v1110_v29 = vpop.permute.xlu1 %1109 }
0x1305   : > { %v1112_v30 = vmul.f32 %v1656_v21, %v1110_v29 }
0x1307   : > { %1119 = vrot.lane.b32.xlu0 %v1112_v30, %s1698_s27 }
0x1308   : > { %v1115_v31 = vpop.permute.xlu1 %1114 }
0x1309   : > { %1117 = vst.msk [vmem:[#allocation3] sm:$0x3] %vm267_vm0, %v1115_v31 }
0x1310   : > { %v1211_v32 = vld [vmem:[#allocation3] sm:$0x3] }
0x1311   : > { %1213 = vrot.lane.b32.xlu1 %v1211_v32, %s1695_s24 }
0x1379   : > { %v1120_v33 = vpop.permute.xlu0 %1119 }
0x137a   : > { %1122 = vst.msk [vmem:[#allocation2] sm:$0x3] %vm267_vm0, %v1120_v33  ;;  %1124 = vst.msk [vmem:[%s1123_s9] sm:$0x3] %vm267_vm0, %v1120_v33 }
0x1381   : > { %v1129_v34 = vld [vmem:[#allocation2] sm:$0x3] }
0x1382   : > { %1545 = vmatmul.mubr.msk.f32.vlgmr.msra.gmra.mrb[6].mxu1 %vm277_vm2, %v1129_v34 }
0x1383   : > { %v1214_v46 = vpop.permute.xlu1 %1213 }
0x1455   : > { %v1199_v36 = vpop.f32.mrb[6].mxu1 }
0x1456   : > { %v1203_v37 = vadd.f32 %v1199_v36, %v1128_v35  ;;  %v1546_v38 = vpop.f32.mrb[7].mxu1 }
0x1458   : > { %1659 = vtanh.f32 %v1203_v37  ;;  %v1461_v40 = vmul.f32 -1.442695, %v1203_v37 }
0x145a   : > { %1661 = vpow2.f32 %v1461_v40 }
0x1462   : > { %v1660_v39 = vpop.eup %1659 }
0x1463   : > { %1218 = vrot.lane.b32.xlu0 %v1660_v39, %s1694_s23 }
0x1464   : > { %v1662_v41 = vpop.eup %1661 }
0x1465   : > { %v1207_v42 = vadd.f32 1.0, %v1662_v41 }
0x1467   : > { %1663 = vrcp.f32 %v1207_v42 }
0x1471   : > { %v1664_v43 = vpop.eup %1663 }
0x1472   : > { %v1216_v47 = vmul.f32 %v1664_v43, %v1214_v46 }
0x14d5   : > { %v1219_v44 = vpop.permute.xlu0 %1218 }
0x14d6   : > { %v1221_v45 = vmul.f32 %v1664_v43, %v1219_v44 }
0x14d8   : > { %1223 = vrot.lane.b32.xlu0 %v1221_v45, %s1695_s24 }
0x154a   : > { %v1224_v48 = vpop.permute.xlu0 %1223 }
0x154b   : > { %v1226_v49 = vadd.f32 %v1224_v48, %v1216_v47 }
0x154d   : > { %1665 = vtanh.f32 %v1226_v49  ;;  %1234 = vrot.lane.b32.xlu0 %v1226_v49, %s1697_s26 }
0x1557   : > { %v1666_v50 = vpop.eup %1665 }
0x1558   : > { %1229 = vrot.lane.b32.xlu1 %v1666_v50, %s1696_s25 }
0x15bf   : > { %v1235_v51 = vpop.permute.xlu0 %1234 }
0x15c0   : > { %1237 = vst.msk [vmem:[#allocation3] sm:$0x3] %vm267_vm0, %v1235_v51 }
0x15ca   : > { %v1230_v52 = vpop.permute.xlu1 %1229 }
0x15cb   : > { %v1232_v53 = vmul.f32 %v1664_v43, %v1230_v52 }
0x15cd   : > { %1239 = vrot.lane.b32.xlu1 %v1232_v53, %s1698_s27 }
0x163f   : > { %v1240_v54 = vpop.permute.xlu1 %1239 }
0x1640   : > { %1242 = vst.msk [vmem:[#allocation2] sm:$0x3] %vm267_vm0, %v1240_v54  ;;  %1244 = vst.msk [vmem:[%s1243_s21] sm:$0x3] %vm267_vm0, %v1240_v54 }
0x1641 PF: > { %s12_s11 = sadd.s32 1, %s1689_s11   ;;  %s1967_s9 = smov %s1685_s10 }
0x1642   : > { %p9_p5 = scmp.ge.s32.totalorder %s12_s11, 4   ;;  %s1968_s10 = smov %s1970_s12 }
0x1644   :  { %11 = sbr.rel (!%p9_p5) target bundleno = 2 (0x2), region = 81 }

</bundles_post_ra>
